<compile_context>
chip_gen: v6e
topology: v6e:2x2x1
jax: 0.10.0
libtpu: 0.0.40
codegen_flags: <defaults>
</compile_context>

<pallas_src>
import functools
import math

import jax
import jax.numpy as jnp
from jax import lax
from jax.experimental import pallas as pl
from jax.experimental.pallas import tpu as pltpu


# ----------------------------- Pallas kernel ------------------------------- #

def sattention_kernel(x_ref, masks_ref, wqkv_ref, bqkv_ref, s_ref, st_ref,
                      wout_ref, bout_ref, out_ref, *,
                      head_num, head_dim, seq_len, chunk_rows, n_chunks,
                      fast_math, approx_recip):
    f32 = jnp.float32
    mmt = jnp.bfloat16 if fast_math else f32          # MXU operand dtype
    T = seq_len
    hid = head_num * head_dim
    CL = chunk_rows * T                               # lanes per in-kernel chunk
    neg_inf = f32(-jnp.inf)
    scale = 1.0 / jnp.sqrt(f32(hid))

    # chunk-local lane bookkeeping (identical for every chunk: chunks are segment-aligned)
    lane = lax.broadcasted_iota(jnp.int32, (1, CL), 1)
    if T & (T - 1) == 0:                              # power-of-two fast path
        t_idx = jnp.bitwise_and(lane, T - 1)
        seg_idx = lane >> (T.bit_length() - 1)
    else:
        t_idx = lane % T
        seg_idx = lane // T
    is_first = t_idx == 0
    is_last = t_idx == T - 1

    # 0/1 segment-membership matrix built in-kernel (never shipped from HBM)
    row = lax.broadcasted_iota(jnp.int32, (chunk_rows, CL), 0)
    pt = (seg_idx == row).astype(mmt)                 # [chunk_rows, CL]

    def roll(z, shift):
        n = z.shape[-1]
        shift = shift % n
        return z if shift == 0 else pltpu.roll(z, shift=shift, axis=z.ndim - 1)

    def suffix_max(z):
        # ONE roll per doubling step; true segment max lands on the t_idx==0 lane only
        s = 1
        while s < T:
            z = jnp.maximum(z, jnp.where(t_idx < T - s, roll(z, -s), neg_inf))
            s *= 2
        return z

    def seg_max_bcast(z):
        # cyclic doubling (2 rolls/step): segment max broadcast to every lane (m only)
        s = 1
        while s < T:
            z = jnp.maximum(z, jnp.where(t_idx >= s, roll(z, s), roll(z, s - T)))
            s *= 2
        return z

    def maxpool3(z):
        # MaxPool1d(kernel=3, stride=1, padding=1); PyTorch pads with -inf
        zp = jnp.where(is_first, neg_inf, roll(z, 1))
        zn = jnp.where(is_last, neg_inf, roll(z, -1))
        return jnp.maximum(z, jnp.maximum(zp, zn))

    # constants: loaded once, reused by every chunk
    wqkv = wqkv_ref[...]                              # already in the matmul dtype
    bqkv = bqkv_ref[...].astype(f32)
    s_mat = s_ref[...].astype(mmt)
    st_mat = st_ref[...].astype(mmt)
    wout = wout_ref[...].astype(mmt)
    bout = bout_ref[...].astype(f32)

    # statically unrolled chunk loop: each chunk is a (chunk_rows x T)-lane slab
    for c in range(n_chunks):
        lo, hi = c * CL, (c + 1) * CL
        x = x_ref[:, lo:hi]                           # [D, CL]
        gm = masks_ref[0:1, lo:hi]                    # [1, CL] query / global-key mask
        tm = masks_ref[1:2, lo:hi]                    # [1, CL] temporal-key mask

        # q/k/v Conv1d(k=3, pad=1): taps via XLU rolls, ONE fused MXU matmul.
        # (v5e note: with fast_math the rolls/selects below run on bf16 operands; on
        #  v5e prefer upcasting x to f32 here and casting xs back at the dot.)
        zero = jnp.zeros((), x.dtype)
        x_prev = jnp.where(is_first, zero, roll(x, 1))
        x_next = jnp.where(is_last, zero, roll(x, -1))
        xs = jnp.concatenate([x_prev, x, x_next], axis=0)               # [3D, CL]
        qkv = jnp.dot(wqkv, xs, preferred_element_type=f32) + bqkv      # [3*hid, CL]
        q, k, v = qkv[:hid], qkv[hid:2 * hid], qkv[2 * hid:]

        k_c = maxpool3(k)
        v_c = maxpool3(v)
        q_sf = suffix_max(q)                          # segment max valid on first lane
        k_sf = suffix_max(k)
        v_sf = suffix_max(v)
        q_g0 = jnp.where(is_first, q_sf, 0.0)
        k_g0 = jnp.where(is_first, k_sf, 0.0)

        # broadcast q's segment max to every lane via the PT matmul pair (MXU, not XLU)
        q_rows = jnp.einsum('cn,bn->cb', q_g0.astype(mmt), pt,
                            preferred_element_type=f32)                 # [hid, rows]
        q_gb = jnp.einsum('cb,bn->cn', q_rows.astype(mmt), pt,
                          preferred_element_type=f32)                   # [hid, CL]

        # fused per-head score matmul: [global slot | temporal slots] side by side
        s_in = jnp.concatenate([q_g0 * k_g0, q_gb * k_c], axis=-1).astype(mmt)
        s_both = jnp.dot(s_mat, s_in, preferred_element_type=f32) * scale
        s_g = jnp.where(jnp.logical_and(is_first, gm != 0.0),
                        s_both[:, :CL], neg_inf)      # global slot lives on lane 0 only
        s_c = jnp.where(tm != 0.0, s_both[:, CL:], neg_inf)

        # softmax over the (1 + T) key slots of every (head, batch-row)
        m = seg_max_bcast(jnp.maximum(s_g, s_c))      # [H, CL], segment-constant
        m = jnp.maximum(m, f32(-1e30))                # keep fully-masked rows NaN-free
        e_g = jnp.exp(s_g - m)                        # nonzero only on first lanes
        e_c = jnp.exp(s_c - m)
        seg_sum = jnp.einsum('hn,bn->hb', (e_c + e_g).astype(mmt), pt,
                             preferred_element_type=f32)                # [H, rows]
        denom = jnp.einsum('hb,bn->hn', seg_sum.astype(mmt), pt,
                           preferred_element_type=f32)                  # [H, CL]
        safe = denom > 0.0
        inv = pl.reciprocal(jnp.where(safe, denom, 1.0), approx=approx_recip)
        attn_c = jnp.where(safe, e_c * inv, 0.0) * gm  # post-softmax query-mask multiply
        attn_g = jnp.where(safe, e_g * inv, 0.0) * gm

        # fused head->channel expansion matmul, then attention @ value
        a_in = jnp.concatenate([attn_c, attn_g], axis=-1).astype(mmt)
        a_both = jnp.dot(st_mat, a_in, preferred_element_type=f32)      # [hid, 2*CL]
        a_c, a_g = a_both[:, :CL], a_both[:, CL:]
        term = a_c * v_c + jnp.where(is_first, a_g * v_sf, 0.0)
        ctx = jnp.einsum('bn,cn->bc', pt, term.astype(mmt),
                         preferred_element_type=f32)                    # [rows, hid]

        # fused conv1d_h . conv1d_out (both 1x1): y = ctx @ W_out^T + b_out
        y = jnp.einsum('bc,dc->bd', ctx.astype(mmt), wout,
                       preferred_element_type=f32) + bout               # [rows, D]
        out_ref[c * chunk_rows:(c + 1) * chunk_rows, :] = y.astype(out_ref.dtype)


# ------------------------------ JAX wrapper -------------------------------- #

def _pick_blocking(batch, seq_len, feat_dim, act_bytes, lane_target=512):
    """(rows per chunk, lanes per chunk, chunks per grid step), sized to device VMEM."""
    total = batch * seq_len
    if seq_len <= 128 and 128 % seq_len == 0:
        chunk_rows = 128 // seq_len                   # 128-lane chunks
    else:
        chunk_rows = 1                                # one batch row per chunk
    chunk_rows = math.gcd(chunk_rows, batch)
    chunk_lanes = chunk_rows * seq_len

    try:                                              # v5e/v6e: 128 MiB, v7x: 64 MiB
        vmem_cap = pltpu.get_tpu_info().vmem_capacity_bytes
    except Exception:                                 # be conservative if query fails
        vmem_cap = 64 << 20
    budget = min(vmem_cap, 64 << 20) // 6             # streamed double-buffered blocks

    def step_bytes(lanes):
        rows = lanes // seq_len
        return 2 * (feat_dim * lanes * act_bytes      # x block
                    + 2 * lanes * 4                   # stacked masks block
                    + rows * feat_dim * 4)            # output block

    def legal(nc):
        lanes, rows = nc * chunk_lanes, nc * chunk_rows
        return (total % lanes == 0
                and (lanes % 128 == 0 or lanes == total)
                and (rows % 8 == 0 or rows == batch)
                and step_bytes(lanes) <= budget)

    want = max(1, min(lane_target // max(chunk_lanes, 1), total // chunk_lanes))
    for nc in range(want, 0, -1):
        if legal(nc):
            return chunk_rows, chunk_lanes, nc
    nc = total // chunk_lanes                         # whole array in one step
    if nc * chunk_lanes == total and step_bytes(total) <= budget:
        return chunk_rows, chunk_lanes, nc
    raise ValueError(                                  # no silent VMEM blowup
        "SAttention Pallas kernel: no VMEM-fitting blocking for "
        f"batch={batch}, seq_len={seq_len}, feat={feat_dim}")


def sattention_forward(t, g, g_mask, t_mask, params, head_num, *,
                       fast_math=False, approx_recip=True):
    """t: [B, T, D]; g is unused by the module's forward. Returns [B, 1, D]."""
    del g
    B, T, D = t.shape
    head_dim = D // head_num
    hid = head_num * head_dim
    f32 = jnp.float32
    mm_dtype = jnp.bfloat16 if fast_math else f32     # bf16 MXU operands on v6e/v7x

    chunk_rows, chunk_lanes, n_chunks = _pick_blocking(
        B, T, D, act_bytes=jnp.dtype(mm_dtype).itemsize)
    lanes_step = n_chunks * chunk_lanes
    rows_step = n_chunks * chunk_rows
    grid = (B * T // lanes_step,)

    # activations: channel-major, (batch, time) flattened onto the lane axis.
    # TODO(synk): at production sizes this transpose is an extra HBM pass — feed the
    # kernel channel-major activations from the producing layer (or use input fusion).
    x_flat = jnp.transpose(t, (2, 0, 1)).reshape(D, B * T).astype(mm_dtype)

    # query/global mask and temporal mask stacked into one streamed [2, B*T] operand
    gm_flat = jnp.repeat(g_mask.astype(f32).reshape(B, 1), T, axis=1).reshape(1, B * T)
    tm_flat = t_mask.astype(f32).reshape(1, B * T)
    masks = jnp.concatenate([gm_flat, tm_flat], axis=0)

    # fuse the 3 input convs (q, k, v) into one [3*hid, 3*D] weight
    Wqkv = jnp.concatenate(
        [jnp.concatenate([W[:, :, 0], W[:, :, 1], W[:, :, 2]], axis=1)
         for W in params['Wqkv3']], axis=0).astype(mm_dtype)
    bqkv = jnp.concatenate(params['bqkv'])[:, None].astype(f32)          # [3*hid, 1]

    S = jnp.repeat(jnp.eye(head_num, dtype=f32), head_dim, axis=1)       # [H, hid]
    ST = S.T                                                             # [hid, H]

    # fuse conv1d_h (1x1 over heads) with conv1d_out (1x1): one affine map
    Mh = jnp.kron(params['Wh'][:, :, 0].astype(f32), jnp.eye(head_dim, dtype=f32))
    bh = jnp.repeat(params['bh'].astype(f32), head_dim)                  # [hid]
    Wo = params['Wo'][:, :, 0].astype(f32)                               # [D, hid]
    W_out = Wo @ Mh                                                      # [D, hid]
    b_out = (Wo @ bh + params['bo'].astype(f32))[None, :]                # [1, D]

    kernel = functools.partial(
        sattention_kernel, head_num=head_num, head_dim=head_dim, seq_len=T,
        chunk_rows=chunk_rows, n_chunks=n_chunks,
        fast_math=fast_math, approx_recip=approx_recip)

    def wspec(a):
        # constant operand, whole-array block (single-buffering via pl.Buffered(1) is a
        # further v7x knob; left default here for lowering safety)
        return pl.BlockSpec(a.shape, lambda i, _n=a.ndim: (0,) * _n)

    out = pl.pallas_call(
        kernel,
        out_shape=jax.ShapeDtypeStruct((B, D), f32),
        grid_spec=pltpu.PrefetchScalarGridSpec(
            num_scalar_prefetch=0,
            grid=grid,
            in_specs=[
                pl.BlockSpec((D, lanes_step), lambda i: (0, i)),   # x (packed lanes)
                pl.BlockSpec((2, lanes_step), lambda i: (0, i)),   # [g_mask; t_mask]
                wspec(Wqkv), wspec(bqkv), wspec(S), wspec(ST),
                wspec(W_out), wspec(b_out),
            ],
            out_specs=pl.BlockSpec((rows_step, D), lambda i: (i, 0)),
        ),
        compiler_params=pltpu.CompilerParams(
            dimension_semantics=("parallel",)),       # 2-TC split on v7x when grid >= 2
    )(x_flat, masks, Wqkv, bqkv, S, ST, W_out, b_out)

    return out.reshape(B, 1, D)


# -------------------- deterministic parameter construction ----------------- #

def make_params(key, unit_num, head_num):
    head_dim = unit_num // head_num
    hid = head_num * head_dim
    ks = jax.random.split(key, 10)

    def u(k, shape, fan_in):
        bound = 1.0 / jnp.sqrt(jnp.float32(fan_in))
        return jax.random.uniform(k, shape, jnp.float32, -bound, bound)

    return {
        'Wqkv3': [u(ks[i], (hid, unit_num, 3), unit_num * 3) for i in range(3)],
        'bqkv': [u(ks[3 + i], (hid,), unit_num * 3) for i in range(3)],
        'Wh': u(ks[6], (head_num, head_num, 1), head_num),
        'bh': u(ks[7], (head_num,), head_num),
        'Wo': u(ks[8], (unit_num, hid, 1), hid),
        'bo': u(ks[9], (unit_num,), hid),
    }


# ------------------------- pure-JAX reference (check) ----------------------- #

def sattention_reference(t, g_mask, t_mask, params, head_num):
    B, T, D = t.shape
    head_dim = D // head_num
    hid = head_num * head_dim
    x = jnp.transpose(t, (0, 2, 1))
    xp = jnp.pad(x, ((0, 0), (0, 0), (1, 1)))

    def conv3(W, b):
        return (jnp.einsum('oi,bit->bot', W[:, :, 0], xp[:, :, :-2])
                + jnp.einsum('oi,bit->bot', W[:, :, 1], xp[:, :, 1:-1])
                + jnp.einsum('oi,bit->bot', W[:, :, 2], xp[:, :, 2:])
                + b[None, :, None])

    q = conv3(params['Wqkv3'][0], params['bqkv'][0])
    k = conv3(params['Wqkv3'][1], params['bqkv'][1])
    v = conv3(params['Wqkv3'][2], params['bqkv'][2])

    def pool3(z):
        zp = jnp.pad(z, ((0, 0), (0, 0), (1, 1)), constant_values=-jnp.inf)
        return jnp.maximum(jnp.maximum(zp[:, :, :-2], zp[:, :, 1:-1]), zp[:, :, 2:])

    def heads_t(z):  # [B, hid, L] -> [B, H, L, head_dim]
        return jnp.transpose(z.reshape(B, head_num, head_dim, -1), (0, 1, 3, 2))

    q_ = heads_t(jnp.max(q, -1, keepdims=True))
    key_ = jnp.concatenate([heads_t(jnp.max(k, -1, keepdims=True)), heads_t(pool3(k))], axis=-2)
    value_ = jnp.concatenate([heads_t(jnp.max(v, -1, keepdims=True)), heads_t(pool3(v))], axis=-2)

    att = jnp.einsum('abcd,abed->abce', q_, key_) / jnp.sqrt(jnp.float32(hid))
    key_mask = jnp.concatenate([g_mask.astype(jnp.float32), t_mask.astype(jnp.float32)], axis=-1)
    att = jnp.where(key_mask[:, None, None, :] == 0, -jnp.inf, att)
    att = jax.nn.softmax(att, axis=-1)
    att = att * g_mask.astype(jnp.float32)[:, None, :, None]

    out = jnp.einsum('abcd,abdf->abcf', att, value_)                 # [B, H, 1, Dh]
    out = out.reshape(B, head_num, head_dim)
    out = jnp.einsum('hk,bkd->bhd', params['Wh'][:, :, 0], out) + params['bh'][None, :, None]
    out = jnp.transpose(out.reshape(B, head_num, 1, head_dim), (0, 2, 1, 3)).reshape(B, 1, hid)
    out = jnp.einsum('oc,blc->blo', params['Wo'][:, :, 0], out) + params['bo'][None, None, :]
    return out


# ----------------------------------- main ----------------------------------- #

if __name__ == "__main__":
    B, T, unit_num, head_num = 64, 16, 32, 8   # -> 4 chunks x 128 lanes per step, grid = 2

    key = jax.random.PRNGKey(0)
    k1, k2, kp = jax.random.split(key, 3)
    t = jax.random.normal(k1, (B, T, unit_num), jnp.float32)
    g = jax.random.normal(k2, (B, 1, unit_num), jnp.float32)     # unused by forward
    g_mask = jnp.ones((B, 1), jnp.float32).at[1, 0].set(0.0)     # one query-masked row
    # mask out the last 4 timesteps to exercise the key-masking path
    t_mask = (jnp.arange(T)[None, :] < (T - 4)).astype(jnp.float32).repeat(B, axis=0)

    params = make_params(kp, unit_num, head_num)
    ref = sattention_reference(t, g_mask, t_mask, params, head_num)

    # exact path: f32 matmuls + exact reciprocal
    out = sattention_forward(t, g, g_mask, t_mask, params, head_num,
                             fast_math=False, approx_recip=False)
    out = jax.block_until_ready(out)
    assert out.shape == (B, 1, unit_num), out.shape
    err = float(jnp.max(jnp.abs(out - ref)))
    assert jnp.allclose(out, ref, atol=5e-4, rtol=5e-4), err

    # default path: f32 matmuls + approx reciprocal on the otherwise-idle EUP
    out_d = jax.block_until_ready(
        sattention_forward(t, g, g_mask, t_mask, params, head_num))
    err_d = float(jnp.max(jnp.abs(out_d - ref)))
    assert jnp.allclose(out_d, ref, atol=1e-2, rtol=1e-2), err_d

    # fast path: bf16 operands on every matmul + approx reciprocal (v6e/v7x native rate)
    out_f = jax.block_until_ready(
        sattention_forward(t, g, g_mask, t_mask, params, head_num, fast_math=True))
    err_f = float(jnp.max(jnp.abs(out_f - ref)))
    assert jnp.allclose(out_f, ref, atol=5e-2, rtol=5e-2), err_f

    print("KERNEL_OK")
</pallas_src>

<mosaic_0001>
module attributes {stable_mosaic.version = 11 : i64} {
  func.func @sattention_kernel(%arg0: i32, %arg1: memref<32x512xf32, #tpu.memory_space<vmem>>, %arg2: memref<2x512xf32, #tpu.memory_space<vmem>>, %arg3: memref<96x96xf32, #tpu.memory_space<vmem>>, %arg4: memref<96x1xf32, #tpu.memory_space<vmem>>, %arg5: memref<8x32xf32, #tpu.memory_space<vmem>>, %arg6: memref<32x8xf32, #tpu.memory_space<vmem>>, %arg7: memref<32x32xf32, #tpu.memory_space<vmem>>, %arg8: memref<1x32xf32, #tpu.memory_space<vmem>>, %arg9: memref<32x32xf32, #tpu.memory_space<vmem>>) attributes {dimension_semantics = [#tpu.dimension_semantics<parallel>], iteration_bounds = array<i64: 2>, scalar_prefetch = 0 : i64, scratch_operands = 0 : i64, tpu.core_type = #tpu.core_type<tc>, window_params = [{transform_indices = @transform_0, window_bounds = array<i64: 32, 512>}, {transform_indices = @transform_1, window_bounds = array<i64: 2, 512>}, {pipeline_mode = #tpu.pipeline_mode<synchronous>, transform_indices = @transform_2, window_bounds = array<i64: 96, 96>}, {pipeline_mode = #tpu.pipeline_mode<synchronous>, transform_indices = @transform_3, window_bounds = array<i64: 96, 1>}, {pipeline_mode = #tpu.pipeline_mode<synchronous>, transform_indices = @transform_4, window_bounds = array<i64: 8, 32>}, {pipeline_mode = #tpu.pipeline_mode<synchronous>, transform_indices = @transform_5, window_bounds = array<i64: 32, 8>}, {pipeline_mode = #tpu.pipeline_mode<synchronous>, transform_indices = @transform_6, window_bounds = array<i64: 32, 32>}, {pipeline_mode = #tpu.pipeline_mode<synchronous>, transform_indices = @transform_7, window_bounds = array<i64: 1, 32>}, {transform_indices = @transform_8, window_bounds = array<i64: 32, 32>}]} {
    %cst = arith.constant 3.200000e+01 : f32
    %0 = math.sqrt %cst : f32
    %cst_0 = arith.constant 1.000000e+00 : f32
    %1 = arith.divf %cst_0, %0 : f32
    %2 = tpu.iota {dimensions = array<i32: 1>} : vector<1x128xi32>
    %c15_i32 = arith.constant 15 : i32
    %3 = vector.broadcast %c15_i32 : i32 to vector<1x128xi32>
    %4 = arith.andi %2, %3 : vector<1x128xi32>
    %c4_i32 = arith.constant 4 : i32
    %5 = vector.broadcast %c4_i32 : i32 to vector<1x128xi32>
    %6 = arith.shrsi %2, %5 : vector<1x128xi32>
    %c0_i32 = arith.constant 0 : i32
    %7 = vector.broadcast %c0_i32 : i32 to vector<1x128xi32>
    %8 = arith.cmpi eq, %4, %7 : vector<1x128xi32>
    %c15_i32_1 = arith.constant 15 : i32
    %9 = vector.broadcast %c15_i32_1 : i32 to vector<1x128xi32>
    %10 = arith.cmpi eq, %4, %9 : vector<1x128xi32>
    %11 = tpu.iota {dimensions = array<i32: 0>} : vector<8x128xi32>
    %12 = vector.broadcast %6 : vector<1x128xi32> to vector<8x128xi32>
    %13 = arith.cmpi eq, %12, %11 : vector<8x128xi32>
    %14 = arith.extui %13 : vector<8x128xi1> to vector<8x128xi32>
    %15 = arith.sitofp %14 : vector<8x128xi32> to vector<8x128xf32>
    %c0 = arith.constant 0 : index
    %c0_2 = arith.constant 0 : index
    %16 = vector.load %arg3[%c0, %c0_2] : memref<96x96xf32, #tpu.memory_space<vmem>>, vector<96x96xf32>
    %c0_3 = arith.constant 0 : index
    %c0_4 = arith.constant 0 : index
    %17 = vector.load %arg4[%c0_3, %c0_4] : memref<96x1xf32, #tpu.memory_space<vmem>>, vector<96x1xf32>
    %c0_5 = arith.constant 0 : index
    %c0_6 = arith.constant 0 : index
    %18 = vector.load %arg5[%c0_5, %c0_6] : memref<8x32xf32, #tpu.memory_space<vmem>>, vector<8x32xf32>
    %c0_7 = arith.constant 0 : index
    %c0_8 = arith.constant 0 : index
    %19 = vector.load %arg6[%c0_7, %c0_8] : memref<32x8xf32, #tpu.memory_space<vmem>>, vector<32x8xf32>
    %c0_9 = arith.constant 0 : index
    %c0_10 = arith.constant 0 : index
    %20 = vector.load %arg7[%c0_9, %c0_10] : memref<32x32xf32, #tpu.memory_space<vmem>>, vector<32x32xf32>
    %c0_11 = arith.constant 0 : index
    %c0_12 = arith.constant 0 : index
    %21 = vector.load %arg8[%c0_11, %c0_12] : memref<1x32xf32, #tpu.memory_space<vmem>>, vector<1x32xf32>
    %c0_13 = arith.constant 0 : index
    %c0_14 = arith.constant 0 : index
    %22 = vector.load %arg1[%c0_13, %c0_14] : memref<32x512xf32, #tpu.memory_space<vmem>>, vector<32x128xf32>
    %c0_15 = arith.constant 0 : index
    %c0_16 = arith.constant 0 : index
    %23 = vector.load %arg2[%c0_15, %c0_16] : memref<2x512xf32, #tpu.memory_space<vmem>>, vector<1x128xf32>
    %c1 = arith.constant 1 : index
    %c0_17 = arith.constant 0 : index
    %24 = vector.load %arg2[%c1, %c0_17] : memref<2x512xf32, #tpu.memory_space<vmem>>, vector<1x128xf32>
    %c1_i32 = arith.constant 1 : i32
    %25 = tpu.dynamic_rotate %22 by %c1_i32 dim 1 : vector<32x128xf32>, i32 -> vector<32x128xf32>
    %cst_18 = arith.constant 0.000000e+00 : f32
    %26 = vector.shape_cast %8 : vector<1x128xi1> to vector<1x128xi1>
    %27 = vector.broadcast %26 : vector<1x128xi1> to vector<32x128xi1>
    %28 = vector.broadcast %cst_18 : f32 to vector<32x128xf32>
    %29 = arith.select %27, %28, %25 : vector<32x128xi1>, vector<32x128xf32>
    %c127_i32 = arith.constant 127 : i32
    %30 = tpu.dynamic_rotate %22 by %c127_i32 dim 1 : vector<32x128xf32>, i32 -> vector<32x128xf32>
    %cst_19 = arith.constant 0.000000e+00 : f32
    %31 = vector.shape_cast %10 : vector<1x128xi1> to vector<1x128xi1>
    %32 = vector.broadcast %31 : vector<1x128xi1> to vector<32x128xi1>
    %33 = vector.broadcast %cst_19 : f32 to vector<32x128xf32>
    %34 = arith.select %32, %33, %30 : vector<32x128xi1>, vector<32x128xf32>
    %35 = tpu.concatenate %29, %22, %34 in 0 : vector<32x128xf32>, vector<32x128xf32>, vector<32x128xf32> -> vector<96x128xf32>
    %cst_20 = arith.constant dense<0.000000e+00> : vector<96x128xf32>
    %36 = tpu.matmul %16, %35, %cst_20 {dimension_numbers = #tpu.dot_dimension_numbers<[1], [0], [0], [1], [0, 0, 1, 1], [], []>} : vector<96x96xf32>, vector<96x128xf32>, vector<96x128xf32> -> vector<96x128xf32>
    %37 = vector.broadcast %17 : vector<96x1xf32> to vector<96x128xf32>
    %38 = arith.addf %36, %37 : vector<96x128xf32>
    %39 = vector.extract_strided_slice %38 {offsets = [0, 0], sizes = [32, 128], strides = [1, 1]} : vector<96x128xf32> to vector<32x128xf32>
    %40 = vector.extract_strided_slice %38 {offsets = [32, 0], sizes = [32, 128], strides = [1, 1]} : vector<96x128xf32> to vector<32x128xf32>
    %41 = vector.extract_strided_slice %38 {offsets = [64, 0], sizes = [32, 128], strides = [1, 1]} : vector<96x128xf32> to vector<32x128xf32>
    %c1_i32_21 = arith.constant 1 : i32
    %42 = tpu.dynamic_rotate %40 by %c1_i32_21 dim 1 : vector<32x128xf32>, i32 -> vector<32x128xf32>
    %cst_22 = arith.constant 0xFF800000 : f32
    %43 = vector.shape_cast %8 : vector<1x128xi1> to vector<1x128xi1>
    %44 = vector.broadcast %43 : vector<1x128xi1> to vector<32x128xi1>
    %45 = vector.broadcast %cst_22 : f32 to vector<32x128xf32>
    %46 = arith.select %44, %45, %42 : vector<32x128xi1>, vector<32x128xf32>
    %c127_i32_23 = arith.constant 127 : i32
    %47 = tpu.dynamic_rotate %40 by %c127_i32_23 dim 1 : vector<32x128xf32>, i32 -> vector<32x128xf32>
    %cst_24 = arith.constant 0xFF800000 : f32
    %48 = vector.shape_cast %10 : vector<1x128xi1> to vector<1x128xi1>
    %49 = vector.broadcast %48 : vector<1x128xi1> to vector<32x128xi1>
    %50 = vector.broadcast %cst_24 : f32 to vector<32x128xf32>
    %51 = arith.select %49, %50, %47 : vector<32x128xi1>, vector<32x128xf32>
    %52 = arith.maximumf %46, %51 : vector<32x128xf32>
    %53 = arith.maximumf %40, %52 : vector<32x128xf32>
    %c1_i32_25 = arith.constant 1 : i32
    %54 = tpu.dynamic_rotate %41 by %c1_i32_25 dim 1 : vector<32x128xf32>, i32 -> vector<32x128xf32>
    %cst_26 = arith.constant 0xFF800000 : f32
    %55 = vector.shape_cast %8 : vector<1x128xi1> to vector<1x128xi1>
    %56 = vector.broadcast %55 : vector<1x128xi1> to vector<32x128xi1>
    %57 = vector.broadcast %cst_26 : f32 to vector<32x128xf32>
    %58 = arith.select %56, %57, %54 : vector<32x128xi1>, vector<32x128xf32>
    %c127_i32_27 = arith.constant 127 : i32
    %59 = tpu.dynamic_rotate %41 by %c127_i32_27 dim 1 : vector<32x128xf32>, i32 -> vector<32x128xf32>
    %cst_28 = arith.constant 0xFF800000 : f32
    %60 = vector.shape_cast %10 : vector<1x128xi1> to vector<1x128xi1>
    %61 = vector.broadcast %60 : vector<1x128xi1> to vector<32x128xi1>
    %62 = vector.broadcast %cst_28 : f32 to vector<32x128xf32>
    %63 = arith.select %61, %62, %59 : vector<32x128xi1>, vector<32x128xf32>
    %64 = arith.maximumf %58, %63 : vector<32x128xf32>
    %65 = arith.maximumf %41, %64 : vector<32x128xf32>
    %c15_i32_29 = arith.constant 15 : i32
    %66 = vector.broadcast %c15_i32_29 : i32 to vector<1x128xi32>
    %67 = arith.cmpi slt, %4, %66 : vector<1x128xi32>
    %c127_i32_30 = arith.constant 127 : i32
    %68 = tpu.dynamic_rotate %39 by %c127_i32_30 dim 1 : vector<32x128xf32>, i32 -> vector<32x128xf32>
    %cst_31 = arith.constant 0xFF800000 : f32
    %69 = vector.shape_cast %67 : vector<1x128xi1> to vector<1x128xi1>
    %70 = vector.broadcast %69 : vector<1x128xi1> to vector<32x128xi1>
    %71 = vector.broadcast %cst_31 : f32 to vector<32x128xf32>
    %72 = arith.select %70, %68, %71 : vector<32x128xi1>, vector<32x128xf32>
    %73 = arith.maximumf %39, %72 : vector<32x128xf32>
    %c14_i32 = arith.constant 14 : i32
    %74 = vector.broadcast %c14_i32 : i32 to vector<1x128xi32>
    %75 = arith.cmpi slt, %4, %74 : vector<1x128xi32>
    %c126_i32 = arith.constant 126 : i32
    %76 = tpu.dynamic_rotate %73 by %c126_i32 dim 1 : vector<32x128xf32>, i32 -> vector<32x128xf32>
    %cst_32 = arith.constant 0xFF800000 : f32
    %77 = vector.shape_cast %75 : vector<1x128xi1> to vector<1x128xi1>
    %78 = vector.broadcast %77 : vector<1x128xi1> to vector<32x128xi1>
    %79 = vector.broadcast %cst_32 : f32 to vector<32x128xf32>
    %80 = arith.select %78, %76, %79 : vector<32x128xi1>, vector<32x128xf32>
    %81 = arith.maximumf %73, %80 : vector<32x128xf32>
    %c12_i32 = arith.constant 12 : i32
    %82 = vector.broadcast %c12_i32 : i32 to vector<1x128xi32>
    %83 = arith.cmpi slt, %4, %82 : vector<1x128xi32>
    %c124_i32 = arith.constant 124 : i32
    %84 = tpu.dynamic_rotate %81 by %c124_i32 dim 1 : vector<32x128xf32>, i32 -> vector<32x128xf32>
    %cst_33 = arith.constant 0xFF800000 : f32
    %85 = vector.shape_cast %83 : vector<1x128xi1> to vector<1x128xi1>
    %86 = vector.broadcast %85 : vector<1x128xi1> to vector<32x128xi1>
    %87 = vector.broadcast %cst_33 : f32 to vector<32x128xf32>
    %88 = arith.select %86, %84, %87 : vector<32x128xi1>, vector<32x128xf32>
    %89 = arith.maximumf %81, %88 : vector<32x128xf32>
    %c8_i32 = arith.constant 8 : i32
    %90 = vector.broadcast %c8_i32 : i32 to vector<1x128xi32>
    %91 = arith.cmpi slt, %4, %90 : vector<1x128xi32>
    %c120_i32 = arith.constant 120 : i32
    %92 = tpu.dynamic_rotate %89 by %c120_i32 dim 1 : vector<32x128xf32>, i32 -> vector<32x128xf32>
    %cst_34 = arith.constant 0xFF800000 : f32
    %93 = vector.shape_cast %91 : vector<1x128xi1> to vector<1x128xi1>
    %94 = vector.broadcast %93 : vector<1x128xi1> to vector<32x128xi1>
    %95 = vector.broadcast %cst_34 : f32 to vector<32x128xf32>
    %96 = arith.select %94, %92, %95 : vector<32x128xi1>, vector<32x128xf32>
    %97 = arith.maximumf %89, %96 : vector<32x128xf32>
    %c15_i32_35 = arith.constant 15 : i32
    %98 = vector.broadcast %c15_i32_35 : i32 to vector<1x128xi32>
    %99 = arith.cmpi slt, %4, %98 : vector<1x128xi32>
    %c127_i32_36 = arith.constant 127 : i32
    %100 = tpu.dynamic_rotate %40 by %c127_i32_36 dim 1 : vector<32x128xf32>, i32 -> vector<32x128xf32>
    %cst_37 = arith.constant 0xFF800000 : f32
    %101 = vector.shape_cast %99 : vector<1x128xi1> to vector<1x128xi1>
    %102 = vector.broadcast %101 : vector<1x128xi1> to vector<32x128xi1>
    %103 = vector.broadcast %cst_37 : f32 to vector<32x128xf32>
    %104 = arith.select %102, %100, %103 : vector<32x128xi1>, vector<32x128xf32>
    %105 = arith.maximumf %40, %104 : vector<32x128xf32>
    %c14_i32_38 = arith.constant 14 : i32
    %106 = vector.broadcast %c14_i32_38 : i32 to vector<1x128xi32>
    %107 = arith.cmpi slt, %4, %106 : vector<1x128xi32>
    %c126_i32_39 = arith.constant 126 : i32
    %108 = tpu.dynamic_rotate %105 by %c126_i32_39 dim 1 : vector<32x128xf32>, i32 -> vector<32x128xf32>
    %cst_40 = arith.constant 0xFF800000 : f32
    %109 = vector.shape_cast %107 : vector<1x128xi1> to vector<1x128xi1>
    %110 = vector.broadcast %109 : vector<1x128xi1> to vector<32x128xi1>
    %111 = vector.broadcast %cst_40 : f32 to vector<32x128xf32>
    %112 = arith.select %110, %108, %111 : vector<32x128xi1>, vector<32x128xf32>
    %113 = arith.maximumf %105, %112 : vector<32x128xf32>
    %c12_i32_41 = arith.constant 12 : i32
    %114 = vector.broadcast %c12_i32_41 : i32 to vector<1x128xi32>
    %115 = arith.cmpi slt, %4, %114 : vector<1x128xi32>
    %c124_i32_42 = arith.constant 124 : i32
    %116 = tpu.dynamic_rotate %113 by %c124_i32_42 dim 1 : vector<32x128xf32>, i32 -> vector<32x128xf32>
    %cst_43 = arith.constant 0xFF800000 : f32
    %117 = vector.shape_cast %115 : vector<1x128xi1> to vector<1x128xi1>
    %118 = vector.broadcast %117 : vector<1x128xi1> to vector<32x128xi1>
    %119 = vector.broadcast %cst_43 : f32 to vector<32x128xf32>
    %120 = arith.select %118, %116, %119 : vector<32x128xi1>, vector<32x128xf32>
    %121 = arith.maximumf %113, %120 : vector<32x128xf32>
    %c8_i32_44 = arith.constant 8 : i32
    %122 = vector.broadcast %c8_i32_44 : i32 to vector<1x128xi32>
    %123 = arith.cmpi slt, %4, %122 : vector<1x128xi32>
    %c120_i32_45 = arith.constant 120 : i32
    %124 = tpu.dynamic_rotate %121 by %c120_i32_45 dim 1 : vector<32x128xf32>, i32 -> vector<32x128xf32>
    %cst_46 = arith.constant 0xFF800000 : f32
    %125 = vector.shape_cast %123 : vector<1x128xi1> to vector<1x128xi1>
    %126 = vector.broadcast %125 : vector<1x128xi1> to vector<32x128xi1>
    %127 = vector.broadcast %cst_46 : f32 to vector<32x128xf32>
    %128 = arith.select %126, %124, %127 : vector<32x128xi1>, vector<32x128xf32>
    %129 = arith.maximumf %121, %128 : vector<32x128xf32>
    %c15_i32_47 = arith.constant 15 : i32
    %130 = vector.broadcast %c15_i32_47 : i32 to vector<1x128xi32>
    %131 = arith.cmpi slt, %4, %130 : vector<1x128xi32>
    %c127_i32_48 = arith.constant 127 : i32
    %132 = tpu.dynamic_rotate %41 by %c127_i32_48 dim 1 : vector<32x128xf32>, i32 -> vector<32x128xf32>
    %cst_49 = arith.constant 0xFF800000 : f32
    %133 = vector.shape_cast %131 : vector<1x128xi1> to vector<1x128xi1>
    %134 = vector.broadcast %133 : vector<1x128xi1> to vector<32x128xi1>
    %135 = vector.broadcast %cst_49 : f32 to vector<32x128xf32>
    %136 = arith.select %134, %132, %135 : vector<32x128xi1>, vector<32x128xf32>
    %137 = arith.maximumf %41, %136 : vector<32x128xf32>
    %c14_i32_50 = arith.constant 14 : i32
    %138 = vector.broadcast %c14_i32_50 : i32 to vector<1x128xi32>
    %139 = arith.cmpi slt, %4, %138 : vector<1x128xi32>
    %c126_i32_51 = arith.constant 126 : i32
    %140 = tpu.dynamic_rotate %137 by %c126_i32_51 dim 1 : vector<32x128xf32>, i32 -> vector<32x128xf32>
    %cst_52 = arith.constant 0xFF800000 : f32
    %141 = vector.shape_cast %139 : vector<1x128xi1> to vector<1x128xi1>
    %142 = vector.broadcast %141 : vector<1x128xi1> to vector<32x128xi1>
    %143 = vector.broadcast %cst_52 : f32 to vector<32x128xf32>
    %144 = arith.select %142, %140, %143 : vector<32x128xi1>, vector<32x128xf32>
    %145 = arith.maximumf %137, %144 : vector<32x128xf32>
    %c12_i32_53 = arith.constant 12 : i32
    %146 = vector.broadcast %c12_i32_53 : i32 to vector<1x128xi32>
    %147 = arith.cmpi slt, %4, %146 : vector<1x128xi32>
    %c124_i32_54 = arith.constant 124 : i32
    %148 = tpu.dynamic_rotate %145 by %c124_i32_54 dim 1 : vector<32x128xf32>, i32 -> vector<32x128xf32>
    %cst_55 = arith.constant 0xFF800000 : f32
    %149 = vector.shape_cast %147 : vector<1x128xi1> to vector<1x128xi1>
    %150 = vector.broadcast %149 : vector<1x128xi1> to vector<32x128xi1>
    %151 = vector.broadcast %cst_55 : f32 to vector<32x128xf32>
    %152 = arith.select %150, %148, %151 : vector<32x128xi1>, vector<32x128xf32>
    %153 = arith.maximumf %145, %152 : vector<32x128xf32>
    %c8_i32_56 = arith.constant 8 : i32
    %154 = vector.broadcast %c8_i32_56 : i32 to vector<1x128xi32>
    %155 = arith.cmpi slt, %4, %154 : vector<1x128xi32>
    %c120_i32_57 = arith.constant 120 : i32
    %156 = tpu.dynamic_rotate %153 by %c120_i32_57 dim 1 : vector<32x128xf32>, i32 -> vector<32x128xf32>
    %cst_58 = arith.constant 0xFF800000 : f32
    %157 = vector.shape_cast %155 : vector<1x128xi1> to vector<1x128xi1>
    %158 = vector.broadcast %157 : vector<1x128xi1> to vector<32x128xi1>
    %159 = vector.broadcast %cst_58 : f32 to vector<32x128xf32>
    %160 = arith.select %158, %156, %159 : vector<32x128xi1>, vector<32x128xf32>
    %161 = arith.maximumf %153, %160 : vector<32x128xf32>
    %cst_59 = arith.constant 0.000000e+00 : f32
    %162 = vector.shape_cast %8 : vector<1x128xi1> to vector<1x128xi1>
    %163 = vector.broadcast %162 : vector<1x128xi1> to vector<32x128xi1>
    %164 = vector.broadcast %cst_59 : f32 to vector<32x128xf32>
    %165 = arith.select %163, %97, %164 : vector<32x128xi1>, vector<32x128xf32>
    %cst_60 = arith.constant 0.000000e+00 : f32
    %166 = vector.shape_cast %8 : vector<1x128xi1> to vector<1x128xi1>
    %167 = vector.broadcast %166 : vector<1x128xi1> to vector<32x128xi1>
    %168 = vector.broadcast %cst_60 : f32 to vector<32x128xf32>
    %169 = arith.select %167, %129, %168 : vector<32x128xi1>, vector<32x128xf32>
    "tpu.trace_start"() <{level = 10 : i32, message = "cn,bn->cb"}> : () -> ()
    %cst_61 = arith.constant dense<0.000000e+00> : vector<32x8xf32>
    %170 = tpu.matmul %165, %15, %cst_61 {dimension_numbers = #tpu.dot_dimension_numbers<[1], [1], [0], [0], [0, 0, 1, 0], [], []>} : vector<32x128xf32>, vector<8x128xf32>, vector<32x8xf32> -> vector<32x8xf32>
    "tpu.trace_stop"() : () -> ()
    "tpu.trace_start"() <{level = 10 : i32, message = "cb,bn->cn"}> : () -> ()
    %cst_62 = arith.constant dense<0.000000e+00> : vector<32x128xf32>
    %171 = tpu.matmul %170, %15, %cst_62 {dimension_numbers = #tpu.dot_dimension_numbers<[1], [0], [0], [1], [0, 0, 1, 1], [], []>} : vector<32x8xf32>, vector<8x128xf32>, vector<32x128xf32> -> vector<32x128xf32>
    "tpu.trace_stop"() : () -> ()
    %172 = arith.mulf %165, %169 : vector<32x128xf32>
    %173 = arith.mulf %171, %53 : vector<32x128xf32>
    %174 = tpu.concatenate %172, %173 in 1 : vector<32x128xf32>, vector<32x128xf32> -> vector<32x256xf32>
    %cst_63 = arith.constant dense<0.000000e+00> : vector<8x256xf32>
    %175 = tpu.matmul %18, %174, %cst_63 {dimension_numbers = #tpu.dot_dimension_numbers<[1], [0], [0], [1], [0, 0, 1, 1], [], []>} : vector<8x32xf32>, vector<32x256xf32>, vector<8x256xf32> -> vector<8x256xf32>
    %176 = vector.broadcast %1 : f32 to vector<8x256xf32>
    %177 = arith.mulf %175, %176 : vector<8x256xf32>
    %cst_64 = arith.constant 0.000000e+00 : f32
    %178 = vector.broadcast %cst_64 : f32 to vector<1x128xf32>
    %179 = arith.cmpf one, %23, %178 : vector<1x128xf32>
    %180 = arith.andi %8, %179 : vector<1x128xi1>
    %181 = vector.extract_strided_slice %177 {offsets = [0, 0], sizes = [8, 128], strides = [1, 1]} : vector<8x256xf32> to vector<8x128xf32>
    %cst_65 = arith.constant 0xFF800000 : f32
    %182 = vector.shape_cast %180 : vector<1x128xi1> to vector<1x128xi1>
    %183 = vector.broadcast %182 : vector<1x128xi1> to vector<8x128xi1>
    %184 = vector.broadcast %cst_65 : f32 to vector<8x128xf32>
    %185 = arith.select %183, %181, %184 : vector<8x128xi1>, vector<8x128xf32>
    %cst_66 = arith.constant 0.000000e+00 : f32
    %186 = vector.broadcast %cst_66 : f32 to vector<1x128xf32>
    %187 = arith.cmpf one, %24, %186 : vector<1x128xf32>
    %188 = vector.extract_strided_slice %177 {offsets = [0, 128], sizes = [8, 128], strides = [1, 1]} : vector<8x256xf32> to vector<8x128xf32>
    %cst_67 = arith.constant 0xFF800000 : f32
    %189 = vector.shape_cast %187 : vector<1x128xi1> to vector<1x128xi1>
    %190 = vector.broadcast %189 : vector<1x128xi1> to vector<8x128xi1>
    %191 = vector.broadcast %cst_67 : f32 to vector<8x128xf32>
    %192 = arith.select %190, %188, %191 : vector<8x128xi1>, vector<8x128xf32>
    %193 = arith.maximumf %185, %192 : vector<8x128xf32>
    %c1_i32_68 = arith.constant 1 : i32
    %194 = vector.broadcast %c1_i32_68 : i32 to vector<1x128xi32>
    %195 = arith.cmpi sge, %4, %194 : vector<1x128xi32>
    %c1_i32_69 = arith.constant 1 : i32
    %196 = tpu.dynamic_rotate %193 by %c1_i32_69 dim 1 : vector<8x128xf32>, i32 -> vector<8x128xf32>
    %c113_i32 = arith.constant 113 : i32
    %197 = tpu.dynamic_rotate %193 by %c113_i32 dim 1 : vector<8x128xf32>, i32 -> vector<8x128xf32>
    %198 = vector.shape_cast %195 : vector<1x128xi1> to vector<1x128xi1>
    %199 = vector.broadcast %198 : vector<1x128xi1> to vector<8x128xi1>
    %200 = arith.select %199, %196, %197 : vector<8x128xi1>, vector<8x128xf32>
    %201 = arith.maximumf %193, %200 : vector<8x128xf32>
    %c2_i32 = arith.constant 2 : i32
    %202 = vector.broadcast %c2_i32 : i32 to vector<1x128xi32>
    %203 = arith.cmpi sge, %4, %202 : vector<1x128xi32>
    %c2_i32_70 = arith.constant 2 : i32
    %204 = tpu.dynamic_rotate %201 by %c2_i32_70 dim 1 : vector<8x128xf32>, i32 -> vector<8x128xf32>
    %c114_i32 = arith.constant 114 : i32
    %205 = tpu.dynamic_rotate %201 by %c114_i32 dim 1 : vector<8x128xf32>, i32 -> vector<8x128xf32>
    %206 = vector.shape_cast %203 : vector<1x128xi1> to vector<1x128xi1>
    %207 = vector.broadcast %206 : vector<1x128xi1> to vector<8x128xi1>
    %208 = arith.select %207, %204, %205 : vector<8x128xi1>, vector<8x128xf32>
    %209 = arith.maximumf %201, %208 : vector<8x128xf32>
    %c4_i32_71 = arith.constant 4 : i32
    %210 = vector.broadcast %c4_i32_71 : i32 to vector<1x128xi32>
    %211 = arith.cmpi sge, %4, %210 : vector<1x128xi32>
    %c4_i32_72 = arith.constant 4 : i32
    %212 = tpu.dynamic_rotate %209 by %c4_i32_72 dim 1 : vector<8x128xf32>, i32 -> vector<8x128xf32>
    %c116_i32 = arith.constant 116 : i32
    %213 = tpu.dynamic_rotate %209 by %c116_i32 dim 1 : vector<8x128xf32>, i32 -> vector<8x128xf32>
    %214 = vector.shape_cast %211 : vector<1x128xi1> to vector<1x128xi1>
    %215 = vector.broadcast %214 : vector<1x128xi1> to vector<8x128xi1>
    %216 = arith.select %215, %212, %213 : vector<8x128xi1>, vector<8x128xf32>
    %217 = arith.maximumf %209, %216 : vector<8x128xf32>
    %c8_i32_73 = arith.constant 8 : i32
    %218 = vector.broadcast %c8_i32_73 : i32 to vector<1x128xi32>
    %219 = arith.cmpi sge, %4, %218 : vector<1x128xi32>
    %c8_i32_74 = arith.constant 8 : i32
    %220 = tpu.dynamic_rotate %217 by %c8_i32_74 dim 1 : vector<8x128xf32>, i32 -> vector<8x128xf32>
    %c120_i32_75 = arith.constant 120 : i32
    %221 = tpu.dynamic_rotate %217 by %c120_i32_75 dim 1 : vector<8x128xf32>, i32 -> vector<8x128xf32>
    %222 = vector.shape_cast %219 : vector<1x128xi1> to vector<1x128xi1>
    %223 = vector.broadcast %222 : vector<1x128xi1> to vector<8x128xi1>
    %224 = arith.select %223, %220, %221 : vector<8x128xi1>, vector<8x128xf32>
    %225 = arith.maximumf %217, %224 : vector<8x128xf32>
    %cst_76 = arith.constant -1.000000e+30 : f32
    %226 = vector.broadcast %cst_76 : f32 to vector<8x128xf32>
    %227 = arith.maximumf %225, %226 : vector<8x128xf32>
    %228 = arith.subf %185, %227 : vector<8x128xf32>
    %229 = math.exp %228 : vector<8x128xf32>
    %230 = arith.subf %192, %227 : vector<8x128xf32>
    %231 = math.exp %230 : vector<8x128xf32>
    %232 = arith.addf %231, %229 : vector<8x128xf32>
    "tpu.trace_start"() <{level = 10 : i32, message = "hn,bn->hb"}> : () -> ()
    %cst_77 = arith.constant dense<0.000000e+00> : vector<8x8xf32>
    %233 = tpu.matmul %232, %15, %cst_77 {dimension_numbers = #tpu.dot_dimension_numbers<[1], [1], [0], [0], [0, 0, 1, 0], [], []>} : vector<8x128xf32>, vector<8x128xf32>, vector<8x8xf32> -> vector<8x8xf32>
    "tpu.trace_stop"() : () -> ()
    "tpu.trace_start"() <{level = 10 : i32, message = "hb,bn->hn"}> : () -> ()
    %cst_78 = arith.constant dense<0.000000e+00> : vector<8x128xf32>
    %234 = tpu.matmul %233, %15, %cst_78 {dimension_numbers = #tpu.dot_dimension_numbers<[1], [0], [0], [1], [0, 0, 1, 1], [], []>} : vector<8x8xf32>, vector<8x128xf32>, vector<8x128xf32> -> vector<8x128xf32>
    %cst_79 = arith.constant 0.000000e+00 : f32
    "tpu.trace_stop"() : () -> ()
    %235 = vector.broadcast %cst_79 : f32 to vector<8x128xf32>
    %236 = arith.cmpf ogt, %234, %235 : vector<8x128xf32>
    %cst_80 = arith.constant 1.000000e+00 : f32
    %237 = vector.broadcast %cst_80 : f32 to vector<8x128xf32>
    %238 = arith.select %236, %234, %237 : vector<8x128xi1>, vector<8x128xf32>
    %239 = tpu.reciprocal %238 : vector<8x128xf32> -> vector<8x128xf32>
    %240 = arith.mulf %231, %239 : vector<8x128xf32>
    %cst_81 = arith.constant 0.000000e+00 : f32
    %241 = vector.broadcast %cst_81 : f32 to vector<8x128xf32>
    %242 = arith.select %236, %240, %241 : vector<8x128xi1>, vector<8x128xf32>
    %243 = vector.broadcast %23 : vector<1x128xf32> to vector<8x128xf32>
    %244 = arith.mulf %242, %243 : vector<8x128xf32>
    %245 = arith.mulf %229, %239 : vector<8x128xf32>
    %cst_82 = arith.constant 0.000000e+00 : f32
    %246 = vector.broadcast %cst_82 : f32 to vector<8x128xf32>
    %247 = arith.select %236, %245, %246 : vector<8x128xi1>, vector<8x128xf32>
    %248 = vector.broadcast %23 : vector<1x128xf32> to vector<8x128xf32>
    %249 = arith.mulf %247, %248 : vector<8x128xf32>
    %250 = tpu.concatenate %244, %249 in 1 : vector<8x128xf32>, vector<8x128xf32> -> vector<8x256xf32>
    %cst_83 = arith.constant dense<0.000000e+00> : vector<32x256xf32>
    %251 = tpu.matmul %19, %250, %cst_83 {dimension_numbers = #tpu.dot_dimension_numbers<[1], [0], [0], [1], [0, 0, 1, 1], [], []>} : vector<32x8xf32>, vector<8x256xf32>, vector<32x256xf32> -> vector<32x256xf32>
    %252 = vector.extract_strided_slice %251 {offsets = [0, 0], sizes = [32, 128], strides = [1, 1]} : vector<32x256xf32> to vector<32x128xf32>
    %253 = vector.extract_strided_slice %251 {offsets = [0, 128], sizes = [32, 128], strides = [1, 1]} : vector<32x256xf32> to vector<32x128xf32>
    %254 = arith.mulf %252, %65 : vector<32x128xf32>
    %255 = arith.mulf %253, %161 : vector<32x128xf32>
    %cst_84 = arith.constant 0.000000e+00 : f32
    %256 = vector.shape_cast %8 : vector<1x128xi1> to vector<1x128xi1>
    %257 = vector.broadcast %256 : vector<1x128xi1> to vector<32x128xi1>
    %258 = vector.broadcast %cst_84 : f32 to vector<32x128xf32>
    %259 = arith.select %257, %255, %258 : vector<32x128xi1>, vector<32x128xf32>
    %260 = arith.addf %254, %259 : vector<32x128xf32>
    "tpu.trace_start"() <{level = 10 : i32, message = "bn,cn->bc"}> : () -> ()
    %cst_85 = arith.constant dense<0.000000e+00> : vector<8x32xf32>
    %261 = tpu.matmul %15, %260, %cst_85 {dimension_numbers = #tpu.dot_dimension_numbers<[1], [1], [0], [0], [0, 0, 1, 0], [], []>} : vector<8x128xf32>, vector<32x128xf32>, vector<8x32xf32> -> vector<8x32xf32>
    "tpu.trace_stop"() : () -> ()
    "tpu.trace_start"() <{level = 10 : i32, message = "bc,dc->bd"}> : () -> ()
    %cst_86 = arith.constant dense<0.000000e+00> : vector<8x32xf32>
    %262 = tpu.matmul %261, %20, %cst_86 {dimension_numbers = #tpu.dot_dimension_numbers<[1], [1], [0], [0], [0, 0, 1, 0], [], []>} : vector<8x32xf32>, vector<32x32xf32>, vector<8x32xf32> -> vector<8x32xf32>
    "tpu.trace_stop"() : () -> ()
    %263 = vector.broadcast %21 : vector<1x32xf32> to vector<8x32xf32>
    %264 = arith.addf %262, %263 : vector<8x32xf32>
    %c0_87 = arith.constant 0 : index
    %c0_88 = arith.constant 0 : index
    %265 = vector.load %arg9[%c0_87, %c0_88] : memref<32x32xf32, #tpu.memory_space<vmem>>, vector<8x32xf32>
    tpu.vector_store %arg9[%c0_87, %c0_88], %264 {strides = array<i32>} : memref<32x32xf32, #tpu.memory_space<vmem>>, vector<8x32xf32>,
    %c0_89 = arith.constant 0 : index
    %c128 = arith.constant 128 : index
    %266 = vector.load %arg1[%c0_89, %c128] : memref<32x512xf32, #tpu.memory_space<vmem>>, vector<32x128xf32>
    %c0_90 = arith.constant 0 : index
    %c128_91 = arith.constant 128 : index
    %267 = vector.load %arg2[%c0_90, %c128_91] : memref<2x512xf32, #tpu.memory_space<vmem>>, vector<1x128xf32>
    %c1_92 = arith.constant 1 : index
    %c128_93 = arith.constant 128 : index
    %268 = vector.load %arg2[%c1_92, %c128_93] : memref<2x512xf32, #tpu.memory_space<vmem>>, vector<1x128xf32>
    %c1_i32_94 = arith.constant 1 : i32
    %269 = tpu.dynamic_rotate %266 by %c1_i32_94 dim 1 : vector<32x128xf32>, i32 -> vector<32x128xf32>
    %cst_95 = arith.constant 0.000000e+00 : f32
    %270 = vector.shape_cast %8 : vector<1x128xi1> to vector<1x128xi1>
    %271 = vector.broadcast %270 : vector<1x128xi1> to vector<32x128xi1>
    %272 = vector.broadcast %cst_95 : f32 to vector<32x128xf32>
    %273 = arith.select %271, %272, %269 : vector<32x128xi1>, vector<32x128xf32>
    %c127_i32_96 = arith.constant 127 : i32
    %274 = tpu.dynamic_rotate %266 by %c127_i32_96 dim 1 : vector<32x128xf32>, i32 -> vector<32x128xf32>
    %cst_97 = arith.constant 0.000000e+00 : f32
    %275 = vector.shape_cast %10 : vector<1x128xi1> to vector<1x128xi1>
    %276 = vector.broadcast %275 : vector<1x128xi1> to vector<32x128xi1>
    %277 = vector.broadcast %cst_97 : f32 to vector<32x128xf32>
    %278 = arith.select %276, %277, %274 : vector<32x128xi1>, vector<32x128xf32>
    %279 = tpu.concatenate %273, %266, %278 in 0 : vector<32x128xf32>, vector<32x128xf32>, vector<32x128xf32> -> vector<96x128xf32>
    %cst_98 = arith.constant dense<0.000000e+00> : vector<96x128xf32>
    %280 = tpu.matmul %16, %279, %cst_98 {dimension_numbers = #tpu.dot_dimension_numbers<[1], [0], [0], [1], [0, 0, 1, 1], [], []>} : vector<96x96xf32>, vector<96x128xf32>, vector<96x128xf32> -> vector<96x128xf32>
    %281 = vector.broadcast %17 : vector<96x1xf32> to vector<96x128xf32>
    %282 = arith.addf %280, %281 : vector<96x128xf32>
    %283 = vector.extract_strided_slice %282 {offsets = [0, 0], sizes = [32, 128], strides = [1, 1]} : vector<96x128xf32> to vector<32x128xf32>
    %284 = vector.extract_strided_slice %282 {offsets = [32, 0], sizes = [32, 128], strides = [1, 1]} : vector<96x128xf32> to vector<32x128xf32>
    %285 = vector.extract_strided_slice %282 {offsets = [64, 0], sizes = [32, 128], strides = [1, 1]} : vector<96x128xf32> to vector<32x128xf32>
    %c1_i32_99 = arith.constant 1 : i32
    %286 = tpu.dynamic_rotate %284 by %c1_i32_99 dim 1 : vector<32x128xf32>, i32 -> vector<32x128xf32>
    %cst_100 = arith.constant 0xFF800000 : f32
    %287 = vector.shape_cast %8 : vector<1x128xi1> to vector<1x128xi1>
    %288 = vector.broadcast %287 : vector<1x128xi1> to vector<32x128xi1>
    %289 = vector.broadcast %cst_100 : f32 to vector<32x128xf32>
    %290 = arith.select %288, %289, %286 : vector<32x128xi1>, vector<32x128xf32>
    %c127_i32_101 = arith.constant 127 : i32
    %291 = tpu.dynamic_rotate %284 by %c127_i32_101 dim 1 : vector<32x128xf32>, i32 -> vector<32x128xf32>
    %cst_102 = arith.constant 0xFF800000 : f32
    %292 = vector.shape_cast %10 : vector<1x128xi1> to vector<1x128xi1>
    %293 = vector.broadcast %292 : vector<1x128xi1> to vector<32x128xi1>
    %294 = vector.broadcast %cst_102 : f32 to vector<32x128xf32>
    %295 = arith.select %293, %294, %291 : vector<32x128xi1>, vector<32x128xf32>
    %296 = arith.maximumf %290, %295 : vector<32x128xf32>
    %297 = arith.maximumf %284, %296 : vector<32x128xf32>
    %c1_i32_103 = arith.constant 1 : i32
    %298 = tpu.dynamic_rotate %285 by %c1_i32_103 dim 1 : vector<32x128xf32>, i32 -> vector<32x128xf32>
    %cst_104 = arith.constant 0xFF800000 : f32
    %299 = vector.shape_cast %8 : vector<1x128xi1> to vector<1x128xi1>
    %300 = vector.broadcast %299 : vector<1x128xi1> to vector<32x128xi1>
    %301 = vector.broadcast %cst_104 : f32 to vector<32x128xf32>
    %302 = arith.select %300, %301, %298 : vector<32x128xi1>, vector<32x128xf32>
    %c127_i32_105 = arith.constant 127 : i32
    %303 = tpu.dynamic_rotate %285 by %c127_i32_105 dim 1 : vector<32x128xf32>, i32 -> vector<32x128xf32>
    %cst_106 = arith.constant 0xFF800000 : f32
    %304 = vector.shape_cast %10 : vector<1x128xi1> to vector<1x128xi1>
    %305 = vector.broadcast %304 : vector<1x128xi1> to vector<32x128xi1>
    %306 = vector.broadcast %cst_106 : f32 to vector<32x128xf32>
    %307 = arith.select %305, %306, %303 : vector<32x128xi1>, vector<32x128xf32>
    %308 = arith.maximumf %302, %307 : vector<32x128xf32>
    %309 = arith.maximumf %285, %308 : vector<32x128xf32>
    %c15_i32_107 = arith.constant 15 : i32
    %310 = vector.broadcast %c15_i32_107 : i32 to vector<1x128xi32>
    %311 = arith.cmpi slt, %4, %310 : vector<1x128xi32>
    %c127_i32_108 = arith.constant 127 : i32
    %312 = tpu.dynamic_rotate %283 by %c127_i32_108 dim 1 : vector<32x128xf32>, i32 -> vector<32x128xf32>
    %cst_109 = arith.constant 0xFF800000 : f32
    %313 = vector.shape_cast %311 : vector<1x128xi1> to vector<1x128xi1>
    %314 = vector.broadcast %313 : vector<1x128xi1> to vector<32x128xi1>
    %315 = vector.broadcast %cst_109 : f32 to vector<32x128xf32>
    %316 = arith.select %314, %312, %315 : vector<32x128xi1>, vector<32x128xf32>
    %317 = arith.maximumf %283, %316 : vector<32x128xf32>
    %c14_i32_110 = arith.constant 14 : i32
    %318 = vector.broadcast %c14_i32_110 : i32 to vector<1x128xi32>
    %319 = arith.cmpi slt, %4, %318 : vector<1x128xi32>
    %c126_i32_111 = arith.constant 126 : i32
    %320 = tpu.dynamic_rotate %317 by %c126_i32_111 dim 1 : vector<32x128xf32>, i32 -> vector<32x128xf32>
    %cst_112 = arith.constant 0xFF800000 : f32
    %321 = vector.shape_cast %319 : vector<1x128xi1> to vector<1x128xi1>
    %322 = vector.broadcast %321 : vector<1x128xi1> to vector<32x128xi1>
    %323 = vector.broadcast %cst_112 : f32 to vector<32x128xf32>
    %324 = arith.select %322, %320, %323 : vector<32x128xi1>, vector<32x128xf32>
    %325 = arith.maximumf %317, %324 : vector<32x128xf32>
    %c12_i32_113 = arith.constant 12 : i32
    %326 = vector.broadcast %c12_i32_113 : i32 to vector<1x128xi32>
    %327 = arith.cmpi slt, %4, %326 : vector<1x128xi32>
    %c124_i32_114 = arith.constant 124 : i32
    %328 = tpu.dynamic_rotate %325 by %c124_i32_114 dim 1 : vector<32x128xf32>, i32 -> vector<32x128xf32>
    %cst_115 = arith.constant 0xFF800000 : f32
    %329 = vector.shape_cast %327 : vector<1x128xi1> to vector<1x128xi1>
    %330 = vector.broadcast %329 : vector<1x128xi1> to vector<32x128xi1>
    %331 = vector.broadcast %cst_115 : f32 to vector<32x128xf32>
    %332 = arith.select %330, %328, %331 : vector<32x128xi1>, vector<32x128xf32>
    %333 = arith.maximumf %325, %332 : vector<32x128xf32>
    %c8_i32_116 = arith.constant 8 : i32
    %334 = vector.broadcast %c8_i32_116 : i32 to vector<1x128xi32>
    %335 = arith.cmpi slt, %4, %334 : vector<1x128xi32>
    %c120_i32_117 = arith.constant 120 : i32
    %336 = tpu.dynamic_rotate %333 by %c120_i32_117 dim 1 : vector<32x128xf32>, i32 -> vector<32x128xf32>
    %cst_118 = arith.constant 0xFF800000 : f32
    %337 = vector.shape_cast %335 : vector<1x128xi1> to vector<1x128xi1>
    %338 = vector.broadcast %337 : vector<1x128xi1> to vector<32x128xi1>
    %339 = vector.broadcast %cst_118 : f32 to vector<32x128xf32>
    %340 = arith.select %338, %336, %339 : vector<32x128xi1>, vector<32x128xf32>
    %341 = arith.maximumf %333, %340 : vector<32x128xf32>
    %c15_i32_119 = arith.constant 15 : i32
    %342 = vector.broadcast %c15_i32_119 : i32 to vector<1x128xi32>
    %343 = arith.cmpi slt, %4, %342 : vector<1x128xi32>
    %c127_i32_120 = arith.constant 127 : i32
    %344 = tpu.dynamic_rotate %284 by %c127_i32_120 dim 1 : vector<32x128xf32>, i32 -> vector<32x128xf32>
    %cst_121 = arith.constant 0xFF800000 : f32
    %345 = vector.shape_cast %343 : vector<1x128xi1> to vector<1x128xi1>
    %346 = vector.broadcast %345 : vector<1x128xi1> to vector<32x128xi1>
    %347 = vector.broadcast %cst_121 : f32 to vector<32x128xf32>
    %348 = arith.select %346, %344, %347 : vector<32x128xi1>, vector<32x128xf32>
    %349 = arith.maximumf %284, %348 : vector<32x128xf32>
    %c14_i32_122 = arith.constant 14 : i32
    %350 = vector.broadcast %c14_i32_122 : i32 to vector<1x128xi32>
    %351 = arith.cmpi slt, %4, %350 : vector<1x128xi32>
    %c126_i32_123 = arith.constant 126 : i32
    %352 = tpu.dynamic_rotate %349 by %c126_i32_123 dim 1 : vector<32x128xf32>, i32 -> vector<32x128xf32>
    %cst_124 = arith.constant 0xFF800000 : f32
    %353 = vector.shape_cast %351 : vector<1x128xi1> to vector<1x128xi1>
    %354 = vector.broadcast %353 : vector<1x128xi1> to vector<32x128xi1>
    %355 = vector.broadcast %cst_124 : f32 to vector<32x128xf32>
    %356 = arith.select %354, %352, %355 : vector<32x128xi1>, vector<32x128xf32>
    %357 = arith.maximumf %349, %356 : vector<32x128xf32>
    %c12_i32_125 = arith.constant 12 : i32
    %358 = vector.broadcast %c12_i32_125 : i32 to vector<1x128xi32>
    %359 = arith.cmpi slt, %4, %358 : vector<1x128xi32>
    %c124_i32_126 = arith.constant 124 : i32
    %360 = tpu.dynamic_rotate %357 by %c124_i32_126 dim 1 : vector<32x128xf32>, i32 -> vector<32x128xf32>
    %cst_127 = arith.constant 0xFF800000 : f32
    %361 = vector.shape_cast %359 : vector<1x128xi1> to vector<1x128xi1>
    %362 = vector.broadcast %361 : vector<1x128xi1> to vector<32x128xi1>
    %363 = vector.broadcast %cst_127 : f32 to vector<32x128xf32>
    %364 = arith.select %362, %360, %363 : vector<32x128xi1>, vector<32x128xf32>
    %365 = arith.maximumf %357, %364 : vector<32x128xf32>
    %c8_i32_128 = arith.constant 8 : i32
    %366 = vector.broadcast %c8_i32_128 : i32 to vector<1x128xi32>
    %367 = arith.cmpi slt, %4, %366 : vector<1x128xi32>
    %c120_i32_129 = arith.constant 120 : i32
    %368 = tpu.dynamic_rotate %365 by %c120_i32_129 dim 1 : vector<32x128xf32>, i32 -> vector<32x128xf32>
    %cst_130 = arith.constant 0xFF800000 : f32
    %369 = vector.shape_cast %367 : vector<1x128xi1> to vector<1x128xi1>
    %370 = vector.broadcast %369 : vector<1x128xi1> to vector<32x128xi1>
    %371 = vector.broadcast %cst_130 : f32 to vector<32x128xf32>
    %372 = arith.select %370, %368, %371 : vector<32x128xi1>, vector<32x128xf32>
    %373 = arith.maximumf %365, %372 : vector<32x128xf32>
    %c15_i32_131 = arith.constant 15 : i32
    %374 = vector.broadcast %c15_i32_131 : i32 to vector<1x128xi32>
    %375 = arith.cmpi slt, %4, %374 : vector<1x128xi32>
    %c127_i32_132 = arith.constant 127 : i32
    %376 = tpu.dynamic_rotate %285 by %c127_i32_132 dim 1 : vector<32x128xf32>, i32 -> vector<32x128xf32>
    %cst_133 = arith.constant 0xFF800000 : f32
    %377 = vector.shape_cast %375 : vector<1x128xi1> to vector<1x128xi1>
    %378 = vector.broadcast %377 : vector<1x128xi1> to vector<32x128xi1>
    %379 = vector.broadcast %cst_133 : f32 to vector<32x128xf32>
    %380 = arith.select %378, %376, %379 : vector<32x128xi1>, vector<32x128xf32>
    %381 = arith.maximumf %285, %380 : vector<32x128xf32>
    %c14_i32_134 = arith.constant 14 : i32
    %382 = vector.broadcast %c14_i32_134 : i32 to vector<1x128xi32>
    %383 = arith.cmpi slt, %4, %382 : vector<1x128xi32>
    %c126_i32_135 = arith.constant 126 : i32
    %384 = tpu.dynamic_rotate %381 by %c126_i32_135 dim 1 : vector<32x128xf32>, i32 -> vector<32x128xf32>
    %cst_136 = arith.constant 0xFF800000 : f32
    %385 = vector.shape_cast %383 : vector<1x128xi1> to vector<1x128xi1>
    %386 = vector.broadcast %385 : vector<1x128xi1> to vector<32x128xi1>
    %387 = vector.broadcast %cst_136 : f32 to vector<32x128xf32>
    %388 = arith.select %386, %384, %387 : vector<32x128xi1>, vector<32x128xf32>
    %389 = arith.maximumf %381, %388 : vector<32x128xf32>
    %c12_i32_137 = arith.constant 12 : i32
    %390 = vector.broadcast %c12_i32_137 : i32 to vector<1x128xi32>
    %391 = arith.cmpi slt, %4, %390 : vector<1x128xi32>
    %c124_i32_138 = arith.constant 124 : i32
    %392 = tpu.dynamic_rotate %389 by %c124_i32_138 dim 1 : vector<32x128xf32>, i32 -> vector<32x128xf32>
    %cst_139 = arith.constant 0xFF800000 : f32
    %393 = vector.shape_cast %391 : vector<1x128xi1> to vector<1x128xi1>
    %394 = vector.broadcast %393 : vector<1x128xi1> to vector<32x128xi1>
    %395 = vector.broadcast %cst_139 : f32 to vector<32x128xf32>
    %396 = arith.select %394, %392, %395 : vector<32x128xi1>, vector<32x128xf32>
    %397 = arith.maximumf %389, %396 : vector<32x128xf32>
    %c8_i32_140 = arith.constant 8 : i32
    %398 = vector.broadcast %c8_i32_140 : i32 to vector<1x128xi32>
    %399 = arith.cmpi slt, %4, %398 : vector<1x128xi32>
    %c120_i32_141 = arith.constant 120 : i32
    %400 = tpu.dynamic_rotate %397 by %c120_i32_141 dim 1 : vector<32x128xf32>, i32 -> vector<32x128xf32>
    %cst_142 = arith.constant 0xFF800000 : f32
    %401 = vector.shape_cast %399 : vector<1x128xi1> to vector<1x128xi1>
    %402 = vector.broadcast %401 : vector<1x128xi1> to vector<32x128xi1>
    %403 = vector.broadcast %cst_142 : f32 to vector<32x128xf32>
    %404 = arith.select %402, %400, %403 : vector<32x128xi1>, vector<32x128xf32>
    %405 = arith.maximumf %397, %404 : vector<32x128xf32>
    %cst_143 = arith.constant 0.000000e+00 : f32
    %406 = vector.shape_cast %8 : vector<1x128xi1> to vector<1x128xi1>
    %407 = vector.broadcast %406 : vector<1x128xi1> to vector<32x128xi1>
    %408 = vector.broadcast %cst_143 : f32 to vector<32x128xf32>
    %409 = arith.select %407, %341, %408 : vector<32x128xi1>, vector<32x128xf32>
    %cst_144 = arith.constant 0.000000e+00 : f32
    %410 = vector.shape_cast %8 : vector<1x128xi1> to vector<1x128xi1>
    %411 = vector.broadcast %410 : vector<1x128xi1> to vector<32x128xi1>
    %412 = vector.broadcast %cst_144 : f32 to vector<32x128xf32>
    %413 = arith.select %411, %373, %412 : vector<32x128xi1>, vector<32x128xf32>
    "tpu.trace_start"() <{level = 10 : i32, message = "cn,bn->cb"}> : () -> ()
    %cst_145 = arith.constant dense<0.000000e+00> : vector<32x8xf32>
    %414 = tpu.matmul %409, %15, %cst_145 {dimension_numbers = #tpu.dot_dimension_numbers<[1], [1], [0], [0], [0, 0, 1, 0], [], []>} : vector<32x128xf32>, vector<8x128xf32>, vector<32x8xf32> -> vector<32x8xf32>
    "tpu.trace_stop"() : () -> ()
    "tpu.trace_start"() <{level = 10 : i32, message = "cb,bn->cn"}> : () -> ()
    %cst_146 = arith.constant dense<0.000000e+00> : vector<32x128xf32>
    %415 = tpu.matmul %414, %15, %cst_146 {dimension_numbers = #tpu.dot_dimension_numbers<[1], [0], [0], [1], [0, 0, 1, 1], [], []>} : vector<32x8xf32>, vector<8x128xf32>, vector<32x128xf32> -> vector<32x128xf32>
    "tpu.trace_stop"() : () -> ()
    %416 = arith.mulf %409, %413 : vector<32x128xf32>
    %417 = arith.mulf %415, %297 : vector<32x128xf32>
    %418 = tpu.concatenate %416, %417 in 1 : vector<32x128xf32>, vector<32x128xf32> -> vector<32x256xf32>
    %cst_147 = arith.constant dense<0.000000e+00> : vector<8x256xf32>
    %419 = tpu.matmul %18, %418, %cst_147 {dimension_numbers = #tpu.dot_dimension_numbers<[1], [0], [0], [1], [0, 0, 1, 1], [], []>} : vector<8x32xf32>, vector<32x256xf32>, vector<8x256xf32> -> vector<8x256xf32>
    %420 = vector.broadcast %1 : f32 to vector<8x256xf32>
    %421 = arith.mulf %419, %420 : vector<8x256xf32>
    %cst_148 = arith.constant 0.000000e+00 : f32
    %422 = vector.broadcast %cst_148 : f32 to vector<1x128xf32>
    %423 = arith.cmpf one, %267, %422 : vector<1x128xf32>
    %424 = arith.andi %8, %423 : vector<1x128xi1>
    %425 = vector.extract_strided_slice %421 {offsets = [0, 0], sizes = [8, 128], strides = [1, 1]} : vector<8x256xf32> to vector<8x128xf32>
    %cst_149 = arith.constant 0xFF800000 : f32
    %426 = vector.shape_cast %424 : vector<1x128xi1> to vector<1x128xi1>
    %427 = vector.broadcast %426 : vector<1x128xi1> to vector<8x128xi1>
    %428 = vector.broadcast %cst_149 : f32 to vector<8x128xf32>
    %429 = arith.select %427, %425, %428 : vector<8x128xi1>, vector<8x128xf32>
    %cst_150 = arith.constant 0.000000e+00 : f32
    %430 = vector.broadcast %cst_150 : f32 to vector<1x128xf32>
    %431 = arith.cmpf one, %268, %430 : vector<1x128xf32>
    %432 = vector.extract_strided_slice %421 {offsets = [0, 128], sizes = [8, 128], strides = [1, 1]} : vector<8x256xf32> to vector<8x128xf32>
    %cst_151 = arith.constant 0xFF800000 : f32
    %433 = vector.shape_cast %431 : vector<1x128xi1> to vector<1x128xi1>
    %434 = vector.broadcast %433 : vector<1x128xi1> to vector<8x128xi1>
    %435 = vector.broadcast %cst_151 : f32 to vector<8x128xf32>
    %436 = arith.select %434, %432, %435 : vector<8x128xi1>, vector<8x128xf32>
    %437 = arith.maximumf %429, %436 : vector<8x128xf32>
    %c1_i32_152 = arith.constant 1 : i32
    %438 = vector.broadcast %c1_i32_152 : i32 to vector<1x128xi32>
    %439 = arith.cmpi sge, %4, %438 : vector<1x128xi32>
    %c1_i32_153 = arith.constant 1 : i32
    %440 = tpu.dynamic_rotate %437 by %c1_i32_153 dim 1 : vector<8x128xf32>, i32 -> vector<8x128xf32>
    %c113_i32_154 = arith.constant 113 : i32
    %441 = tpu.dynamic_rotate %437 by %c113_i32_154 dim 1 : vector<8x128xf32>, i32 -> vector<8x128xf32>
    %442 = vector.shape_cast %439 : vector<1x128xi1> to vector<1x128xi1>
    %443 = vector.broadcast %442 : vector<1x128xi1> to vector<8x128xi1>
    %444 = arith.select %443, %440, %441 : vector<8x128xi1>, vector<8x128xf32>
    %445 = arith.maximumf %437, %444 : vector<8x128xf32>
    %c2_i32_155 = arith.constant 2 : i32
    %446 = vector.broadcast %c2_i32_155 : i32 to vector<1x128xi32>
    %447 = arith.cmpi sge, %4, %446 : vector<1x128xi32>
    %c2_i32_156 = arith.constant 2 : i32
    %448 = tpu.dynamic_rotate %445 by %c2_i32_156 dim 1 : vector<8x128xf32>, i32 -> vector<8x128xf32>
    %c114_i32_157 = arith.constant 114 : i32
    %449 = tpu.dynamic_rotate %445 by %c114_i32_157 dim 1 : vector<8x128xf32>, i32 -> vector<8x128xf32>
    %450 = vector.shape_cast %447 : vector<1x128xi1> to vector<1x128xi1>
    %451 = vector.broadcast %450 : vector<1x128xi1> to vector<8x128xi1>
    %452 = arith.select %451, %448, %449 : vector<8x128xi1>, vector<8x128xf32>
    %453 = arith.maximumf %445, %452 : vector<8x128xf32>
    %c4_i32_158 = arith.constant 4 : i32
    %454 = vector.broadcast %c4_i32_158 : i32 to vector<1x128xi32>
    %455 = arith.cmpi sge, %4, %454 : vector<1x128xi32>
    %c4_i32_159 = arith.constant 4 : i32
    %456 = tpu.dynamic_rotate %453 by %c4_i32_159 dim 1 : vector<8x128xf32>, i32 -> vector<8x128xf32>
    %c116_i32_160 = arith.constant 116 : i32
    %457 = tpu.dynamic_rotate %453 by %c116_i32_160 dim 1 : vector<8x128xf32>, i32 -> vector<8x128xf32>
    %458 = vector.shape_cast %455 : vector<1x128xi1> to vector<1x128xi1>
    %459 = vector.broadcast %458 : vector<1x128xi1> to vector<8x128xi1>
    %460 = arith.select %459, %456, %457 : vector<8x128xi1>, vector<8x128xf32>
    %461 = arith.maximumf %453, %460 : vector<8x128xf32>
    %c8_i32_161 = arith.constant 8 : i32
    %462 = vector.broadcast %c8_i32_161 : i32 to vector<1x128xi32>
    %463 = arith.cmpi sge, %4, %462 : vector<1x128xi32>
    %c8_i32_162 = arith.constant 8 : i32
    %464 = tpu.dynamic_rotate %461 by %c8_i32_162 dim 1 : vector<8x128xf32>, i32 -> vector<8x128xf32>
    %c120_i32_163 = arith.constant 120 : i32
    %465 = tpu.dynamic_rotate %461 by %c120_i32_163 dim 1 : vector<8x128xf32>, i32 -> vector<8x128xf32>
    %466 = vector.shape_cast %463 : vector<1x128xi1> to vector<1x128xi1>
    %467 = vector.broadcast %466 : vector<1x128xi1> to vector<8x128xi1>
    %468 = arith.select %467, %464, %465 : vector<8x128xi1>, vector<8x128xf32>
    %469 = arith.maximumf %461, %468 : vector<8x128xf32>
    %cst_164 = arith.constant -1.000000e+30 : f32
    %470 = vector.broadcast %cst_164 : f32 to vector<8x128xf32>
    %471 = arith.maximumf %469, %470 : vector<8x128xf32>
    %472 = arith.subf %429, %471 : vector<8x128xf32>
    %473 = math.exp %472 : vector<8x128xf32>
    %474 = arith.subf %436, %471 : vector<8x128xf32>
    %475 = math.exp %474 : vector<8x128xf32>
    %476 = arith.addf %475, %473 : vector<8x128xf32>
    "tpu.trace_start"() <{level = 10 : i32, message = "hn,bn->hb"}> : () -> ()
    %cst_165 = arith.constant dense<0.000000e+00> : vector<8x8xf32>
    %477 = tpu.matmul %476, %15, %cst_165 {dimension_numbers = #tpu.dot_dimension_numbers<[1], [1], [0], [0], [0, 0, 1, 0], [], []>} : vector<8x128xf32>, vector<8x128xf32>, vector<8x8xf32> -> vector<8x8xf32>
    "tpu.trace_stop"() : () -> ()
    "tpu.trace_start"() <{level = 10 : i32, message = "hb,bn->hn"}> : () -> ()
    %cst_166 = arith.constant dense<0.000000e+00> : vector<8x128xf32>
    %478 = tpu.matmul %477, %15, %cst_166 {dimension_numbers = #tpu.dot_dimension_numbers<[1], [0], [0], [1], [0, 0, 1, 1], [], []>} : vector<8x8xf32>, vector<8x128xf32>, vector<8x128xf32> -> vector<8x128xf32>
    %cst_167 = arith.constant 0.000000e+00 : f32
    "tpu.trace_stop"() : () -> ()
    %479 = vector.broadcast %cst_167 : f32 to vector<8x128xf32>
    %480 = arith.cmpf ogt, %478, %479 : vector<8x128xf32>
    %cst_168 = arith.constant 1.000000e+00 : f32
    %481 = vector.broadcast %cst_168 : f32 to vector<8x128xf32>
    %482 = arith.select %480, %478, %481 : vector<8x128xi1>, vector<8x128xf32>
    %483 = tpu.reciprocal %482 : vector<8x128xf32> -> vector<8x128xf32>
    %484 = arith.mulf %475, %483 : vector<8x128xf32>
    %cst_169 = arith.constant 0.000000e+00 : f32
    %485 = vector.broadcast %cst_169 : f32 to vector<8x128xf32>
    %486 = arith.select %480, %484, %485 : vector<8x128xi1>, vector<8x128xf32>
    %487 = vector.broadcast %267 : vector<1x128xf32> to vector<8x128xf32>
    %488 = arith.mulf %486, %487 : vector<8x128xf32>
    %489 = arith.mulf %473, %483 : vector<8x128xf32>
    %cst_170 = arith.constant 0.000000e+00 : f32
    %490 = vector.broadcast %cst_170 : f32 to vector<8x128xf32>
    %491 = arith.select %480, %489, %490 : vector<8x128xi1>, vector<8x128xf32>
    %492 = vector.broadcast %267 : vector<1x128xf32> to vector<8x128xf32>
    %493 = arith.mulf %491, %492 : vector<8x128xf32>
    %494 = tpu.concatenate %488, %493 in 1 : vector<8x128xf32>, vector<8x128xf32> -> vector<8x256xf32>
    %cst_171 = arith.constant dense<0.000000e+00> : vector<32x256xf32>
    %495 = tpu.matmul %19, %494, %cst_171 {dimension_numbers = #tpu.dot_dimension_numbers<[1], [0], [0], [1], [0, 0, 1, 1], [], []>} : vector<32x8xf32>, vector<8x256xf32>, vector<32x256xf32> -> vector<32x256xf32>
    %496 = vector.extract_strided_slice %495 {offsets = [0, 0], sizes = [32, 128], strides = [1, 1]} : vector<32x256xf32> to vector<32x128xf32>
    %497 = vector.extract_strided_slice %495 {offsets = [0, 128], sizes = [32, 128], strides = [1, 1]} : vector<32x256xf32> to vector<32x128xf32>
    %498 = arith.mulf %496, %309 : vector<32x128xf32>
    %499 = arith.mulf %497, %405 : vector<32x128xf32>
    %cst_172 = arith.constant 0.000000e+00 : f32
    %500 = vector.shape_cast %8 : vector<1x128xi1> to vector<1x128xi1>
    %501 = vector.broadcast %500 : vector<1x128xi1> to vector<32x128xi1>
    %502 = vector.broadcast %cst_172 : f32 to vector<32x128xf32>
    %503 = arith.select %501, %499, %502 : vector<32x128xi1>, vector<32x128xf32>
    %504 = arith.addf %498, %503 : vector<32x128xf32>
    "tpu.trace_start"() <{level = 10 : i32, message = "bn,cn->bc"}> : () -> ()
    %cst_173 = arith.constant dense<0.000000e+00> : vector<8x32xf32>
    %505 = tpu.matmul %15, %504, %cst_173 {dimension_numbers = #tpu.dot_dimension_numbers<[1], [1], [0], [0], [0, 0, 1, 0], [], []>} : vector<8x128xf32>, vector<32x128xf32>, vector<8x32xf32> -> vector<8x32xf32>
    "tpu.trace_stop"() : () -> ()
    "tpu.trace_start"() <{level = 10 : i32, message = "bc,dc->bd"}> : () -> ()
    %cst_174 = arith.constant dense<0.000000e+00> : vector<8x32xf32>
    %506 = tpu.matmul %505, %20, %cst_174 {dimension_numbers = #tpu.dot_dimension_numbers<[1], [1], [0], [0], [0, 0, 1, 0], [], []>} : vector<8x32xf32>, vector<32x32xf32>, vector<8x32xf32> -> vector<8x32xf32>
    "tpu.trace_stop"() : () -> ()
    %507 = vector.broadcast %21 : vector<1x32xf32> to vector<8x32xf32>
    %508 = arith.addf %506, %507 : vector<8x32xf32>
    %c8 = arith.constant 8 : index
    %c0_175 = arith.constant 0 : index
    %509 = vector.load %arg9[%c8, %c0_175] : memref<32x32xf32, #tpu.memory_space<vmem>>, vector<8x32xf32>
    tpu.vector_store %arg9[%c8, %c0_175], %508 {strides = array<i32>} : memref<32x32xf32, #tpu.memory_space<vmem>>, vector<8x32xf32>,
    %c0_176 = arith.constant 0 : index
    %c256 = arith.constant 256 : index
    %510 = vector.load %arg1[%c0_176, %c256] : memref<32x512xf32, #tpu.memory_space<vmem>>, vector<32x128xf32>
    %c0_177 = arith.constant 0 : index
    %c256_178 = arith.constant 256 : index
    %511 = vector.load %arg2[%c0_177, %c256_178] : memref<2x512xf32, #tpu.memory_space<vmem>>, vector<1x128xf32>
    %c1_179 = arith.constant 1 : index
    %c256_180 = arith.constant 256 : index
    %512 = vector.load %arg2[%c1_179, %c256_180] : memref<2x512xf32, #tpu.memory_space<vmem>>, vector<1x128xf32>
    %c1_i32_181 = arith.constant 1 : i32
    %513 = tpu.dynamic_rotate %510 by %c1_i32_181 dim 1 : vector<32x128xf32>, i32 -> vector<32x128xf32>
    %cst_182 = arith.constant 0.000000e+00 : f32
    %514 = vector.shape_cast %8 : vector<1x128xi1> to vector<1x128xi1>
    %515 = vector.broadcast %514 : vector<1x128xi1> to vector<32x128xi1>
    %516 = vector.broadcast %cst_182 : f32 to vector<32x128xf32>
    %517 = arith.select %515, %516, %513 : vector<32x128xi1>, vector<32x128xf32>
    %c127_i32_183 = arith.constant 127 : i32
    %518 = tpu.dynamic_rotate %510 by %c127_i32_183 dim 1 : vector<32x128xf32>, i32 -> vector<32x128xf32>
    %cst_184 = arith.constant 0.000000e+00 : f32
    %519 = vector.shape_cast %10 : vector<1x128xi1> to vector<1x128xi1>
    %520 = vector.broadcast %519 : vector<1x128xi1> to vector<32x128xi1>
    %521 = vector.broadcast %cst_184 : f32 to vector<32x128xf32>
    %522 = arith.select %520, %521, %518 : vector<32x128xi1>, vector<32x128xf32>
    %523 = tpu.concatenate %517, %510, %522 in 0 : vector<32x128xf32>, vector<32x128xf32>, vector<32x128xf32> -> vector<96x128xf32>
    %cst_185 = arith.constant dense<0.000000e+00> : vector<96x128xf32>
    %524 = tpu.matmul %16, %523, %cst_185 {dimension_numbers = #tpu.dot_dimension_numbers<[1], [0], [0], [1], [0, 0, 1, 1], [], []>} : vector<96x96xf32>, vector<96x128xf32>, vector<96x128xf32> -> vector<96x128xf32>
    %525 = vector.broadcast %17 : vector<96x1xf32> to vector<96x128xf32>
    %526 = arith.addf %524, %525 : vector<96x128xf32>
    %527 = vector.extract_strided_slice %526 {offsets = [0, 0], sizes = [32, 128], strides = [1, 1]} : vector<96x128xf32> to vector<32x128xf32>
    %528 = vector.extract_strided_slice %526 {offsets = [32, 0], sizes = [32, 128], strides = [1, 1]} : vector<96x128xf32> to vector<32x128xf32>
    %529 = vector.extract_strided_slice %526 {offsets = [64, 0], sizes = [32, 128], strides = [1, 1]} : vector<96x128xf32> to vector<32x128xf32>
    %c1_i32_186 = arith.constant 1 : i32
    %530 = tpu.dynamic_rotate %528 by %c1_i32_186 dim 1 : vector<32x128xf32>, i32 -> vector<32x128xf32>
    %cst_187 = arith.constant 0xFF800000 : f32
    %531 = vector.shape_cast %8 : vector<1x128xi1> to vector<1x128xi1>
    %532 = vector.broadcast %531 : vector<1x128xi1> to vector<32x128xi1>
    %533 = vector.broadcast %cst_187 : f32 to vector<32x128xf32>
    %534 = arith.select %532, %533, %530 : vector<32x128xi1>, vector<32x128xf32>
    %c127_i32_188 = arith.constant 127 : i32
    %535 = tpu.dynamic_rotate %528 by %c127_i32_188 dim 1 : vector<32x128xf32>, i32 -> vector<32x128xf32>
    %cst_189 = arith.constant 0xFF800000 : f32
    %536 = vector.shape_cast %10 : vector<1x128xi1> to vector<1x128xi1>
    %537 = vector.broadcast %536 : vector<1x128xi1> to vector<32x128xi1>
    %538 = vector.broadcast %cst_189 : f32 to vector<32x128xf32>
    %539 = arith.select %537, %538, %535 : vector<32x128xi1>, vector<32x128xf32>
    %540 = arith.maximumf %534, %539 : vector<32x128xf32>
    %541 = arith.maximumf %528, %540 : vector<32x128xf32>
    %c1_i32_190 = arith.constant 1 : i32
    %542 = tpu.dynamic_rotate %529 by %c1_i32_190 dim 1 : vector<32x128xf32>, i32 -> vector<32x128xf32>
    %cst_191 = arith.constant 0xFF800000 : f32
    %543 = vector.shape_cast %8 : vector<1x128xi1> to vector<1x128xi1>
    %544 = vector.broadcast %543 : vector<1x128xi1> to vector<32x128xi1>
    %545 = vector.broadcast %cst_191 : f32 to vector<32x128xf32>
    %546 = arith.select %544, %545, %542 : vector<32x128xi1>, vector<32x128xf32>
    %c127_i32_192 = arith.constant 127 : i32
    %547 = tpu.dynamic_rotate %529 by %c127_i32_192 dim 1 : vector<32x128xf32>, i32 -> vector<32x128xf32>
    %cst_193 = arith.constant 0xFF800000 : f32
    %548 = vector.shape_cast %10 : vector<1x128xi1> to vector<1x128xi1>
    %549 = vector.broadcast %548 : vector<1x128xi1> to vector<32x128xi1>
    %550 = vector.broadcast %cst_193 : f32 to vector<32x128xf32>
    %551 = arith.select %549, %550, %547 : vector<32x128xi1>, vector<32x128xf32>
    %552 = arith.maximumf %546, %551 : vector<32x128xf32>
    %553 = arith.maximumf %529, %552 : vector<32x128xf32>
    %c15_i32_194 = arith.constant 15 : i32
    %554 = vector.broadcast %c15_i32_194 : i32 to vector<1x128xi32>
    %555 = arith.cmpi slt, %4, %554 : vector<1x128xi32>
    %c127_i32_195 = arith.constant 127 : i32
    %556 = tpu.dynamic_rotate %527 by %c127_i32_195 dim 1 : vector<32x128xf32>, i32 -> vector<32x128xf32>
    %cst_196 = arith.constant 0xFF800000 : f32
    %557 = vector.shape_cast %555 : vector<1x128xi1> to vector<1x128xi1>
    %558 = vector.broadcast %557 : vector<1x128xi1> to vector<32x128xi1>
    %559 = vector.broadcast %cst_196 : f32 to vector<32x128xf32>
    %560 = arith.select %558, %556, %559 : vector<32x128xi1>, vector<32x128xf32>
    %561 = arith.maximumf %527, %560 : vector<32x128xf32>
    %c14_i32_197 = arith.constant 14 : i32
    %562 = vector.broadcast %c14_i32_197 : i32 to vector<1x128xi32>
    %563 = arith.cmpi slt, %4, %562 : vector<1x128xi32>
    %c126_i32_198 = arith.constant 126 : i32
    %564 = tpu.dynamic_rotate %561 by %c126_i32_198 dim 1 : vector<32x128xf32>, i32 -> vector<32x128xf32>
    %cst_199 = arith.constant 0xFF800000 : f32
    %565 = vector.shape_cast %563 : vector<1x128xi1> to vector<1x128xi1>
    %566 = vector.broadcast %565 : vector<1x128xi1> to vector<32x128xi1>
    %567 = vector.broadcast %cst_199 : f32 to vector<32x128xf32>
    %568 = arith.select %566, %564, %567 : vector<32x128xi1>, vector<32x128xf32>
    %569 = arith.maximumf %561, %568 : vector<32x128xf32>
    %c12_i32_200 = arith.constant 12 : i32
    %570 = vector.broadcast %c12_i32_200 : i32 to vector<1x128xi32>
    %571 = arith.cmpi slt, %4, %570 : vector<1x128xi32>
    %c124_i32_201 = arith.constant 124 : i32
    %572 = tpu.dynamic_rotate %569 by %c124_i32_201 dim 1 : vector<32x128xf32>, i32 -> vector<32x128xf32>
    %cst_202 = arith.constant 0xFF800000 : f32
    %573 = vector.shape_cast %571 : vector<1x128xi1> to vector<1x128xi1>
    %574 = vector.broadcast %573 : vector<1x128xi1> to vector<32x128xi1>
    %575 = vector.broadcast %cst_202 : f32 to vector<32x128xf32>
    %576 = arith.select %574, %572, %575 : vector<32x128xi1>, vector<32x128xf32>
    %577 = arith.maximumf %569, %576 : vector<32x128xf32>
    %c8_i32_203 = arith.constant 8 : i32
    %578 = vector.broadcast %c8_i32_203 : i32 to vector<1x128xi32>
    %579 = arith.cmpi slt, %4, %578 : vector<1x128xi32>
    %c120_i32_204 = arith.constant 120 : i32
    %580 = tpu.dynamic_rotate %577 by %c120_i32_204 dim 1 : vector<32x128xf32>, i32 -> vector<32x128xf32>
    %cst_205 = arith.constant 0xFF800000 : f32
    %581 = vector.shape_cast %579 : vector<1x128xi1> to vector<1x128xi1>
    %582 = vector.broadcast %581 : vector<1x128xi1> to vector<32x128xi1>
    %583 = vector.broadcast %cst_205 : f32 to vector<32x128xf32>
    %584 = arith.select %582, %580, %583 : vector<32x128xi1>, vector<32x128xf32>
    %585 = arith.maximumf %577, %584 : vector<32x128xf32>
    %c15_i32_206 = arith.constant 15 : i32
    %586 = vector.broadcast %c15_i32_206 : i32 to vector<1x128xi32>
    %587 = arith.cmpi slt, %4, %586 : vector<1x128xi32>
    %c127_i32_207 = arith.constant 127 : i32
    %588 = tpu.dynamic_rotate %528 by %c127_i32_207 dim 1 : vector<32x128xf32>, i32 -> vector<32x128xf32>
    %cst_208 = arith.constant 0xFF800000 : f32
    %589 = vector.shape_cast %587 : vector<1x128xi1> to vector<1x128xi1>
    %590 = vector.broadcast %589 : vector<1x128xi1> to vector<32x128xi1>
    %591 = vector.broadcast %cst_208 : f32 to vector<32x128xf32>
    %592 = arith.select %590, %588, %591 : vector<32x128xi1>, vector<32x128xf32>
    %593 = arith.maximumf %528, %592 : vector<32x128xf32>
    %c14_i32_209 = arith.constant 14 : i32
    %594 = vector.broadcast %c14_i32_209 : i32 to vector<1x128xi32>
    %595 = arith.cmpi slt, %4, %594 : vector<1x128xi32>
    %c126_i32_210 = arith.constant 126 : i32
    %596 = tpu.dynamic_rotate %593 by %c126_i32_210 dim 1 : vector<32x128xf32>, i32 -> vector<32x128xf32>
    %cst_211 = arith.constant 0xFF800000 : f32
    %597 = vector.shape_cast %595 : vector<1x128xi1> to vector<1x128xi1>
    %598 = vector.broadcast %597 : vector<1x128xi1> to vector<32x128xi1>
    %599 = vector.broadcast %cst_211 : f32 to vector<32x128xf32>
    %600 = arith.select %598, %596, %599 : vector<32x128xi1>, vector<32x128xf32>
    %601 = arith.maximumf %593, %600 : vector<32x128xf32>
    %c12_i32_212 = arith.constant 12 : i32
    %602 = vector.broadcast %c12_i32_212 : i32 to vector<1x128xi32>
    %603 = arith.cmpi slt, %4, %602 : vector<1x128xi32>
    %c124_i32_213 = arith.constant 124 : i32
    %604 = tpu.dynamic_rotate %601 by %c124_i32_213 dim 1 : vector<32x128xf32>, i32 -> vector<32x128xf32>
    %cst_214 = arith.constant 0xFF800000 : f32
    %605 = vector.shape_cast %603 : vector<1x128xi1> to vector<1x128xi1>
    %606 = vector.broadcast %605 : vector<1x128xi1> to vector<32x128xi1>
    %607 = vector.broadcast %cst_214 : f32 to vector<32x128xf32>
    %608 = arith.select %606, %604, %607 : vector<32x128xi1>, vector<32x128xf32>
    %609 = arith.maximumf %601, %608 : vector<32x128xf32>
    %c8_i32_215 = arith.constant 8 : i32
    %610 = vector.broadcast %c8_i32_215 : i32 to vector<1x128xi32>
    %611 = arith.cmpi slt, %4, %610 : vector<1x128xi32>
    %c120_i32_216 = arith.constant 120 : i32
    %612 = tpu.dynamic_rotate %609 by %c120_i32_216 dim 1 : vector<32x128xf32>, i32 -> vector<32x128xf32>
    %cst_217 = arith.constant 0xFF800000 : f32
    %613 = vector.shape_cast %611 : vector<1x128xi1> to vector<1x128xi1>
    %614 = vector.broadcast %613 : vector<1x128xi1> to vector<32x128xi1>
    %615 = vector.broadcast %cst_217 : f32 to vector<32x128xf32>
    %616 = arith.select %614, %612, %615 : vector<32x128xi1>, vector<32x128xf32>
    %617 = arith.maximumf %609, %616 : vector<32x128xf32>
    %c15_i32_218 = arith.constant 15 : i32
    %618 = vector.broadcast %c15_i32_218 : i32 to vector<1x128xi32>
    %619 = arith.cmpi slt, %4, %618 : vector<1x128xi32>
    %c127_i32_219 = arith.constant 127 : i32
    %620 = tpu.dynamic_rotate %529 by %c127_i32_219 dim 1 : vector<32x128xf32>, i32 -> vector<32x128xf32>
    %cst_220 = arith.constant 0xFF800000 : f32
    %621 = vector.shape_cast %619 : vector<1x128xi1> to vector<1x128xi1>
    %622 = vector.broadcast %621 : vector<1x128xi1> to vector<32x128xi1>
    %623 = vector.broadcast %cst_220 : f32 to vector<32x128xf32>
    %624 = arith.select %622, %620, %623 : vector<32x128xi1>, vector<32x128xf32>
    %625 = arith.maximumf %529, %624 : vector<32x128xf32>
    %c14_i32_221 = arith.constant 14 : i32
    %626 = vector.broadcast %c14_i32_221 : i32 to vector<1x128xi32>
    %627 = arith.cmpi slt, %4, %626 : vector<1x128xi32>
    %c126_i32_222 = arith.constant 126 : i32
    %628 = tpu.dynamic_rotate %625 by %c126_i32_222 dim 1 : vector<32x128xf32>, i32 -> vector<32x128xf32>
    %cst_223 = arith.constant 0xFF800000 : f32
    %629 = vector.shape_cast %627 : vector<1x128xi1> to vector<1x128xi1>
    %630 = vector.broadcast %629 : vector<1x128xi1> to vector<32x128xi1>
    %631 = vector.broadcast %cst_223 : f32 to vector<32x128xf32>
    %632 = arith.select %630, %628, %631 : vector<32x128xi1>, vector<32x128xf32>
    %633 = arith.maximumf %625, %632 : vector<32x128xf32>
    %c12_i32_224 = arith.constant 12 : i32
    %634 = vector.broadcast %c12_i32_224 : i32 to vector<1x128xi32>
    %635 = arith.cmpi slt, %4, %634 : vector<1x128xi32>
    %c124_i32_225 = arith.constant 124 : i32
    %636 = tpu.dynamic_rotate %633 by %c124_i32_225 dim 1 : vector<32x128xf32>, i32 -> vector<32x128xf32>
    %cst_226 = arith.constant 0xFF800000 : f32
    %637 = vector.shape_cast %635 : vector<1x128xi1> to vector<1x128xi1>
    %638 = vector.broadcast %637 : vector<1x128xi1> to vector<32x128xi1>
    %639 = vector.broadcast %cst_226 : f32 to vector<32x128xf32>
    %640 = arith.select %638, %636, %639 : vector<32x128xi1>, vector<32x128xf32>
    %641 = arith.maximumf %633, %640 : vector<32x128xf32>
    %c8_i32_227 = arith.constant 8 : i32
    %642 = vector.broadcast %c8_i32_227 : i32 to vector<1x128xi32>
    %643 = arith.cmpi slt, %4, %642 : vector<1x128xi32>
    %c120_i32_228 = arith.constant 120 : i32
    %644 = tpu.dynamic_rotate %641 by %c120_i32_228 dim 1 : vector<32x128xf32>, i32 -> vector<32x128xf32>
    %cst_229 = arith.constant 0xFF800000 : f32
    %645 = vector.shape_cast %643 : vector<1x128xi1> to vector<1x128xi1>
    %646 = vector.broadcast %645 : vector<1x128xi1> to vector<32x128xi1>
    %647 = vector.broadcast %cst_229 : f32 to vector<32x128xf32>
    %648 = arith.select %646, %644, %647 : vector<32x128xi1>, vector<32x128xf32>
    %649 = arith.maximumf %641, %648 : vector<32x128xf32>
    %cst_230 = arith.constant 0.000000e+00 : f32
    %650 = vector.shape_cast %8 : vector<1x128xi1> to vector<1x128xi1>
    %651 = vector.broadcast %650 : vector<1x128xi1> to vector<32x128xi1>
    %652 = vector.broadcast %cst_230 : f32 to vector<32x128xf32>
    %653 = arith.select %651, %585, %652 : vector<32x128xi1>, vector<32x128xf32>
    %cst_231 = arith.constant 0.000000e+00 : f32
    %654 = vector.shape_cast %8 : vector<1x128xi1> to vector<1x128xi1>
    %655 = vector.broadcast %654 : vector<1x128xi1> to vector<32x128xi1>
    %656 = vector.broadcast %cst_231 : f32 to vector<32x128xf32>
    %657 = arith.select %655, %617, %656 : vector<32x128xi1>, vector<32x128xf32>
    "tpu.trace_start"() <{level = 10 : i32, message = "cn,bn->cb"}> : () -> ()
    %cst_232 = arith.constant dense<0.000000e+00> : vector<32x8xf32>
    %658 = tpu.matmul %653, %15, %cst_232 {dimension_numbers = #tpu.dot_dimension_numbers<[1], [1], [0], [0], [0, 0, 1, 0], [], []>} : vector<32x128xf32>, vector<8x128xf32>, vector<32x8xf32> -> vector<32x8xf32>
    "tpu.trace_stop"() : () -> ()
    "tpu.trace_start"() <{level = 10 : i32, message = "cb,bn->cn"}> : () -> ()
    %cst_233 = arith.constant dense<0.000000e+00> : vector<32x128xf32>
    %659 = tpu.matmul %658, %15, %cst_233 {dimension_numbers = #tpu.dot_dimension_numbers<[1], [0], [0], [1], [0, 0, 1, 1], [], []>} : vector<32x8xf32>, vector<8x128xf32>, vector<32x128xf32> -> vector<32x128xf32>
    "tpu.trace_stop"() : () -> ()
    %660 = arith.mulf %653, %657 : vector<32x128xf32>
    %661 = arith.mulf %659, %541 : vector<32x128xf32>
    %662 = tpu.concatenate %660, %661 in 1 : vector<32x128xf32>, vector<32x128xf32> -> vector<32x256xf32>
    %cst_234 = arith.constant dense<0.000000e+00> : vector<8x256xf32>
    %663 = tpu.matmul %18, %662, %cst_234 {dimension_numbers = #tpu.dot_dimension_numbers<[1], [0], [0], [1], [0, 0, 1, 1], [], []>} : vector<8x32xf32>, vector<32x256xf32>, vector<8x256xf32> -> vector<8x256xf32>
    %664 = vector.broadcast %1 : f32 to vector<8x256xf32>
    %665 = arith.mulf %663, %664 : vector<8x256xf32>
    %cst_235 = arith.constant 0.000000e+00 : f32
    %666 = vector.broadcast %cst_235 : f32 to vector<1x128xf32>
    %667 = arith.cmpf one, %511, %666 : vector<1x128xf32>
    %668 = arith.andi %8, %667 : vector<1x128xi1>
    %669 = vector.extract_strided_slice %665 {offsets = [0, 0], sizes = [8, 128], strides = [1, 1]} : vector<8x256xf32> to vector<8x128xf32>
    %cst_236 = arith.constant 0xFF800000 : f32
    %670 = vector.shape_cast %668 : vector<1x128xi1> to vector<1x128xi1>
    %671 = vector.broadcast %670 : vector<1x128xi1> to vector<8x128xi1>
    %672 = vector.broadcast %cst_236 : f32 to vector<8x128xf32>
    %673 = arith.select %671, %669, %672 : vector<8x128xi1>, vector<8x128xf32>
    %cst_237 = arith.constant 0.000000e+00 : f32
    %674 = vector.broadcast %cst_237 : f32 to vector<1x128xf32>
    %675 = arith.cmpf one, %512, %674 : vector<1x128xf32>
    %676 = vector.extract_strided_slice %665 {offsets = [0, 128], sizes = [8, 128], strides = [1, 1]} : vector<8x256xf32> to vector<8x128xf32>
    %cst_238 = arith.constant 0xFF800000 : f32
    %677 = vector.shape_cast %675 : vector<1x128xi1> to vector<1x128xi1>
    %678 = vector.broadcast %677 : vector<1x128xi1> to vector<8x128xi1>
    %679 = vector.broadcast %cst_238 : f32 to vector<8x128xf32>
    %680 = arith.select %678, %676, %679 : vector<8x128xi1>, vector<8x128xf32>
    %681 = arith.maximumf %673, %680 : vector<8x128xf32>
    %c1_i32_239 = arith.constant 1 : i32
    %682 = vector.broadcast %c1_i32_239 : i32 to vector<1x128xi32>
    %683 = arith.cmpi sge, %4, %682 : vector<1x128xi32>
    %c1_i32_240 = arith.constant 1 : i32
    %684 = tpu.dynamic_rotate %681 by %c1_i32_240 dim 1 : vector<8x128xf32>, i32 -> vector<8x128xf32>
    %c113_i32_241 = arith.constant 113 : i32
    %685 = tpu.dynamic_rotate %681 by %c113_i32_241 dim 1 : vector<8x128xf32>, i32 -> vector<8x128xf32>
    %686 = vector.shape_cast %683 : vector<1x128xi1> to vector<1x128xi1>
    %687 = vector.broadcast %686 : vector<1x128xi1> to vector<8x128xi1>
    %688 = arith.select %687, %684, %685 : vector<8x128xi1>, vector<8x128xf32>
    %689 = arith.maximumf %681, %688 : vector<8x128xf32>
    %c2_i32_242 = arith.constant 2 : i32
    %690 = vector.broadcast %c2_i32_242 : i32 to vector<1x128xi32>
    %691 = arith.cmpi sge, %4, %690 : vector<1x128xi32>
    %c2_i32_243 = arith.constant 2 : i32
    %692 = tpu.dynamic_rotate %689 by %c2_i32_243 dim 1 : vector<8x128xf32>, i32 -> vector<8x128xf32>
    %c114_i32_244 = arith.constant 114 : i32
    %693 = tpu.dynamic_rotate %689 by %c114_i32_244 dim 1 : vector<8x128xf32>, i32 -> vector<8x128xf32>
    %694 = vector.shape_cast %691 : vector<1x128xi1> to vector<1x128xi1>
    %695 = vector.broadcast %694 : vector<1x128xi1> to vector<8x128xi1>
    %696 = arith.select %695, %692, %693 : vector<8x128xi1>, vector<8x128xf32>
    %697 = arith.maximumf %689, %696 : vector<8x128xf32>
    %c4_i32_245 = arith.constant 4 : i32
    %698 = vector.broadcast %c4_i32_245 : i32 to vector<1x128xi32>
    %699 = arith.cmpi sge, %4, %698 : vector<1x128xi32>
    %c4_i32_246 = arith.constant 4 : i32
    %700 = tpu.dynamic_rotate %697 by %c4_i32_246 dim 1 : vector<8x128xf32>, i32 -> vector<8x128xf32>
    %c116_i32_247 = arith.constant 116 : i32
    %701 = tpu.dynamic_rotate %697 by %c116_i32_247 dim 1 : vector<8x128xf32>, i32 -> vector<8x128xf32>
    %702 = vector.shape_cast %699 : vector<1x128xi1> to vector<1x128xi1>
    %703 = vector.broadcast %702 : vector<1x128xi1> to vector<8x128xi1>
    %704 = arith.select %703, %700, %701 : vector<8x128xi1>, vector<8x128xf32>
    %705 = arith.maximumf %697, %704 : vector<8x128xf32>
    %c8_i32_248 = arith.constant 8 : i32
    %706 = vector.broadcast %c8_i32_248 : i32 to vector<1x128xi32>
    %707 = arith.cmpi sge, %4, %706 : vector<1x128xi32>
    %c8_i32_249 = arith.constant 8 : i32
    %708 = tpu.dynamic_rotate %705 by %c8_i32_249 dim 1 : vector<8x128xf32>, i32 -> vector<8x128xf32>
    %c120_i32_250 = arith.constant 120 : i32
    %709 = tpu.dynamic_rotate %705 by %c120_i32_250 dim 1 : vector<8x128xf32>, i32 -> vector<8x128xf32>
    %710 = vector.shape_cast %707 : vector<1x128xi1> to vector<1x128xi1>
    %711 = vector.broadcast %710 : vector<1x128xi1> to vector<8x128xi1>
    %712 = arith.select %711, %708, %709 : vector<8x128xi1>, vector<8x128xf32>
    %713 = arith.maximumf %705, %712 : vector<8x128xf32>
    %cst_251 = arith.constant -1.000000e+30 : f32
    %714 = vector.broadcast %cst_251 : f32 to vector<8x128xf32>
    %715 = arith.maximumf %713, %714 : vector<8x128xf32>
    %716 = arith.subf %673, %715 : vector<8x128xf32>
    %717 = math.exp %716 : vector<8x128xf32>
    %718 = arith.subf %680, %715 : vector<8x128xf32>
    %719 = math.exp %718 : vector<8x128xf32>
    %720 = arith.addf %719, %717 : vector<8x128xf32>
    "tpu.trace_start"() <{level = 10 : i32, message = "hn,bn->hb"}> : () -> ()
    %cst_252 = arith.constant dense<0.000000e+00> : vector<8x8xf32>
    %721 = tpu.matmul %720, %15, %cst_252 {dimension_numbers = #tpu.dot_dimension_numbers<[1], [1], [0], [0], [0, 0, 1, 0], [], []>} : vector<8x128xf32>, vector<8x128xf32>, vector<8x8xf32> -> vector<8x8xf32>
    "tpu.trace_stop"() : () -> ()
    "tpu.trace_start"() <{level = 10 : i32, message = "hb,bn->hn"}> : () -> ()
    %cst_253 = arith.constant dense<0.000000e+00> : vector<8x128xf32>
    %722 = tpu.matmul %721, %15, %cst_253 {dimension_numbers = #tpu.dot_dimension_numbers<[1], [0], [0], [1], [0, 0, 1, 1], [], []>} : vector<8x8xf32>, vector<8x128xf32>, vector<8x128xf32> -> vector<8x128xf32>
    %cst_254 = arith.constant 0.000000e+00 : f32
    "tpu.trace_stop"() : () -> ()
    %723 = vector.broadcast %cst_254 : f32 to vector<8x128xf32>
    %724 = arith.cmpf ogt, %722, %723 : vector<8x128xf32>
    %cst_255 = arith.constant 1.000000e+00 : f32
    %725 = vector.broadcast %cst_255 : f32 to vector<8x128xf32>
    %726 = arith.select %724, %722, %725 : vector<8x128xi1>, vector<8x128xf32>
    %727 = tpu.reciprocal %726 : vector<8x128xf32> -> vector<8x128xf32>
    %728 = arith.mulf %719, %727 : vector<8x128xf32>
    %cst_256 = arith.constant 0.000000e+00 : f32
    %729 = vector.broadcast %cst_256 : f32 to vector<8x128xf32>
    %730 = arith.select %724, %728, %729 : vector<8x128xi1>, vector<8x128xf32>
    %731 = vector.broadcast %511 : vector<1x128xf32> to vector<8x128xf32>
    %732 = arith.mulf %730, %731 : vector<8x128xf32>
    %733 = arith.mulf %717, %727 : vector<8x128xf32>
    %cst_257 = arith.constant 0.000000e+00 : f32
    %734 = vector.broadcast %cst_257 : f32 to vector<8x128xf32>
    %735 = arith.select %724, %733, %734 : vector<8x128xi1>, vector<8x128xf32>
    %736 = vector.broadcast %511 : vector<1x128xf32> to vector<8x128xf32>
    %737 = arith.mulf %735, %736 : vector<8x128xf32>
    %738 = tpu.concatenate %732, %737 in 1 : vector<8x128xf32>, vector<8x128xf32> -> vector<8x256xf32>
    %cst_258 = arith.constant dense<0.000000e+00> : vector<32x256xf32>
    %739 = tpu.matmul %19, %738, %cst_258 {dimension_numbers = #tpu.dot_dimension_numbers<[1], [0], [0], [1], [0, 0, 1, 1], [], []>} : vector<32x8xf32>, vector<8x256xf32>, vector<32x256xf32> -> vector<32x256xf32>
    %740 = vector.extract_strided_slice %739 {offsets = [0, 0], sizes = [32, 128], strides = [1, 1]} : vector<32x256xf32> to vector<32x128xf32>
    %741 = vector.extract_strided_slice %739 {offsets = [0, 128], sizes = [32, 128], strides = [1, 1]} : vector<32x256xf32> to vector<32x128xf32>
    %742 = arith.mulf %740, %553 : vector<32x128xf32>
    %743 = arith.mulf %741, %649 : vector<32x128xf32>
    %cst_259 = arith.constant 0.000000e+00 : f32
    %744 = vector.shape_cast %8 : vector<1x128xi1> to vector<1x128xi1>
    %745 = vector.broadcast %744 : vector<1x128xi1> to vector<32x128xi1>
    %746 = vector.broadcast %cst_259 : f32 to vector<32x128xf32>
    %747 = arith.select %745, %743, %746 : vector<32x128xi1>, vector<32x128xf32>
    %748 = arith.addf %742, %747 : vector<32x128xf32>
    "tpu.trace_start"() <{level = 10 : i32, message = "bn,cn->bc"}> : () -> ()
    %cst_260 = arith.constant dense<0.000000e+00> : vector<8x32xf32>
    %749 = tpu.matmul %15, %748, %cst_260 {dimension_numbers = #tpu.dot_dimension_numbers<[1], [1], [0], [0], [0, 0, 1, 0], [], []>} : vector<8x128xf32>, vector<32x128xf32>, vector<8x32xf32> -> vector<8x32xf32>
    "tpu.trace_stop"() : () -> ()
    "tpu.trace_start"() <{level = 10 : i32, message = "bc,dc->bd"}> : () -> ()
    %cst_261 = arith.constant dense<0.000000e+00> : vector<8x32xf32>
    %750 = tpu.matmul %749, %20, %cst_261 {dimension_numbers = #tpu.dot_dimension_numbers<[1], [1], [0], [0], [0, 0, 1, 0], [], []>} : vector<8x32xf32>, vector<32x32xf32>, vector<8x32xf32> -> vector<8x32xf32>
    "tpu.trace_stop"() : () -> ()
    %751 = vector.broadcast %21 : vector<1x32xf32> to vector<8x32xf32>
    %752 = arith.addf %750, %751 : vector<8x32xf32>
    %c16 = arith.constant 16 : index
    %c0_262 = arith.constant 0 : index
    %753 = vector.load %arg9[%c16, %c0_262] : memref<32x32xf32, #tpu.memory_space<vmem>>, vector<8x32xf32>
    tpu.vector_store %arg9[%c16, %c0_262], %752 {strides = array<i32>} : memref<32x32xf32, #tpu.memory_space<vmem>>, vector<8x32xf32>,
    %c0_263 = arith.constant 0 : index
    %c384 = arith.constant 384 : index
    %754 = vector.load %arg1[%c0_263, %c384] : memref<32x512xf32, #tpu.memory_space<vmem>>, vector<32x128xf32>
    %c0_264 = arith.constant 0 : index
    %c384_265 = arith.constant 384 : index
    %755 = vector.load %arg2[%c0_264, %c384_265] : memref<2x512xf32, #tpu.memory_space<vmem>>, vector<1x128xf32>
    %c1_266 = arith.constant 1 : index
    %c384_267 = arith.constant 384 : index
    %756 = vector.load %arg2[%c1_266, %c384_267] : memref<2x512xf32, #tpu.memory_space<vmem>>, vector<1x128xf32>
    %c1_i32_268 = arith.constant 1 : i32
    %757 = tpu.dynamic_rotate %754 by %c1_i32_268 dim 1 : vector<32x128xf32>, i32 -> vector<32x128xf32>
    %cst_269 = arith.constant 0.000000e+00 : f32
    %758 = vector.shape_cast %8 : vector<1x128xi1> to vector<1x128xi1>
    %759 = vector.broadcast %758 : vector<1x128xi1> to vector<32x128xi1>
    %760 = vector.broadcast %cst_269 : f32 to vector<32x128xf32>
    %761 = arith.select %759, %760, %757 : vector<32x128xi1>, vector<32x128xf32>
    %c127_i32_270 = arith.constant 127 : i32
    %762 = tpu.dynamic_rotate %754 by %c127_i32_270 dim 1 : vector<32x128xf32>, i32 -> vector<32x128xf32>
    %cst_271 = arith.constant 0.000000e+00 : f32
    %763 = vector.shape_cast %10 : vector<1x128xi1> to vector<1x128xi1>
    %764 = vector.broadcast %763 : vector<1x128xi1> to vector<32x128xi1>
    %765 = vector.broadcast %cst_271 : f32 to vector<32x128xf32>
    %766 = arith.select %764, %765, %762 : vector<32x128xi1>, vector<32x128xf32>
    %767 = tpu.concatenate %761, %754, %766 in 0 : vector<32x128xf32>, vector<32x128xf32>, vector<32x128xf32> -> vector<96x128xf32>
    %cst_272 = arith.constant dense<0.000000e+00> : vector<96x128xf32>
    %768 = tpu.matmul %16, %767, %cst_272 {dimension_numbers = #tpu.dot_dimension_numbers<[1], [0], [0], [1], [0, 0, 1, 1], [], []>} : vector<96x96xf32>, vector<96x128xf32>, vector<96x128xf32> -> vector<96x128xf32>
    %769 = vector.broadcast %17 : vector<96x1xf32> to vector<96x128xf32>
    %770 = arith.addf %768, %769 : vector<96x128xf32>
    %771 = vector.extract_strided_slice %770 {offsets = [0, 0], sizes = [32, 128], strides = [1, 1]} : vector<96x128xf32> to vector<32x128xf32>
    %772 = vector.extract_strided_slice %770 {offsets = [32, 0], sizes = [32, 128], strides = [1, 1]} : vector<96x128xf32> to vector<32x128xf32>
    %773 = vector.extract_strided_slice %770 {offsets = [64, 0], sizes = [32, 128], strides = [1, 1]} : vector<96x128xf32> to vector<32x128xf32>
    %c1_i32_273 = arith.constant 1 : i32
    %774 = tpu.dynamic_rotate %772 by %c1_i32_273 dim 1 : vector<32x128xf32>, i32 -> vector<32x128xf32>
    %cst_274 = arith.constant 0xFF800000 : f32
    %775 = vector.shape_cast %8 : vector<1x128xi1> to vector<1x128xi1>
    %776 = vector.broadcast %775 : vector<1x128xi1> to vector<32x128xi1>
    %777 = vector.broadcast %cst_274 : f32 to vector<32x128xf32>
    %778 = arith.select %776, %777, %774 : vector<32x128xi1>, vector<32x128xf32>
    %c127_i32_275 = arith.constant 127 : i32
    %779 = tpu.dynamic_rotate %772 by %c127_i32_275 dim 1 : vector<32x128xf32>, i32 -> vector<32x128xf32>
    %cst_276 = arith.constant 0xFF800000 : f32
    %780 = vector.shape_cast %10 : vector<1x128xi1> to vector<1x128xi1>
    %781 = vector.broadcast %780 : vector<1x128xi1> to vector<32x128xi1>
    %782 = vector.broadcast %cst_276 : f32 to vector<32x128xf32>
    %783 = arith.select %781, %782, %779 : vector<32x128xi1>, vector<32x128xf32>
    %784 = arith.maximumf %778, %783 : vector<32x128xf32>
    %785 = arith.maximumf %772, %784 : vector<32x128xf32>
    %c1_i32_277 = arith.constant 1 : i32
    %786 = tpu.dynamic_rotate %773 by %c1_i32_277 dim 1 : vector<32x128xf32>, i32 -> vector<32x128xf32>
    %cst_278 = arith.constant 0xFF800000 : f32
    %787 = vector.shape_cast %8 : vector<1x128xi1> to vector<1x128xi1>
    %788 = vector.broadcast %787 : vector<1x128xi1> to vector<32x128xi1>
    %789 = vector.broadcast %cst_278 : f32 to vector<32x128xf32>
    %790 = arith.select %788, %789, %786 : vector<32x128xi1>, vector<32x128xf32>
    %c127_i32_279 = arith.constant 127 : i32
    %791 = tpu.dynamic_rotate %773 by %c127_i32_279 dim 1 : vector<32x128xf32>, i32 -> vector<32x128xf32>
    %cst_280 = arith.constant 0xFF800000 : f32
    %792 = vector.shape_cast %10 : vector<1x128xi1> to vector<1x128xi1>
    %793 = vector.broadcast %792 : vector<1x128xi1> to vector<32x128xi1>
    %794 = vector.broadcast %cst_280 : f32 to vector<32x128xf32>
    %795 = arith.select %793, %794, %791 : vector<32x128xi1>, vector<32x128xf32>
    %796 = arith.maximumf %790, %795 : vector<32x128xf32>
    %797 = arith.maximumf %773, %796 : vector<32x128xf32>
    %c15_i32_281 = arith.constant 15 : i32
    %798 = vector.broadcast %c15_i32_281 : i32 to vector<1x128xi32>
    %799 = arith.cmpi slt, %4, %798 : vector<1x128xi32>
    %c127_i32_282 = arith.constant 127 : i32
    %800 = tpu.dynamic_rotate %771 by %c127_i32_282 dim 1 : vector<32x128xf32>, i32 -> vector<32x128xf32>
    %cst_283 = arith.constant 0xFF800000 : f32
    %801 = vector.shape_cast %799 : vector<1x128xi1> to vector<1x128xi1>
    %802 = vector.broadcast %801 : vector<1x128xi1> to vector<32x128xi1>
    %803 = vector.broadcast %cst_283 : f32 to vector<32x128xf32>
    %804 = arith.select %802, %800, %803 : vector<32x128xi1>, vector<32x128xf32>
    %805 = arith.maximumf %771, %804 : vector<32x128xf32>
    %c14_i32_284 = arith.constant 14 : i32
    %806 = vector.broadcast %c14_i32_284 : i32 to vector<1x128xi32>
    %807 = arith.cmpi slt, %4, %806 : vector<1x128xi32>
    %c126_i32_285 = arith.constant 126 : i32
    %808 = tpu.dynamic_rotate %805 by %c126_i32_285 dim 1 : vector<32x128xf32>, i32 -> vector<32x128xf32>
    %cst_286 = arith.constant 0xFF800000 : f32
    %809 = vector.shape_cast %807 : vector<1x128xi1> to vector<1x128xi1>
    %810 = vector.broadcast %809 : vector<1x128xi1> to vector<32x128xi1>
    %811 = vector.broadcast %cst_286 : f32 to vector<32x128xf32>
    %812 = arith.select %810, %808, %811 : vector<32x128xi1>, vector<32x128xf32>
    %813 = arith.maximumf %805, %812 : vector<32x128xf32>
    %c12_i32_287 = arith.constant 12 : i32
    %814 = vector.broadcast %c12_i32_287 : i32 to vector<1x128xi32>
    %815 = arith.cmpi slt, %4, %814 : vector<1x128xi32>
    %c124_i32_288 = arith.constant 124 : i32
    %816 = tpu.dynamic_rotate %813 by %c124_i32_288 dim 1 : vector<32x128xf32>, i32 -> vector<32x128xf32>
    %cst_289 = arith.constant 0xFF800000 : f32
    %817 = vector.shape_cast %815 : vector<1x128xi1> to vector<1x128xi1>
    %818 = vector.broadcast %817 : vector<1x128xi1> to vector<32x128xi1>
    %819 = vector.broadcast %cst_289 : f32 to vector<32x128xf32>
    %820 = arith.select %818, %816, %819 : vector<32x128xi1>, vector<32x128xf32>
    %821 = arith.maximumf %813, %820 : vector<32x128xf32>
    %c8_i32_290 = arith.constant 8 : i32
    %822 = vector.broadcast %c8_i32_290 : i32 to vector<1x128xi32>
    %823 = arith.cmpi slt, %4, %822 : vector<1x128xi32>
    %c120_i32_291 = arith.constant 120 : i32
    %824 = tpu.dynamic_rotate %821 by %c120_i32_291 dim 1 : vector<32x128xf32>, i32 -> vector<32x128xf32>
    %cst_292 = arith.constant 0xFF800000 : f32
    %825 = vector.shape_cast %823 : vector<1x128xi1> to vector<1x128xi1>
    %826 = vector.broadcast %825 : vector<1x128xi1> to vector<32x128xi1>
    %827 = vector.broadcast %cst_292 : f32 to vector<32x128xf32>
    %828 = arith.select %826, %824, %827 : vector<32x128xi1>, vector<32x128xf32>
    %829 = arith.maximumf %821, %828 : vector<32x128xf32>
    %c15_i32_293 = arith.constant 15 : i32
    %830 = vector.broadcast %c15_i32_293 : i32 to vector<1x128xi32>
    %831 = arith.cmpi slt, %4, %830 : vector<1x128xi32>
    %c127_i32_294 = arith.constant 127 : i32
    %832 = tpu.dynamic_rotate %772 by %c127_i32_294 dim 1 : vector<32x128xf32>, i32 -> vector<32x128xf32>
    %cst_295 = arith.constant 0xFF800000 : f32
    %833 = vector.shape_cast %831 : vector<1x128xi1> to vector<1x128xi1>
    %834 = vector.broadcast %833 : vector<1x128xi1> to vector<32x128xi1>
    %835 = vector.broadcast %cst_295 : f32 to vector<32x128xf32>
    %836 = arith.select %834, %832, %835 : vector<32x128xi1>, vector<32x128xf32>
    %837 = arith.maximumf %772, %836 : vector<32x128xf32>
    %c14_i32_296 = arith.constant 14 : i32
    %838 = vector.broadcast %c14_i32_296 : i32 to vector<1x128xi32>
    %839 = arith.cmpi slt, %4, %838 : vector<1x128xi32>
    %c126_i32_297 = arith.constant 126 : i32
    %840 = tpu.dynamic_rotate %837 by %c126_i32_297 dim 1 : vector<32x128xf32>, i32 -> vector<32x128xf32>
    %cst_298 = arith.constant 0xFF800000 : f32
    %841 = vector.shape_cast %839 : vector<1x128xi1> to vector<1x128xi1>
    %842 = vector.broadcast %841 : vector<1x128xi1> to vector<32x128xi1>
    %843 = vector.broadcast %cst_298 : f32 to vector<32x128xf32>
    %844 = arith.select %842, %840, %843 : vector<32x128xi1>, vector<32x128xf32>
    %845 = arith.maximumf %837, %844 : vector<32x128xf32>
    %c12_i32_299 = arith.constant 12 : i32
    %846 = vector.broadcast %c12_i32_299 : i32 to vector<1x128xi32>
    %847 = arith.cmpi slt, %4, %846 : vector<1x128xi32>
    %c124_i32_300 = arith.constant 124 : i32
    %848 = tpu.dynamic_rotate %845 by %c124_i32_300 dim 1 : vector<32x128xf32>, i32 -> vector<32x128xf32>
    %cst_301 = arith.constant 0xFF800000 : f32
    %849 = vector.shape_cast %847 : vector<1x128xi1> to vector<1x128xi1>
    %850 = vector.broadcast %849 : vector<1x128xi1> to vector<32x128xi1>
    %851 = vector.broadcast %cst_301 : f32 to vector<32x128xf32>
    %852 = arith.select %850, %848, %851 : vector<32x128xi1>, vector<32x128xf32>
    %853 = arith.maximumf %845, %852 : vector<32x128xf32>
    %c8_i32_302 = arith.constant 8 : i32
    %854 = vector.broadcast %c8_i32_302 : i32 to vector<1x128xi32>
    %855 = arith.cmpi slt, %4, %854 : vector<1x128xi32>
    %c120_i32_303 = arith.constant 120 : i32
    %856 = tpu.dynamic_rotate %853 by %c120_i32_303 dim 1 : vector<32x128xf32>, i32 -> vector<32x128xf32>
    %cst_304 = arith.constant 0xFF800000 : f32
    %857 = vector.shape_cast %855 : vector<1x128xi1> to vector<1x128xi1>
    %858 = vector.broadcast %857 : vector<1x128xi1> to vector<32x128xi1>
    %859 = vector.broadcast %cst_304 : f32 to vector<32x128xf32>
    %860 = arith.select %858, %856, %859 : vector<32x128xi1>, vector<32x128xf32>
    %861 = arith.maximumf %853, %860 : vector<32x128xf32>
    %c15_i32_305 = arith.constant 15 : i32
    %862 = vector.broadcast %c15_i32_305 : i32 to vector<1x128xi32>
    %863 = arith.cmpi slt, %4, %862 : vector<1x128xi32>
    %c127_i32_306 = arith.constant 127 : i32
    %864 = tpu.dynamic_rotate %773 by %c127_i32_306 dim 1 : vector<32x128xf32>, i32 -> vector<32x128xf32>
    %cst_307 = arith.constant 0xFF800000 : f32
    %865 = vector.shape_cast %863 : vector<1x128xi1> to vector<1x128xi1>
    %866 = vector.broadcast %865 : vector<1x128xi1> to vector<32x128xi1>
    %867 = vector.broadcast %cst_307 : f32 to vector<32x128xf32>
    %868 = arith.select %866, %864, %867 : vector<32x128xi1>, vector<32x128xf32>
    %869 = arith.maximumf %773, %868 : vector<32x128xf32>
    %c14_i32_308 = arith.constant 14 : i32
    %870 = vector.broadcast %c14_i32_308 : i32 to vector<1x128xi32>
    %871 = arith.cmpi slt, %4, %870 : vector<1x128xi32>
    %c126_i32_309 = arith.constant 126 : i32
    %872 = tpu.dynamic_rotate %869 by %c126_i32_309 dim 1 : vector<32x128xf32>, i32 -> vector<32x128xf32>
    %cst_310 = arith.constant 0xFF800000 : f32
    %873 = vector.shape_cast %871 : vector<1x128xi1> to vector<1x128xi1>
    %874 = vector.broadcast %873 : vector<1x128xi1> to vector<32x128xi1>
    %875 = vector.broadcast %cst_310 : f32 to vector<32x128xf32>
    %876 = arith.select %874, %872, %875 : vector<32x128xi1>, vector<32x128xf32>
    %877 = arith.maximumf %869, %876 : vector<32x128xf32>
    %c12_i32_311 = arith.constant 12 : i32
    %878 = vector.broadcast %c12_i32_311 : i32 to vector<1x128xi32>
    %879 = arith.cmpi slt, %4, %878 : vector<1x128xi32>
    %c124_i32_312 = arith.constant 124 : i32
    %880 = tpu.dynamic_rotate %877 by %c124_i32_312 dim 1 : vector<32x128xf32>, i32 -> vector<32x128xf32>
    %cst_313 = arith.constant 0xFF800000 : f32
    %881 = vector.shape_cast %879 : vector<1x128xi1> to vector<1x128xi1>
    %882 = vector.broadcast %881 : vector<1x128xi1> to vector<32x128xi1>
    %883 = vector.broadcast %cst_313 : f32 to vector<32x128xf32>
    %884 = arith.select %882, %880, %883 : vector<32x128xi1>, vector<32x128xf32>
    %885 = arith.maximumf %877, %884 : vector<32x128xf32>
    %c8_i32_314 = arith.constant 8 : i32
    %886 = vector.broadcast %c8_i32_314 : i32 to vector<1x128xi32>
    %887 = arith.cmpi slt, %4, %886 : vector<1x128xi32>
    %c120_i32_315 = arith.constant 120 : i32
    %888 = tpu.dynamic_rotate %885 by %c120_i32_315 dim 1 : vector<32x128xf32>, i32 -> vector<32x128xf32>
    %cst_316 = arith.constant 0xFF800000 : f32
    %889 = vector.shape_cast %887 : vector<1x128xi1> to vector<1x128xi1>
    %890 = vector.broadcast %889 : vector<1x128xi1> to vector<32x128xi1>
    %891 = vector.broadcast %cst_316 : f32 to vector<32x128xf32>
    %892 = arith.select %890, %888, %891 : vector<32x128xi1>, vector<32x128xf32>
    %893 = arith.maximumf %885, %892 : vector<32x128xf32>
    %cst_317 = arith.constant 0.000000e+00 : f32
    %894 = vector.shape_cast %8 : vector<1x128xi1> to vector<1x128xi1>
    %895 = vector.broadcast %894 : vector<1x128xi1> to vector<32x128xi1>
    %896 = vector.broadcast %cst_317 : f32 to vector<32x128xf32>
    %897 = arith.select %895, %829, %896 : vector<32x128xi1>, vector<32x128xf32>
    %cst_318 = arith.constant 0.000000e+00 : f32
    %898 = vector.shape_cast %8 : vector<1x128xi1> to vector<1x128xi1>
    %899 = vector.broadcast %898 : vector<1x128xi1> to vector<32x128xi1>
    %900 = vector.broadcast %cst_318 : f32 to vector<32x128xf32>
    %901 = arith.select %899, %861, %900 : vector<32x128xi1>, vector<32x128xf32>
    "tpu.trace_start"() <{level = 10 : i32, message = "cn,bn->cb"}> : () -> ()
    %cst_319 = arith.constant dense<0.000000e+00> : vector<32x8xf32>
    %902 = tpu.matmul %897, %15, %cst_319 {dimension_numbers = #tpu.dot_dimension_numbers<[1], [1], [0], [0], [0, 0, 1, 0], [], []>} : vector<32x128xf32>, vector<8x128xf32>, vector<32x8xf32> -> vector<32x8xf32>
    "tpu.trace_stop"() : () -> ()
    "tpu.trace_start"() <{level = 10 : i32, message = "cb,bn->cn"}> : () -> ()
    %cst_320 = arith.constant dense<0.000000e+00> : vector<32x128xf32>
    %903 = tpu.matmul %902, %15, %cst_320 {dimension_numbers = #tpu.dot_dimension_numbers<[1], [0], [0], [1], [0, 0, 1, 1], [], []>} : vector<32x8xf32>, vector<8x128xf32>, vector<32x128xf32> -> vector<32x128xf32>
    "tpu.trace_stop"() : () -> ()
    %904 = arith.mulf %897, %901 : vector<32x128xf32>
    %905 = arith.mulf %903, %785 : vector<32x128xf32>
    %906 = tpu.concatenate %904, %905 in 1 : vector<32x128xf32>, vector<32x128xf32> -> vector<32x256xf32>
    %cst_321 = arith.constant dense<0.000000e+00> : vector<8x256xf32>
    %907 = tpu.matmul %18, %906, %cst_321 {dimension_numbers = #tpu.dot_dimension_numbers<[1], [0], [0], [1], [0, 0, 1, 1], [], []>} : vector<8x32xf32>, vector<32x256xf32>, vector<8x256xf32> -> vector<8x256xf32>
    %908 = vector.broadcast %1 : f32 to vector<8x256xf32>
    %909 = arith.mulf %907, %908 : vector<8x256xf32>
    %cst_322 = arith.constant 0.000000e+00 : f32
    %910 = vector.broadcast %cst_322 : f32 to vector<1x128xf32>
    %911 = arith.cmpf one, %755, %910 : vector<1x128xf32>
    %912 = arith.andi %8, %911 : vector<1x128xi1>
    %913 = vector.extract_strided_slice %909 {offsets = [0, 0], sizes = [8, 128], strides = [1, 1]} : vector<8x256xf32> to vector<8x128xf32>
    %cst_323 = arith.constant 0xFF800000 : f32
    %914 = vector.shape_cast %912 : vector<1x128xi1> to vector<1x128xi1>
    %915 = vector.broadcast %914 : vector<1x128xi1> to vector<8x128xi1>
    %916 = vector.broadcast %cst_323 : f32 to vector<8x128xf32>
    %917 = arith.select %915, %913, %916 : vector<8x128xi1>, vector<8x128xf32>
    %cst_324 = arith.constant 0.000000e+00 : f32
    %918 = vector.broadcast %cst_324 : f32 to vector<1x128xf32>
    %919 = arith.cmpf one, %756, %918 : vector<1x128xf32>
    %920 = vector.extract_strided_slice %909 {offsets = [0, 128], sizes = [8, 128], strides = [1, 1]} : vector<8x256xf32> to vector<8x128xf32>
    %cst_325 = arith.constant 0xFF800000 : f32
    %921 = vector.shape_cast %919 : vector<1x128xi1> to vector<1x128xi1>
    %922 = vector.broadcast %921 : vector<1x128xi1> to vector<8x128xi1>
    %923 = vector.broadcast %cst_325 : f32 to vector<8x128xf32>
    %924 = arith.select %922, %920, %923 : vector<8x128xi1>, vector<8x128xf32>
    %925 = arith.maximumf %917, %924 : vector<8x128xf32>
    %c1_i32_326 = arith.constant 1 : i32
    %926 = vector.broadcast %c1_i32_326 : i32 to vector<1x128xi32>
    %927 = arith.cmpi sge, %4, %926 : vector<1x128xi32>
    %c1_i32_327 = arith.constant 1 : i32
    %928 = tpu.dynamic_rotate %925 by %c1_i32_327 dim 1 : vector<8x128xf32>, i32 -> vector<8x128xf32>
    %c113_i32_328 = arith.constant 113 : i32
    %929 = tpu.dynamic_rotate %925 by %c113_i32_328 dim 1 : vector<8x128xf32>, i32 -> vector<8x128xf32>
    %930 = vector.shape_cast %927 : vector<1x128xi1> to vector<1x128xi1>
    %931 = vector.broadcast %930 : vector<1x128xi1> to vector<8x128xi1>
    %932 = arith.select %931, %928, %929 : vector<8x128xi1>, vector<8x128xf32>
    %933 = arith.maximumf %925, %932 : vector<8x128xf32>
    %c2_i32_329 = arith.constant 2 : i32
    %934 = vector.broadcast %c2_i32_329 : i32 to vector<1x128xi32>
    %935 = arith.cmpi sge, %4, %934 : vector<1x128xi32>
    %c2_i32_330 = arith.constant 2 : i32
    %936 = tpu.dynamic_rotate %933 by %c2_i32_330 dim 1 : vector<8x128xf32>, i32 -> vector<8x128xf32>
    %c114_i32_331 = arith.constant 114 : i32
    %937 = tpu.dynamic_rotate %933 by %c114_i32_331 dim 1 : vector<8x128xf32>, i32 -> vector<8x128xf32>
    %938 = vector.shape_cast %935 : vector<1x128xi1> to vector<1x128xi1>
    %939 = vector.broadcast %938 : vector<1x128xi1> to vector<8x128xi1>
    %940 = arith.select %939, %936, %937 : vector<8x128xi1>, vector<8x128xf32>
    %941 = arith.maximumf %933, %940 : vector<8x128xf32>
    %c4_i32_332 = arith.constant 4 : i32
    %942 = vector.broadcast %c4_i32_332 : i32 to vector<1x128xi32>
    %943 = arith.cmpi sge, %4, %942 : vector<1x128xi32>
    %c4_i32_333 = arith.constant 4 : i32
    %944 = tpu.dynamic_rotate %941 by %c4_i32_333 dim 1 : vector<8x128xf32>, i32 -> vector<8x128xf32>
    %c116_i32_334 = arith.constant 116 : i32
    %945 = tpu.dynamic_rotate %941 by %c116_i32_334 dim 1 : vector<8x128xf32>, i32 -> vector<8x128xf32>
    %946 = vector.shape_cast %943 : vector<1x128xi1> to vector<1x128xi1>
    %947 = vector.broadcast %946 : vector<1x128xi1> to vector<8x128xi1>
    %948 = arith.select %947, %944, %945 : vector<8x128xi1>, vector<8x128xf32>
    %949 = arith.maximumf %941, %948 : vector<8x128xf32>
    %c8_i32_335 = arith.constant 8 : i32
    %950 = vector.broadcast %c8_i32_335 : i32 to vector<1x128xi32>
    %951 = arith.cmpi sge, %4, %950 : vector<1x128xi32>
    %c8_i32_336 = arith.constant 8 : i32
    %952 = tpu.dynamic_rotate %949 by %c8_i32_336 dim 1 : vector<8x128xf32>, i32 -> vector<8x128xf32>
    %c120_i32_337 = arith.constant 120 : i32
    %953 = tpu.dynamic_rotate %949 by %c120_i32_337 dim 1 : vector<8x128xf32>, i32 -> vector<8x128xf32>
    %954 = vector.shape_cast %951 : vector<1x128xi1> to vector<1x128xi1>
    %955 = vector.broadcast %954 : vector<1x128xi1> to vector<8x128xi1>
    %956 = arith.select %955, %952, %953 : vector<8x128xi1>, vector<8x128xf32>
    %957 = arith.maximumf %949, %956 : vector<8x128xf32>
    %cst_338 = arith.constant -1.000000e+30 : f32
    %958 = vector.broadcast %cst_338 : f32 to vector<8x128xf32>
    %959 = arith.maximumf %957, %958 : vector<8x128xf32>
    %960 = arith.subf %917, %959 : vector<8x128xf32>
    %961 = math.exp %960 : vector<8x128xf32>
    %962 = arith.subf %924, %959 : vector<8x128xf32>
    %963 = math.exp %962 : vector<8x128xf32>
    %964 = arith.addf %963, %961 : vector<8x128xf32>
    "tpu.trace_start"() <{level = 10 : i32, message = "hn,bn->hb"}> : () -> ()
    %cst_339 = arith.constant dense<0.000000e+00> : vector<8x8xf32>
    %965 = tpu.matmul %964, %15, %cst_339 {dimension_numbers = #tpu.dot_dimension_numbers<[1], [1], [0], [0], [0, 0, 1, 0], [], []>} : vector<8x128xf32>, vector<8x128xf32>, vector<8x8xf32> -> vector<8x8xf32>
    "tpu.trace_stop"() : () -> ()
    "tpu.trace_start"() <{level = 10 : i32, message = "hb,bn->hn"}> : () -> ()
    %cst_340 = arith.constant dense<0.000000e+00> : vector<8x128xf32>
    %966 = tpu.matmul %965, %15, %cst_340 {dimension_numbers = #tpu.dot_dimension_numbers<[1], [0], [0], [1], [0, 0, 1, 1], [], []>} : vector<8x8xf32>, vector<8x128xf32>, vector<8x128xf32> -> vector<8x128xf32>
    %cst_341 = arith.constant 0.000000e+00 : f32
    "tpu.trace_stop"() : () -> ()
    %967 = vector.broadcast %cst_341 : f32 to vector<8x128xf32>
    %968 = arith.cmpf ogt, %966, %967 : vector<8x128xf32>
    %cst_342 = arith.constant 1.000000e+00 : f32
    %969 = vector.broadcast %cst_342 : f32 to vector<8x128xf32>
    %970 = arith.select %968, %966, %969 : vector<8x128xi1>, vector<8x128xf32>
    %971 = tpu.reciprocal %970 : vector<8x128xf32> -> vector<8x128xf32>
    %972 = arith.mulf %963, %971 : vector<8x128xf32>
    %cst_343 = arith.constant 0.000000e+00 : f32
    %973 = vector.broadcast %cst_343 : f32 to vector<8x128xf32>
    %974 = arith.select %968, %972, %973 : vector<8x128xi1>, vector<8x128xf32>
    %975 = vector.broadcast %755 : vector<1x128xf32> to vector<8x128xf32>
    %976 = arith.mulf %974, %975 : vector<8x128xf32>
    %977 = arith.mulf %961, %971 : vector<8x128xf32>
    %cst_344 = arith.constant 0.000000e+00 : f32
    %978 = vector.broadcast %cst_344 : f32 to vector<8x128xf32>
    %979 = arith.select %968, %977, %978 : vector<8x128xi1>, vector<8x128xf32>
    %980 = vector.broadcast %755 : vector<1x128xf32> to vector<8x128xf32>
    %981 = arith.mulf %979, %980 : vector<8x128xf32>
    %982 = tpu.concatenate %976, %981 in 1 : vector<8x128xf32>, vector<8x128xf32> -> vector<8x256xf32>
    %cst_345 = arith.constant dense<0.000000e+00> : vector<32x256xf32>
    %983 = tpu.matmul %19, %982, %cst_345 {dimension_numbers = #tpu.dot_dimension_numbers<[1], [0], [0], [1], [0, 0, 1, 1], [], []>} : vector<32x8xf32>, vector<8x256xf32>, vector<32x256xf32> -> vector<32x256xf32>
    %984 = vector.extract_strided_slice %983 {offsets = [0, 0], sizes = [32, 128], strides = [1, 1]} : vector<32x256xf32> to vector<32x128xf32>
    %985 = vector.extract_strided_slice %983 {offsets = [0, 128], sizes = [32, 128], strides = [1, 1]} : vector<32x256xf32> to vector<32x128xf32>
    %986 = arith.mulf %984, %797 : vector<32x128xf32>
    %987 = arith.mulf %985, %893 : vector<32x128xf32>
    %cst_346 = arith.constant 0.000000e+00 : f32
    %988 = vector.shape_cast %8 : vector<1x128xi1> to vector<1x128xi1>
    %989 = vector.broadcast %988 : vector<1x128xi1> to vector<32x128xi1>
    %990 = vector.broadcast %cst_346 : f32 to vector<32x128xf32>
    %991 = arith.select %989, %987, %990 : vector<32x128xi1>, vector<32x128xf32>
    %992 = arith.addf %986, %991 : vector<32x128xf32>
    "tpu.trace_start"() <{level = 10 : i32, message = "bn,cn->bc"}> : () -> ()
    %cst_347 = arith.constant dense<0.000000e+00> : vector<8x32xf32>
    %993 = tpu.matmul %15, %992, %cst_347 {dimension_numbers = #tpu.dot_dimension_numbers<[1], [1], [0], [0], [0, 0, 1, 0], [], []>} : vector<8x128xf32>, vector<32x128xf32>, vector<8x32xf32> -> vector<8x32xf32>
    "tpu.trace_stop"() : () -> ()
    "tpu.trace_start"() <{level = 10 : i32, message = "bc,dc->bd"}> : () -> ()
    %cst_348 = arith.constant dense<0.000000e+00> : vector<8x32xf32>
    %994 = tpu.matmul %993, %20, %cst_348 {dimension_numbers = #tpu.dot_dimension_numbers<[1], [1], [0], [0], [0, 0, 1, 0], [], []>} : vector<8x32xf32>, vector<32x32xf32>, vector<8x32xf32> -> vector<8x32xf32>
    "tpu.trace_stop"() : () -> ()
    %995 = vector.broadcast %21 : vector<1x32xf32> to vector<8x32xf32>
    %996 = arith.addf %994, %995 : vector<8x32xf32>
    %c24 = arith.constant 24 : index
    %c0_349 = arith.constant 0 : index
    %997 = vector.load %arg9[%c24, %c0_349] : memref<32x32xf32, #tpu.memory_space<vmem>>, vector<8x32xf32>
    tpu.vector_store %arg9[%c24, %c0_349], %996 {strides = array<i32>} : memref<32x32xf32, #tpu.memory_space<vmem>>, vector<8x32xf32>,
    return
  }
  func.func @transform_0(%arg0: i32) -> (i32, i32) {
    %c0_i32 = arith.constant 0 : i32
    %c0_i32_0 = arith.constant 0 : i32
    return %c0_i32, %arg0 : i32, i32
  }
  func.func @transform_1(%arg0: i32) -> (i32, i32) {
    %c0_i32 = arith.constant 0 : i32
    %c0_i32_0 = arith.constant 0 : i32
    return %c0_i32, %arg0 : i32, i32
  }
  func.func @transform_2(%arg0: i32) -> (i32, i32) {
    %c0_i32 = arith.constant 0 : i32
    %c0_i32_0 = arith.constant 0 : i32
    %c0_i32_1 = arith.constant 0 : i32
    return %c0_i32, %c0_i32_0 : i32, i32
  }
  func.func @transform_3(%arg0: i32) -> (i32, i32) {
    %c0_i32 = arith.constant 0 : i32
    %c0_i32_0 = arith.constant 0 : i32
    %c0_i32_1 = arith.constant 0 : i32
    return %c0_i32, %c0_i32_0 : i32, i32
  }
  func.func @transform_4(%arg0: i32) -> (i32, i32) {
    %c0_i32 = arith.constant 0 : i32
    %c0_i32_0 = arith.constant 0 : i32
    %c0_i32_1 = arith.constant 0 : i32
    return %c0_i32, %c0_i32_0 : i32, i32
  }
  func.func @transform_5(%arg0: i32) -> (i32, i32) {
    %c0_i32 = arith.constant 0 : i32
    %c0_i32_0 = arith.constant 0 : i32
    %c0_i32_1 = arith.constant 0 : i32
    return %c0_i32, %c0_i32_0 : i32, i32
  }
  func.func @transform_6(%arg0: i32) -> (i32, i32) {
    %c0_i32 = arith.constant 0 : i32
    %c0_i32_0 = arith.constant 0 : i32
    %c0_i32_1 = arith.constant 0 : i32
    return %c0_i32, %c0_i32_0 : i32, i32
  }
  func.func @transform_7(%arg0: i32) -> (i32, i32) {
    %c0_i32 = arith.constant 0 : i32
    %c0_i32_0 = arith.constant 0 : i32
    %c0_i32_1 = arith.constant 0 : i32
    return %c0_i32, %c0_i32_0 : i32, i32
  }
  func.func @transform_8(%arg0: i32) -> (i32, i32) {
    %c0_i32 = arith.constant 0 : i32
    %c0_i32_0 = arith.constant 0 : i32
    return %arg0, %c0_i32 : i32, i32
  }
}

</mosaic_0001>

<bundles_post_ra>
// kernel: tpu_custom_call.1
= control target key start
LH: loop header
LB: loop body
LE: loop exit
PB: predicated region body
PF: predicated region fallthrough
CT: control target
= control target key end

     0   :  { %s8795_s0 = inlined_call_operand.hbm [shape: f32[32,1024], index: 0, kind: input, shape index: {}]   ;;  %s8796_s1 = inlined_call_operand.hbm [shape: f32[2,1024], index: 1, kind: input, shape index: {}]   ;;  %s8797_s2 = inlined_call_operand.vmem [shape: f32[96,96], index: 2, kind: input, shape index: {}]   ;;  %s8798_s3 = inlined_call_operand.vmem [shape: f32[96,1], index: 3, kind: input, shape index: {}]   ;;  %s8799_s4 = inlined_call_operand.vmem [shape: f32[8,32], index: 4, kind: input, shape index: {}]   ;;  %s8800_s5 = inlined_call_operand.vmem [shape: f32[32,8], index: 5, kind: input, shape index: {}]   ;;  %s8801_s6 = inlined_call_operand.vmem [shape: f32[32,32], index: 6, kind: input, shape index: {}]   ;;  %s8802_s7 = inlined_call_operand.vmem [shape: f32[1,32], index: 7, kind: input, shape index: {}]   ;;  %s8803_s8 = inlined_call_operand.vmem [shape: f32[64,32], index: 8, kind: output, shape index: {}]  }
   0x1   :  { %8847 = sst [smem:[#allocation20_spill]] %s8795_s0 }
   0x2   :  { %13 = vsyncpa [#allocation3], 0 }
   0x3   :  { %15 = vsyncpa [#allocation3 + $0x1], 0 }
   0x4   :  { %16 = vsyncpa [#allocation5], 0 }
   0x5   :  { %18 = vsyncpa [#allocation5 + $0x1], 0  ;;  %s6211_s27 = smov 0   ;;  %s6213_s28 = smov 0  }
   0x6   :  { %s6215_s29 = smov 0   ;;  %s6217_s30 = smov 0  }
   0x7 LB: > { %s8804_s9 = sadd.s32 4294967295, %s6144_s30   ;;  %s6231_s10 = sadd.s32 1, %s6144_s30   ;;  %s6144_s30 = sphi %s6217_s30, %s9012_s30   ;;  %s6140_s29 = sphi %s6215_s29, %s9011_s29   ;;  %s6136_s28 = sphi %s6213_s28, %s9010_s28   ;;  %s6132_s27 = sphi %s6211_s27, %s9009_s27  }
   0x8   : > { %s28_s11 = ssub.s32 %s6144_s30, %s6231_s10  ;;  %s31_s12 = sadd.s32 1, %s6140_s29 }
   0x9   : > { %p29_p0 = scmp.eq.s32.totalorder %s28_s11, 0  ;;  %p38_p1 = scmp.ne.s32.totalorder %s6140_s29, %s6136_s28 }
   0xa   : > { %p39_p2 = scmp.eq.s32.totalorder %s6144_s30, 0  ;;  %p44_p3 = scmp.ne.s32.totalorder %s6136_s28, %s6132_s27 }
   0xb   : > { %s6241_s13 = scalar_select %p29_p0, %s6140_s29, %s31_s12  }
   0xc   : > { %p40_p4 = por %p39_p2, %p38_p1  ;;  %p45_p5 = scmp.eq.s32.totalorder %s8804_s9, 0 }
   0xd   : > { %8848 = sst [smem:[#allocation8_spill]] %s6241_s13  ;;  %p5938_p6 = scmp.lt.s32.totalorder %s6144_s30, 2 }
   0xe   : > { %p6246_p7 = por %p45_p5, %p44_p3  ;;  %s6251_s15 = sand.u32 1, %s6140_s29  }
   0xf   : > { %s5150_s16 = sshll.u32 %s6251_s15, 7  ;;  %s5373_s17 = sshll.u32 %s6144_s30, 9 }
  0x10   : > { %s8849_s14 = scalar_select %p6246_p7, 1, 0 }
  0x11   : > { %s8850_s0 = sld [smem:[#allocation20_spill]]  ;;  %s268_s21 = scalar_lea.vmem [#allocation2], %s5150_s16 }
  0x12   : > { %s275_s22 = sshll.u32 %s268_s21, 4  ;;  %p6262_p8 = pnand %p5938_p6, %p40_p4  ;;  %s6260_s22 = int_to_ptr.vmem [resolvable:$true] %s275_s22 }
  0x13   : > { %s265_s24 = scalar_lea.sflag [#allocation3], %s6251_s15 }
  0x14   : > { %p6052_p10 = pneg %p6262_p8 }
  0x17   : > { %s6258_s20 = scalar_lea.hbm %s8850_s0, %s5373_s17  ;;  %s6055_s11 = scalar_lea.hbm %s8850_s0, 4096 }
  0x18   : > { %s6050_s25 = scalar_lea.hbm %s6258_s20, 2048  ;;  %p6056_p13 = scmp.lt.s32.totalorder %s6258_s20, %s8850_s0 }
  0x19   : > { %p6051_p9 = scmp.ne.s32.totalorder %s6258_s20, %s6050_s25  ;;  %p6057_p0 = scmp.lt.s32.totalorder %s6055_s11, %s6050_s25 }
  0x1b   : > { %p6053_p11 = pnand %p6052_p10, %p6051_p9  ;;  %p6058_p1 = por %p6057_p0, %p6056_p13 }
  0x1d   : > { %p6054_p12 = pneg %p6053_p11 }
  0x1f   : > { %p6059_p2 = pnand %p6058_p1, %p6054_p12 }
  0x21   : > { %6062 = shalt.err (!%p6059_p2)
}
  0x22   : > { %s6063_s17 = scalar_lea.vmem %s6260_s22, 2048  ;;  %s6146_s18 = smov [#allocation2]  }
  0x23   : > { %p6064_p3 = scmp.ne.s32.totalorder %s6260_s22, %s6063_s17  ;;  %s6068_s19 = sshll.u32 %s6146_s18, 4  ;;  %s6069_s19 = int_to_ptr.vmem [resolvable:$false] %s6068_s19 }
  0x24   : > { %s6070_s21 = scalar_lea.vmem %s6069_s19, 4096  ;;  %p6071_p6 = scmp.lt.s32.totalorder %s6260_s22, %s6069_s19 }
  0x25   : > { %p6066_p4 = pnand %p6064_p3, %p6052_p10  ;;  %p6072_p9 = scmp.lt.s32.totalorder %s6070_s21, %s6063_s17 }
  0x27   : > { %p6067_p5 = pneg %p6066_p4  ;;  %p6073_p11 = por %p6072_p9, %p6071_p6 }
  0x29   : > { %p6074_p13 = pnand %p6073_p11, %p6067_p5 }
  0x2b   : > { %6077 = shalt.err (!%p6074_p13)
}
  0x2c   : > { %s6147_s25 = smov 1024   ;;  %s6148_s26 = smov 512  }
  0x2d   : > { %s6149_s27 = smov 32   ;;  %p5156_p12 = scmp.ge.s32.totalorder %s6144_s30, 1 }
  0x2e   : > { %5934 = dma.hbm_to_vmem [thread:$0]  (!%p6262_p8), %s6258_s20, 2048, %s6260_s22, %s265_s24, %s6147_s25, %s6148_s26, %s6149_s27  }
  0x2f   : > { %p302_p0 = scmp.lt.s32.totalorder %s6144_s30, 3  ;;  %s5153_s11 = sshll.u32 %s6251_s15, 3 }
  0x30   : > { %s5374_s16 = sshll.u32 %s6144_s30, 7  ;;  %s289_s17 = scalar_lea.vmem [#allocation4], %s5153_s11 }
  0x31   : > { %p6296_p1 = pnand %p5156_p12, %p302_p0  ;;  %s297_s18 = sshll.u32 %s289_s17, 4  ;;  %s298_s18 = int_to_ptr.vmem [resolvable:$true] %s297_s18 }
  0x32   : > { %s295_s9 = scalar_lea.hbm %s8796_s1, %s5374_s16  ;;  %s286_s0 = scalar_lea.sflag [#allocation5], %s6251_s15 }
  0x33   : > { %s8852_s12 = scalar_select %p6296_p1, 1, 0 }
  0x34   : > { %s6078_s13 = scalar_lea.hbm %s295_s9, 128  ;;  %s6083_s24 = scalar_lea.hbm %s8796_s1, 256 }
  0x35   : > { %p6079_p2 = scmp.ne.s32.totalorder %s295_s9, %s6078_s13  ;;  %p6084_p5 = scmp.lt.s32.totalorder %s295_s9, %s8796_s1 }
  0x36   : > { %p6085_p6 = scmp.lt.s32.totalorder %s6083_s24, %s6078_s13 }
  0x37   : > { %p6081_p3 = pnand %p6079_p2, %p6052_p10 }
  0x38   : > { %p6086_p9 = por %p6085_p6, %p6084_p5 }
  0x39   : > { %p6082_p4 = pneg %p6081_p3 }
  0x3b   : > { %p6087_p11 = pnand %p6086_p9, %p6082_p4 }
  0x3d   : > { %6090 = shalt.err (!%p6087_p11)
}
  0x3e   : > { %s6091_s27 = scalar_lea.vmem %s298_s18, 128  ;;  %s6150_s15 = smov [#allocation4]  }
  0x3f   : > { %p6092_p13 = scmp.ne.s32.totalorder %s298_s18, %s6091_s27  ;;  %s6096_s11 = sshll.u32 %s6150_s15, 4  ;;  %s6097_s11 = int_to_ptr.vmem [resolvable:$false] %s6096_s11 }
  0x40   : > { %s6098_s16 = scalar_lea.vmem %s6097_s11, 256  ;;  %p6099_p2 = scmp.lt.s32.totalorder %s298_s18, %s6097_s11 }
  0x41   : > { %p6094_p12 = pnand %p6092_p13, %p6052_p10  ;;  %p6100_p3 = scmp.lt.s32.totalorder %s6098_s16, %s6091_s27 }
  0x43   : > { %p6095_p0 = pneg %p6094_p12  ;;  %p6101_p7 = por %p6100_p3, %p6099_p2 }
  0x45   : > { %p6102_p1 = pnand %p6101_p7, %p6095_p0 }
  0x47   : > { %6105 = shalt.err (!%p6102_p1)
}
  0x48   : > { %5937 = dma.hbm_to_vmem [thread:$0]  (!%p6262_p8), %s295_s9, 128, %s298_s18, %s286_s0  }
  0x49   : > { %p8853_p4 = scmp.ne.s32.totalorder %s8852_s12, 0 }
  0x4b   : > { %306 = sbr.rel (%p8853_p4) target bundleno = 10404 (0x28a4), region = 52 }
  0x50   : > { %s308_s13 = sand.u32 1, %s6136_s28   ;;  %p8854_p10 = scmp.ne.s32.totalorder %s8849_s14, 0 }
  0x51   : > { %s5157_s17 = sshll.u32 %s308_s13, 7  ;;  %s309_s19 = scalar_lea.sflag [#allocation3], %s308_s13 }
  0x52   : > { %s6322_s21 = scalar_lea.vmem [#allocation2], %s5157_s17 }
  0x53   : > { %6123 = dma.done.wait (%p8854_p10), %s309_s19, 2048  }
  0x54   : > { %6125 = vsyncadd (%p8854_p10), %s309_s19, 4294965248  ;;  %s5158_s20 = sshll.u32 %s308_s13, 3  ;;  %s318_s22 = scalar_lea.sflag [#allocation5], %s308_s13 }
  0x55   : > { %s6328_s23 = scalar_lea.vmem [#allocation4], %s5158_s20 }
  0x56   : > { %6127 = dma.done.wait (%p8854_p10), %s318_s22, 128  }
  0x57   : > { %6129 = vsyncadd (%p8854_p10), %s318_s22, 4294967168  ;;  %v415_v0 = vld [vmem:[%s6322_s21 + $0x60] sm:$0xff]  ;;  %s6151_s0 = smov 127   ;;  %s6152_s9 = smov 1   ;;  %vm8822_vm0 = vcmask 785408   ;;  %v391_v5 = vld [vmem:[%s8798_s3 + $0x8] sm:$0xff]  ;;  %v367_v10 = vlaneseq }
  0x58   : > { %v413_v1 = vld [vmem:[%s6322_s21 + $0x20] sm:$0xff]  ;;  %438 = vrot.lane.b32.xlu0 %v415_v0, %s6151_s0  ;;  %v8814_v7 = vmov 0   ;;  %v392_v8 = vld [vmem:[%s8798_s3 + $0x10] sm:$0xff]  ;;  %v393_v9 = vld [vmem:[%s8798_s3 + $0x18] sm:$0xff]  ;;  %s6154_s16 = smov 126   ;;  %s6155_s13 = smov 124  }
  0x59   : > { %434 = vrot.lane.b32.xlu1 %v413_v1, %s6151_s0  ;;  %v414_v2 = vld [vmem:[%s6322_s21 + $0x40] sm:$0xff]  ;;  %5989 = vset.pattern.permute.xlu0 %v8814_v7  ;;  %v6365_v11 = vand.u32 127, %v367_v10  ;;  %v379_v23 = vld [vmem:[%s8797_s2 + $0x8] sm:$0xff]  ;;  %v380_v24 = vld [vmem:[%s8797_s2 + $0x10] sm:$0xff]  ;;  %s6157_s17 = smov 120   ;;  %vm8841_vm10 = vcmask 64512  }
  0x5a   : > { %v412_v3 = vld [vmem:[%s6322_s21] sm:$0xff]  ;;  %5990 = vset.pattern.permute.xlu1 %v8814_v7  ;;  %v381_v25 = vld [vmem:[%s8797_s2 + $0x18] sm:$0xff]  ;;  %v383_v40 = vld [vmem:[%s8797_s2 + $0x28] sm:$0xff]  ;;  %vm1119_vm11 = vcmask 261120   ;;  %s6159_s15 = smov 113   ;;  %s6160_s25 = smov 114  }
  0x5b   : > { %v378_v4 = vld [vmem:[%s8797_s2] sm:$0xff]  ;;  %v6368_v12 = vand.u32 15, %v6365_v11  ;;  %v384_v41 = vld [vmem:[%s8797_s2 + $0x30] sm:$0xff]  ;;  %v385_v46 = vld [vmem:[%s8797_s2 + $0x38] sm:$0xff]  ;;  %s6161_s26 = smov 2   ;;  %s8809_s27 = smov 116  }
  0x5c   : > { %436 = vrot.lane.b32.xlu0 %v414_v2, %s6151_s0  ;;  %5591 = vmatprep.mubr.msk.f32.mxu0 %vm8822_vm0, %v378_v4  ;;  %v390_v6 = vld [vmem:[%s8798_s3] sm:$0xff]  ;;  %s8807_s11 = smov 4   ;;  %s8846_s19 = smov 8  }
  0x5d   : > { %432 = vrot.lane.b32.xlu1 %v412_v3, %s6151_s0  ;;  %vm8823_vm1 = vcmp.eq.s32.totalorder %v6368_v12, 15  ;;  %vm371_vm3 = vcmp.eq.s32.totalorder %v6368_v12, 0  ;;  %vm732_vm5 = vcmp.lt.s32.totalorder %v6368_v12, 15  ;;  %v382_v39 = vld [vmem:[%s8797_s2 + $0x20] sm:$0xff]  ;;  %vm751_vm6 = vcmp.lt.s32.totalorder %v6368_v12, 14 }
  0x5e   : > { %vm6373_vm2 = vmneg %vm8823_vm1  ;;  %vm770_vm8 = vcmp.lt.s32.totalorder %v6368_v12, 12  ;;  %vm8806_vm9 = vcmp.lt.s32.totalorder %v6368_v12, 8  ;;  %v6040_v19 = vld [vmem:[%s8797_s2 + $0x20] sm:$0xff] }
  0x5f   : > { %vm6396_vm4 = vmneg %vm371_vm3 }
  0x60   : > { %424 = vrot.lane.b32.xlu0 %v415_v0, %s6152_s9 }
  0x61   : > { %422 = vrot.lane.b32.xlu1 %v414_v2, %s6152_s9 }
  0x64   : > { %420 = vrot.lane.b32.xlu0 %v413_v1, %s6152_s9 }
  0x65   : > { %418 = vrot.lane.b32.xlu1 %v412_v3, %s6152_s9 }
  0x68   : > { %448 = vperm.xlu0 %5989, %v390_v6  }
  0x69   : > { %453 = vperm.xlu1 %5990, %v391_v5   ;;  %v8816_v5 = vmov 1.0  }
  0x6c   : > { %463 = vperm.xlu0 %5989, %v393_v9  }
  0x6d   : > { %458 = vperm.xlu1 %5990, %v392_v8  }
  0xca   : > { %v439_v14 = vpop.permute.xlu0 %438 }
  0xcb   : > { %v435_v15 = vpop.permute.xlu1 %434  ;;  %5567 = vmatprep.subr.msk.mxu0 %vm6373_vm2, %v439_v14 }
  0xcc   : > { %5568 = vmatpush3.msk.msra.mxu0 %vm6373_vm2, %v439_v14 }
  0xce   : > { %v437_v16 = vpop.permute.xlu0 %436 }
  0xcf   : > { %5569 = vmatprep.subr.msk.mxu0 %vm6373_vm2, %v437_v16  ;;  %v433_v17 = vpop.permute.xlu1 %432 }
  0xd0   : > { %5570 = vmatpush3.msk.msra.mxu0 %vm6373_vm2, %v437_v16 }
  0xd1   : > { %5571 = vmatprep.subr.msk.mxu0 %vm6373_vm2, %v435_v15 }
  0xd2   : > { %5572 = vmatpush3.msk.msra.mxu0 %vm6373_vm2, %v435_v15  ;;  %v425_v18 = vpop.permute.xlu0 %424 }
  0xd3   : > { %5573 = vmatprep.subr.msk.mxu0 %vm6373_vm2, %v433_v17  ;;  %v423_v20 = vpop.permute.xlu1 %422 }
  0xd4   : > { %5574 = vmatpush3.msk.msra.mxu0 %vm6373_vm2, %v433_v17 }
  0xd5   : > { %5575 = vmatprep.subr.mxu0 %v415_v0 }
  0xd6   : > { %5576 = vmatpush3.msra.mxu0 %v415_v0  ;;  %v421_v21 = vpop.permute.xlu0 %420 }
  0xd7   : > { %5577 = vmatprep.subr.mxu0 %v414_v2  ;;  %v419_v22 = vpop.permute.xlu1 %418 }
  0xd8   : > { %5578 = vmatpush3.msra.mxu0 %v414_v2  ;;  %v370_v2 = vshra.s32 %v6365_v11, 4 }
  0xd9   : > { %5579 = vmatprep.subr.mxu0 %v413_v1 }
  0xda   : > { %5580 = vmatpush3.msra.mxu0 %v413_v1 }
  0xdb   : > { %5581 = vmatprep.subr.mxu0 %v412_v3 }
  0xdc   : > { %5582 = vmatpush3.msra.mxu0 %v412_v3  ;;  %v6488_v3 = vshrl.u32 %v367_v10, 7 }
  0xdd   : > { %5583 = vmatprep.subr.msk.mxu0 %vm6396_vm4, %v425_v18 }
  0xde   : > { %5584 = vmatpush3.msk.msra.mxu0 %vm6396_vm4, %v425_v18  ;;  %vm6491_vm7 = vcmp.eq.s32.totalorder %v370_v2, %v6488_v3 }
  0xdf   : > { %5585 = vmatprep.subr.msk.mxu0 %vm6396_vm4, %v423_v20  ;;  %5609 = vmatprep.subr.msk.mxu1 %vm6491_vm7, %v8816_v5 }
  0xe0   : > { %5586 = vmatpush3.msk.msra.mxu0 %vm6396_vm4, %v423_v20  ;;  %5610 = vmatpush3.xpose.msk.msra.mxu1 %vm6491_vm7, %v8816_v5 }
  0xe1   : > { %5587 = vmatprep.subr.msk.mxu0 %vm6396_vm4, %v421_v21  ;;  %5617 = vmatprep.subr.msk.mxu1 %vm6491_vm7, %v8816_v5 }
  0xe2   : > { %5588 = vmatpush3.msk.msra.mxu0 %vm6396_vm4, %v421_v21 }
  0xe3   : > { %5589 = vmatprep.subr.msk.mxu0 %vm6396_vm4, %v419_v22  ;;  %v6428_v26 = vpop.permute.xlu0 %448 }
  0xe4   : > { %5590 = vmatpush3.msk.msra.mxu0 %vm6396_vm4, %v419_v22  ;;  %v6430_v27 = vpop.permute.xlu1 %453  ;;  %v396_v22 = vld [vmem:[%s8798_s3 + $0x30] sm:$0xff] }
  0xe5   : > { %5592 = vmatmul.mubr.msk.f32.vlgmr.msra.gmra.mxu0 %vm8822_vm0, %v379_v23  ;;  %v397_v23 = vld [vmem:[%s8798_s3 + $0x38] sm:$0xff] }
  0xe6   : > { %5594 = vmatprep.mubr.msk.f32.mxu0 %vm8822_vm0, %v380_v24  ;;  %v394_v24 = vld [vmem:[%s8798_s3 + $0x20] sm:$0xff] }
  0xe7   : > { %v6435_v32 = vpop.permute.xlu0 %463 }
  0xe8   : > { %v6439_v35 = vpop.permute.xlu1 %458 }
  0xe9   : > { %5595 = vmatmul.mubr.msk.f32.gmra.mxu0 %vm8822_vm0, %v381_v25  ;;  %v395_v25 = vld [vmem:[%s8798_s3 + $0x28] sm:$0xff] }
  0xea   : > { %5597 = vmatprep.mubr.msk.f32.mxu0 %vm8822_vm0, %v382_v39 }
  0xed   : > { %5598 = vmatmul.mubr.msk.f32.gmra.mxu0 %vm8822_vm0, %v383_v40 }
  0xee   : > { %5600 = vmatprep.mubr.msk.f32.mxu0 %vm8822_vm0, %v384_v41 }
  0xf1   : > { %5601 = vmatmul.mubr.msk.f32.gmra.mxu0 %vm8822_vm0, %v385_v46 }
 0x1a5   : > { %v5593_v28 = vpop.f32.mrf.mxu0 }
 0x1a6   : > { %v615_v29 = vadd.f32 %v5593_v28, %v6430_v27 }
 0x1a7   : > { %v609_v30 = vpop.f32.mrf.mxu0 }
 0x1a8   : > { %v610_v31 = vadd.f32 %v609_v30, %v6428_v26  ;;  %735 = vrot.lane.b32.xlu0 %v615_v29, %s6151_s0 }
 0x1a9   : > { %v5596_v33 = vpop.f32.mrf.mxu0 }
 0x1aa   : > { %v625_v34 = vadd.f32 %v5596_v33, %v6435_v32  ;;  %733 = vrot.lane.b32.xlu1 %v610_v31, %s6151_s0 }
 0x1ab   : > { %v619_v36 = vpop.f32.mrf.mxu0 }
 0x1ac   : > { %v620_v37 = vadd.f32 %v619_v36, %v6439_v35  ;;  %739 = vrot.lane.b32.xlu0 %v625_v34, %s6151_s0 }
 0x1ad   : > { %v5599_v33 = vpop.f32.mrf.mxu0 }
 0x1ae   : > { %737 = vrot.lane.b32.xlu1 %v620_v37, %s6151_s0 }
 0x1af   : > { %v629_v41 = vpop.f32.mrf.mxu0 }
 0x21a   : > { %v736_v38 = vpop.permute.xlu0 %735 }
 0x21b   : > { %v744_v42 = vsel %vm732_vm5, %v736_v38, -inf }
 0x21c   : > { %v748_v43 = vmax.f32 %v615_v29, %v744_v42  ;;  %v734_v44 = vpop.permute.xlu1 %733 }
 0x21d   : > { %v743_v45 = vsel %vm732_vm5, %v734_v44, -inf  ;;  %v5602_v44 = vpop.f32.mrf.mxu0 }
 0x21e   : > { %v747_v47 = vmax.f32 %v610_v31, %v743_v45  ;;  %754 = vrot.lane.b32.xlu0 %v748_v43, %s6154_s16  ;;  %v740_v48 = vpop.permute.xlu0 %739 }
 0x21f   : > { %v746_v49 = vsel %vm732_vm5, %v740_v48, -inf  ;;  %v639_v45 = vpop.f32.mrf.mxu0 }
 0x220   : > { %v750_v50 = vmax.f32 %v625_v34, %v746_v49  ;;  %752 = vrot.lane.b32.xlu1 %v747_v47, %s6154_s16  ;;  %v738_v51 = vpop.permute.xlu1 %737 }
 0x221   : > { %v745_v52 = vsel %vm732_vm5, %v738_v51, -inf }
 0x222   : > { %v749_v53 = vmax.f32 %v620_v37, %v745_v52  ;;  %758 = vrot.lane.b32.xlu0 %v750_v50, %s6154_s16 }
 0x224   : > { %756 = vrot.lane.b32.xlu1 %v749_v53, %s6154_s16 }
 0x290   : > { %v755_v54 = vpop.permute.xlu0 %754 }
 0x291   : > { %v763_v55 = vsel %vm751_vm6, %v755_v54, -inf }
 0x292   : > { %v767_v56 = vmax.f32 %v748_v43, %v763_v55  ;;  %v753_v57 = vpop.permute.xlu1 %752 }
 0x293   : > { %v762_v58 = vsel %vm751_vm6, %v753_v57, -inf }
 0x294   : > { %v766_v59 = vmax.f32 %v747_v47, %v762_v58  ;;  %773 = vrot.lane.b32.xlu0 %v767_v56, %s6155_s13  ;;  %v759_v60 = vpop.permute.xlu0 %758 }
 0x295   : > { %v765_v61 = vsel %vm751_vm6, %v759_v60, -inf }
 0x296   : > { %v769_v62 = vmax.f32 %v750_v50, %v765_v61  ;;  %771 = vrot.lane.b32.xlu1 %v766_v59, %s6155_s13  ;;  %v757_v63 = vpop.permute.xlu1 %756 }
 0x297   : > { %v764_v0 = vsel %vm751_vm6, %v757_v63, -inf }
 0x298   : > { %v768_v1 = vmax.f32 %v749_v53, %v764_v0  ;;  %777 = vrot.lane.b32.xlu0 %v769_v62, %s6155_s13 }
 0x29a   : > { %775 = vrot.lane.b32.xlu1 %v768_v1, %s6155_s13 }
 0x306   : > { %v774_v6 = vpop.permute.xlu0 %773 }
 0x307   : > { %v782_v8 = vsel %vm770_vm8, %v774_v6, -inf }
 0x308   : > { %v786_v9 = vmax.f32 %v767_v56, %v782_v8  ;;  %v772_v10 = vpop.permute.xlu1 %771 }
 0x309   : > { %v781_v11 = vsel %vm770_vm8, %v772_v10, -inf }
 0x30a   : > { %v785_v14 = vmax.f32 %v766_v59, %v781_v11  ;;  %792 = vrot.lane.b32.xlu0 %v786_v9, %s6157_s17  ;;  %v778_v15 = vpop.permute.xlu0 %777 }
 0x30b   : > { %v784_v16 = vsel %vm770_vm8, %v778_v15, -inf }
 0x30c   : > { %v788_v17 = vmax.f32 %v769_v62, %v784_v16  ;;  %790 = vrot.lane.b32.xlu1 %v785_v14, %s6157_s17  ;;  %v776_v18 = vpop.permute.xlu1 %775 }
 0x30d   : > { %v783_v20 = vsel %vm770_vm8, %v776_v18, -inf }
 0x30e   : > { %v787_v21 = vmax.f32 %v768_v1, %v783_v20  ;;  %796 = vrot.lane.b32.xlu0 %v788_v17, %s6157_s17 }
 0x310   : > { %794 = vrot.lane.b32.xlu1 %v787_v21, %s6157_s17 }
 0x312   : > { %478 = vperm.xlu0 %5989, %v396_v22  }
 0x314   : > { %483 = vperm.xlu1 %5990, %v397_v23  }
 0x316   : > { %468 = vperm.xlu0 %5989, %v394_v24  }
 0x318   : > { %473 = vperm.xlu1 %5990, %v395_v25  }
 0x37c   : > { %v793_v28 = vpop.permute.xlu0 %792 }
 0x37d   : > { %v801_v29 = vsel %vm8806_vm9, %v793_v28, -inf }
 0x37e   : > { %v791_v30 = vpop.permute.xlu1 %790  ;;  %v6536_v37 = vmax.f32 %v786_v9, %v801_v29 }
 0x37f   : > { %v800_v31 = vsel %vm8806_vm9, %v791_v30, -inf }
 0x380   : > { %v797_v34 = vpop.permute.xlu0 %796  ;;  %v6534_v36 = vmax.f32 %v785_v14, %v800_v31 }
 0x381   : > { %v803_v38 = vsel %vm8806_vm9, %v797_v34, -inf }
 0x382   : > { %5611 = vmatprep.mubr.msk.f32.mxu1 %vm371_vm3, %v6534_v36  ;;  %v795_v39 = vpop.permute.xlu1 %794  ;;  %v6553_v43 = vmax.f32 %v788_v17, %v803_v38 }
 0x383   : > { %v802_v40 = vsel %vm8806_vm9, %v795_v39, -inf  ;;  %5612 = vmatmul.mubr.msk.f32.vlgmr.msra.gmra.mxu1 %vm371_vm3, %v6536_v37 }
 0x384   : > { %v6548_v42 = vmax.f32 %v787_v21, %v802_v40  ;;  %5618 = vmatpush3.msk.msra.mxu1 %vm6491_vm7, %v8816_v5 }
 0x386   : > { %5614 = vmatprep.mubr.msk.f32.mxu1 %vm371_vm3, %v6548_v42 }
 0x387   : > { %5615 = vmatmul.mubr.msk.f32.gmra.mxu1 %vm371_vm3, %v6553_v43 }
 0x38d   : > { %v6561_v46 = vpop.permute.xlu0 %478 }
 0x38e   : > { %v6564_v47 = vadd.f32 %v639_v45, %v6561_v46 }
 0x38f   : > { %v6566_v48 = vpop.permute.xlu1 %483 }
 0x390   : > { %684 = vrot.lane.b32.xlu0 %v6564_v47, %s6151_s0  ;;  %v6571_v49 = vadd.f32 %v5602_v44, %v6566_v48  ;;  %v8818_v44 = vmov 0.0  }
 0x391   : > { %v6573_v50 = vpop.permute.xlu0 %468  ;;  %5635 = vmatprep.subr.mxu0 %v8818_v44 }
 0x392   : > { %686 = vrot.lane.b32.xlu1 %v6571_v49, %s6151_s0  ;;  %v6578_v51 = vadd.f32 %v629_v41, %v6573_v50 }
 0x393   : > { %v6580_v52 = vpop.permute.xlu1 %473 }
 0x394   : > { %680 = vrot.lane.b32.xlu0 %v6578_v51, %s6151_s0  ;;  %v6585_v53 = vadd.f32 %v5599_v33, %v6580_v52 }
 0x396   : > { %682 = vrot.lane.b32.xlu1 %v6585_v53, %s6151_s0 }
 0x402   : > { %v6589_v54 = vpop.permute.xlu0 %684 }
 0x403   : > { %v810_v55 = vsel %vm732_vm5, %v6589_v54, -inf }
 0x404   : > { %v6594_v56 = vpop.permute.xlu1 %686  ;;  %v814_v57 = vmax.f32 %v6564_v47, %v810_v55 }
 0x405   : > { %v811_v58 = vsel %vm732_vm5, %v6594_v56, -inf }
 0x406   : > { %820 = vrot.lane.b32.xlu0 %v814_v57, %s6154_s16  ;;  %v6601_v59 = vpop.permute.xlu0 %680  ;;  %v815_v60 = vmax.f32 %v6571_v49, %v811_v58  ;;  %v691_v58 = vsel %vm8823_vm1, -inf, %v6594_v56 }
 0x407   : > { %v808_v61 = vsel %vm732_vm5, %v6601_v59, -inf }
 0x408   : > { %822 = vrot.lane.b32.xlu1 %v815_v60, %s6154_s16  ;;  %v6608_v62 = vpop.permute.xlu1 %682  ;;  %v812_v63 = vmax.f32 %v6578_v51, %v808_v61 }
 0x409   : > { %v809_v0 = vsel %vm732_vm5, %v6608_v62, -inf }
 0x40a   : > { %816 = vrot.lane.b32.xlu0 %v812_v63, %s6154_s16  ;;  %v813_v1 = vmax.f32 %v6585_v53, %v809_v0 }
 0x40c   : > { %818 = vrot.lane.b32.xlu1 %v813_v1, %s6154_s16 }
 0x443   : > { %v5613_v2 = vpop.f32.mrf.mxu1 }
 0x445   : > { %v994_v6 = vpop.f32.mrf.mxu1 }
 0x446   : > { %5619 = vmatprep.mubr.msk.f32.mxu1 %vm8841_vm10, %v994_v6 }
 0x447   : > { %v5616_v8 = vpop.f32.mrf.mxu1  ;;  %5620 = vmatmul.mubr.msk.f32.vlgmr.msra.gmra.mxu1 %vm8841_vm10, %v5613_v2 }
 0x449   : > { %v1004_v9 = vpop.f32.mrf.mxu1 }
 0x44a   : > { %5622 = vmatprep.mubr.msk.f32.mxu1 %vm8841_vm10, %v1004_v9 }
 0x44b   : > { %5623 = vmatmul.mubr.msk.f32.gmra.mxu1 %vm8841_vm10, %v5616_v8 }
 0x44c   : > { %1187 = vmatprep.mubr.f32.mxu1 %v8818_v44 }
 0x478   : > { %v821_v10 = vpop.permute.xlu0 %820 }
 0x479   : > { %v826_v11 = vsel %vm751_vm6, %v821_v10, -inf }
 0x47a   : > { %v830_v14 = vmax.f32 %v814_v57, %v826_v11  ;;  %v823_v15 = vpop.permute.xlu1 %822  ;;  %v690_v11 = vsel %vm8823_vm1, -inf, %v6589_v54 }
 0x47b   : > { %v827_v16 = vsel %vm751_vm6, %v823_v15, -inf }
 0x47c   : > { %v831_v17 = vmax.f32 %v815_v60, %v827_v16  ;;  %836 = vrot.lane.b32.xlu0 %v830_v14, %s6155_s13  ;;  %v817_v18 = vpop.permute.xlu0 %816 }
 0x47d   : > { %v824_v20 = vsel %vm751_vm6, %v817_v18, -inf  ;;  %v689_v18 = vsel %vm8823_vm1, -inf, %v6608_v62 }
 0x47e   : > { %v828_v21 = vmax.f32 %v812_v63, %v824_v20  ;;  %838 = vrot.lane.b32.xlu1 %v831_v17, %s6155_s13  ;;  %v819_v22 = vpop.permute.xlu1 %818 }
 0x47f   : > { %v825_v23 = vsel %vm751_vm6, %v819_v22, -inf }
 0x480   : > { %v829_v24 = vmax.f32 %v813_v1, %v825_v23  ;;  %832 = vrot.lane.b32.xlu0 %v828_v21, %s6155_s13 }
 0x482   : > { %834 = vrot.lane.b32.xlu1 %v829_v24, %s6155_s13 }
 0x484   : > { %672 = vrot.lane.b32.xlu0 %v6564_v47, %s6152_s9 }
 0x486   : > { %674 = vrot.lane.b32.xlu1 %v6571_v49, %s6152_s9 }
 0x488   : > { %670 = vrot.lane.b32.xlu0 %v6585_v53, %s6152_s9 }
 0x48c   : > { %668 = vrot.lane.b32.xlu0 %v6578_v51, %s6152_s9 }
 0x4ee   : > { %v837_v25 = vpop.permute.xlu0 %836 }
 0x4ef   : > { %v842_v33 = vsel %vm770_vm8, %v837_v25, -inf }
 0x4f0   : > { %v839_v28 = vpop.permute.xlu1 %838  ;;  %v846_v40 = vmax.f32 %v830_v14, %v842_v33 }
 0x4f1   : > { %v843_v29 = vsel %vm770_vm8, %v839_v28, -inf }
 0x4f2   : > { %v847_v30 = vmax.f32 %v831_v17, %v843_v29  ;;  %v833_v31 = vpop.permute.xlu0 %832 }
 0x4f3   : > { %v840_v34 = vsel %vm770_vm8, %v833_v31, -inf }
 0x4f4   : > { %v6647_v38 = vmax.f32 %v828_v21, %v840_v34  ;;  %854 = vrot.lane.b32.xlu1 %v847_v30, %s6157_s17  ;;  %v835_v39 = vpop.permute.xlu1 %834  ;;  %v923_v21 = vsel %vm371_vm3, %v6553_v43, 0.0  ;;  %v922_v43 = vsel %vm371_vm3, %v6548_v42, 0.0 }
 0x4f5   : > { %v841_v41 = vsel %vm770_vm8, %v835_v39, -inf }
 0x4f6   : > { %848 = vrot.lane.b32.xlu0 %v6647_v38, %s6157_s17  ;;  %v845_v45 = vmax.f32 %v829_v24, %v841_v41  ;;  %v673_v6 = vpop.permute.xlu0 %672 }
 0x4f7   : > { %v678_v9 = vsel %vm371_vm3, -inf, %v673_v6 }
 0x4f8   : > { %852 = vrot.lane.b32.xlu1 %v846_v40, %s6157_s17  ;;  %v675_v55 = vpop.permute.xlu1 %674  ;;  %v694_v14 = vmax.f32 %v678_v9, %v690_v11 }
 0x4f9   : > { %v679_v57 = vsel %vm371_vm3, -inf, %v675_v55 }
 0x4fa   : > { %v695_v60 = vmax.f32 %v679_v57, %v691_v58  ;;  %v671_v8 = vpop.permute.xlu0 %670  ;;  %v698_v22 = vmax.f32 %v6564_v47, %v694_v14  ;;  %v688_v47 = vsel %vm8823_vm1, -inf, %v6601_v59  ;;  %v921_v59 = vsel %vm371_vm3, %v6536_v37, 0.0  ;;  %v402_v37 = vld [vmem:[%s8799_s4] sm:$0xff] }
 0x4fb   : > { %v677_v15 = vsel %vm371_vm3, -inf, %v671_v8 }
 0x4fc   : > { %850 = vrot.lane.b32.xlu1 %v845_v45, %s6157_s17  ;;  %v699_v0 = vmax.f32 %v6571_v49, %v695_v60  ;;  %v693_v54 = vmax.f32 %v677_v15, %v689_v18  ;;  %v6749_v18 = vld [vmem:[%s8797_s2 + $0x50] sm:$0xff] }
 0x4fe   : > { %v669_v10 = vpop.permute.xlu0 %668  ;;  %v697_v34 = vmax.f32 %v6585_v53, %v693_v54 }
 0x4ff   : > { %v676_v25 = vsel %vm371_vm3, -inf, %v669_v10 }
 0x500   : > { %v692_v33 = vmax.f32 %v676_v25, %v688_v47  ;;  %v400_v47 = vld [vmem:[%s8798_s3 + $0x50] sm:$0xff] }
 0x502   : > { %v696_v53 = vmax.f32 %v6578_v51, %v692_v33  ;;  %v417_v51 = vld [vmem:[%s6328_s23 + $0x1] sm:$0x1]  ;;  %v401_v33 = vld [vmem:[%s8798_s3 + $0x58] sm:$0xff] }
 0x503   : > { %vm1205_vm14 = vcmp.ne.f32.partialorder %v417_v51, 0.0 }
 0x504   : > { %v1206_v6 = vsel %vm1205_vm14, 1, %v8814_v7  ;;  %vm6165_vm14 = vmmov 0  }
 0x507   : > { %v5621_v61 = vpop.f32.mrf.mxu1 }
 0x508   : > { %v1116_v42 = vmul.f32 %v5621_v61, %v697_v34  ;;  %v398_v34 = vld [vmem:[%s8798_s3 + $0x40] sm:$0xff] }
 0x509   : > { %v1092_v63 = vpop.f32.mrf.mxu1 }
 0x50a   : > { %v1115_v61 = vmul.f32 %v1092_v63, %v696_v53  ;;  %v6728_v63 = vsub.s32 0, %v6488_v3  ;;  %v6739_v3 = vld [vmem:[%s8797_s2 + $0x40] sm:$0xff] }
 0x50b   : > { %v5624_v1 = vpop.f32.mrf.mxu1  ;;  %5603 = vmatprep.mubr.msk.f32.mxu0 %vm8822_vm0, %v6739_v3 }
 0x50c   : > { %v1118_v2 = vmul.f32 %v5624_v1, %v699_v0  ;;  %8861 = vst [vmem:[#allocation9_spill] sm:$0xff] %v6728_v63  ;;  %v1210_v9 = vrot.slane %v1206_v6, %v6728_v63 }
 0x50d   : > { %v1102_v20 = vpop.f32.mrf.mxu1 }
 0x50e   : > { %1147 = vmatprep.subr.mxu1 %v1118_v2 }
 0x566   : > { %v855_v56 = vpop.permute.xlu1 %854 }
 0x567   : > { %v859_v49 = vsel %vm8806_vm9, %v855_v56, -inf }
 0x568   : > { %v863_v16 = vmax.f32 %v847_v30, %v859_v49  ;;  %v849_v17 = vpop.permute.xlu0 %848  ;;  %v1117_v30 = vmul.f32 %v1102_v20, %v698_v22  ;;  %v6760_v20 = vld [vmem:[%s8797_s2 + $0x58] sm:$0xff] }
 0x569   : > { %v856_v29 = vsel %vm8806_vm9, %v849_v17, -inf  ;;  %v6744_v17 = vld [vmem:[%s8797_s2 + $0x48] sm:$0xff] }
 0x56a   : > { %v927_v23 = vsel %vm371_vm3, %v863_v16, 0.0  ;;  %v853_v24 = vpop.permute.xlu1 %852  ;;  %v860_v39 = vmax.f32 %v6647_v38, %v856_v29  ;;  %5604 = vmatmul.mubr.msk.f32.gmra.mxu0 %vm8822_vm0, %v6744_v17 }
 0x56b   : > { %v1114_v28 = vmul.f32 %v927_v23, %v923_v21  ;;  %v858_v62 = vsel %vm8806_vm9, %v853_v24, -inf  ;;  %5606 = vmatprep.mubr.msk.f32.mxu0 %vm8822_vm0, %v6749_v18 }
 0x56c   : > { %v862_v31 = vmax.f32 %v846_v40, %v858_v62  ;;  %v924_v38 = vsel %vm371_vm3, %v860_v39, 0.0  ;;  %v399_v39 = vld [vmem:[%s8798_s3 + $0x48] sm:$0xff] }
 0x56d   : > { %1148 = vmatpush1.msra.mxu1 %v1114_v28 }
 0x56e   : > { %v926_v41 = vsel %vm371_vm3, %v862_v31, 0.0  ;;  %1149 = vmatprep.subr.mxu1 %v1117_v30  ;;  %v851_v55 = vpop.permute.xlu1 %850  ;;  %5607 = vmatmul.mubr.msk.f32.gmra.mxu0 %vm8822_vm0, %v6760_v20 }
 0x56f   : > { %v1113_v40 = vmul.f32 %v926_v41, %v922_v43  ;;  %v857_v57 = vsel %vm8806_vm9, %v851_v55, -inf  ;;  %vm1211_vm9 = vcmp.eq.s32.totalorder %v1210_v9, 1  ;;  %5643 = vmatprep.mubr.msk.f32.mxu0 %vm6165_vm14, %v8818_v44 }
 0x570   : > { %v861_v58 = vmax.f32 %v845_v45, %v857_v57  ;;  %v920_v45 = vsel %vm371_vm3, %v6534_v36, 0.0  ;;  %v6721_v36 = vld [vmem:[%s6328_s23] sm:$0x1] }
 0x571   : > { %1150 = vmatpush1.msra.mxu1 %v1113_v40  ;;  %v1111_v1 = vmul.f32 %v924_v38, %v920_v45  ;;  %vm1196_vm12 = vcmp.ne.f32.partialorder %v6721_v36, 0.0 }
 0x572   : > { %v925_v60 = vsel %vm371_vm3, %v861_v58, 0.0  ;;  %1151 = vmatprep.subr.mxu1 %v1116_v42  ;;  %vm1197_vm13 = vmand %vm371_vm3, %vm1196_vm12  ;;  %vm8813_vm12 = vcmp.ge.s32.totalorder %v6368_v12, 2 }
 0x573   : > { %v1112_v0 = vmul.f32 %v925_v60, %v921_v59  ;;  %v1198_v2 = vsel %vm1197_vm13, 1, %v8814_v7  ;;  %vm8812_vm13 = vcmp.ge.s32.totalorder %v6368_v12, 4 }
 0x574   : > { %v1202_v8 = vrot.slane %v1198_v2, %v6728_v63 }
 0x575   : > { %1152 = vmatpush1.msra.mxu1 %v1112_v0 }
 0x576   : > { %1153 = vmatprep.subr.mxu1 %v1115_v61  ;;  %vm1203_vm15 = vcmp.eq.s32.totalorder %v1202_v8, 1 }
 0x577   : > { %1154 = vmatpush1.msra.mxu1 %v1111_v1 }
 0x578   : > { %5200 = vmatmul.mubr.msk.f32.vlgmr.msra.gmra.mxu1 %vm1119_vm11, %v402_v37  ;;  %5625 = vmatprep.subr.mxu1 %v8818_v44 }
 0x579   : > { %5626 = vmatpush3.xpose.msk.msra.mxu1 %vm6491_vm7, %v8816_v5  ;;  %5627 = vmatprep.mubr.msk.f32.mxu1 %vm6165_vm14, %v8818_v44 }
 0x57a   : > { %5630 = vmatprep.subr.mxu1 %v8818_v44 }
 0x62a   : > { %v5605_v41 = vpop.f32.mrf.mxu0 }
 0x62c   : > { %v649_v58 = vpop.f32.mrf.mxu0 }
 0x62e   : > { %v5608_v60 = vpop.f32.mrf.mxu0 }
 0x630   : > { %v659_v61 = vpop.f32.mrf.mxu0 }
 0x638   : > { %v1189_v10 = vpop.f32.mrf.mxu1 }
 0x639   : > { %v1194_v11 = vmul.f32 0.17677669, %v1189_v10 }
 0x63a   : > { %v1191_v14 = vpop.f32.mrf.mxu1 }
 0x63b   : > { %v1195_v56 = vmul.f32 0.17677669, %v1191_v14  ;;  %v1204_v15 = vsel %vm1203_vm15, %v1194_v11, -inf  ;;  %vm8811_vm15 = vcmp.ge.s32.totalorder %v6368_v12, 8 }
 0x63d   : > { %v1212_v49 = vsel %vm1211_vm9, %v1195_v56, -inf  ;;  %vm8840_vm9 = vcmp.ge.s32.totalorder %v6368_v12, 1 }
 0x63e   : > { %v1213_v16 = vmax.f32 %v1204_v15, %v1212_v49 }
 0x640   : > { %1217 = vrot.lane.b32.xlu0 %v1213_v16, %s6159_s15  ;;  %1215 = vrot.lane.b32.xlu1 %v1213_v16, %s6152_s9 }
 0x6b2   : > { %v1218_v21 = vpop.permute.xlu0 %1217  ;;  %v1216_v54 = vpop.permute.xlu1 %1215 }
 0x6b3   : > { %v1221_v22 = vsel %vm8840_vm9, %v1216_v54, %v1218_v21 }
 0x6b4   : > { %v1222_v23 = vmax.f32 %v1213_v16, %v1221_v22 }
 0x6b6   : > { %1226 = vrot.lane.b32.xlu0 %v1222_v23, %s6160_s25  ;;  %1224 = vrot.lane.b32.xlu1 %v1222_v23, %s6161_s26 }
 0x728   : > { %v1227_v24 = vpop.permute.xlu0 %1226  ;;  %v1225_v25 = vpop.permute.xlu1 %1224 }
 0x729   : > { %v1230_v28 = vsel %vm8813_vm12, %v1225_v25, %v1227_v24 }
 0x72a   : > { %v1231_v29 = vmax.f32 %v1222_v23, %v1230_v28 }
 0x72c   : > { %1235 = vrot.lane.b32.xlu0 %v1231_v29, %s8809_s27  ;;  %1233 = vrot.lane.b32.xlu1 %v1231_v29, %s8807_s11  ;;  %s8873_s27 = sadd.s32 4294967295, %s6144_s30  }
 0x72d   : > { %s5159_s11 = sshll.u32 %s8873_s27, 2 }
 0x72e   : > { %p362_p7 = scmp.lt.s32.totalorder %s5159_s11, 7 }
 0x730   : > { %s9014_s11 = smov (!%p362_p7, %s5159_s11), 7 }
 0x731   : > { %s5160_s20 = sshll.u32 %s9014_s11, 3  ;;  %s8883_s11 = smov 116  }
 0x732   : > { %s7193_s24 = scalar_lea.vmem %s8803_s8, %s5160_s20  ;;  %s8884_s20 = smov 4  }
 0x79e   : > { %v1236_v62 = vpop.permute.xlu0 %1235  ;;  %v1234_v30 = vpop.permute.xlu1 %1233 }
 0x79f   : > { %v1239_v31 = vsel %vm8812_vm13, %v1234_v30, %v1236_v62 }
 0x7a0   : > { %v1240_v43 = vmax.f32 %v1231_v29, %v1239_v31 }
 0x7a2   : > { %1244 = vrot.lane.b32.xlu0 %v1240_v43, %s6157_s17  ;;  %1242 = vrot.lane.b32.xlu1 %v1240_v43, %s8846_s19 }
 0x7a6   : > { %498 = vperm.xlu0 %5989, %v400_v47   ;;  %503 = vperm.xlu1 %5990, %v401_v33  }
 0x7aa   : > { %488 = vperm.xlu0 %5989, %v398_v34   ;;  %493 = vperm.xlu1 %5990, %v399_v39  }
 0x814   : > { %v1245_v55 = vpop.permute.xlu0 %1244  ;;  %v1243_v40 = vpop.permute.xlu1 %1242 }
 0x815   : > { %v1248_v57 = vsel %vm8811_vm15, %v1243_v40, %v1245_v55 }
 0x816   : > { %v1249_v42 = vmax.f32 %v1240_v43, %v1248_v57 }
 0x818   : > { %v1250_v59 = vmax.f32 %v1249_v42, -1e+30 }
 0x81a   : > { %v1251_v53 = vsub.f32 %v1204_v15, %v1250_v59  ;;  %v1254_v38 = vsub.f32 %v1212_v49, %v1250_v59 }
 0x81c   : > { %v1252_v0 = vmul.f32 1.442695, %v1251_v53  ;;  %v1255_v45 = vmul.f32 1.442695, %v1254_v38 }
 0x81e   : > { %5991 = vpow2.f32 %v1252_v0 }
 0x81f   : > { %5993 = vpow2.f32 %v1255_v45 }
 0x821   : > { %v6798_v1 = vpop.permute.xlu0 %498  ;;  %v6800_v37 = vpop.permute.xlu1 %503 }
 0x822   : > { %8862 = vst [vmem:[#allocation10_spill] sm:$0xff] %v6798_v1  ;;  %8863 = vst [vmem:[#allocation11_spill] sm:$0xff] %v6800_v37  ;;  %v6803_v51 = vadd.f32 %v659_v61, %v6798_v1  ;;  %v6806_v2 = vadd.f32 %v5608_v60, %v6800_v37  ;;  %v6894_v61 = vld [vmem:[%s6322_s21 + $0x68] sm:$0xff] }
 0x824   : > { %716 = vrot.lane.b32.xlu0 %v6803_v51, %s6151_s0  ;;  %718 = vrot.lane.b32.xlu1 %v6806_v2, %s6151_s0 }
 0x825   : > { %v6812_v6 = vpop.permute.xlu0 %488  ;;  %v6814_v8 = vpop.permute.xlu1 %493 }
 0x826   : > { %8864 = vst [vmem:[#allocation12_spill] sm:$0xff] %v6812_v6  ;;  %8865 = vst [vmem:[#allocation13_spill] sm:$0xff] %v6814_v8  ;;  %v6817_v9 = vadd.f32 %v649_v58, %v6812_v6  ;;  %v6820_v10 = vadd.f32 %v5605_v41, %v6814_v8 }
 0x828   : > { %712 = vrot.lane.b32.xlu0 %v6817_v9, %s6151_s0  ;;  %714 = vrot.lane.b32.xlu1 %v6820_v10, %s6151_s0 }
 0x82b   : > { %v6826_v11 = vpop.eup %5991 }
 0x82c   : > { %v6828_v14 = vpop.eup %5993 }
 0x82d   : > { %v1257_v56 = vadd.f32 %v6828_v14, %v6826_v11 }
 0x82f   : > { %5628 = vmatmul.mubr.f32.vlgmr.msra.gmra.mxu1 %v1257_v56 }
 0x830   : > { %5631 = vmatpush3.msk.msra.mxu1 %vm6491_vm7, %v8816_v5  ;;  %5632 = vmatprep.mubr.msk.f32.mxu1 %vm6165_vm14, %v8818_v44 }
 0x896   : > { %v6837_v15 = vpop.permute.xlu0 %716  ;;  %v6839_v49 = vpop.permute.xlu1 %718 }
 0x897   : > { %v866_v16 = vsel %vm732_vm5, %v6837_v15, -inf  ;;  %v867_v21 = vsel %vm732_vm5, %v6839_v49, -inf }
 0x898   : > { %v870_v54 = vmax.f32 %v6803_v51, %v866_v16  ;;  %v871_v22 = vmax.f32 %v6806_v2, %v867_v21  ;;  %v6901_v16 = vld [vmem:[%s6322_s21 + $0x28] sm:$0xff] }
 0x89a   : > { %876 = vrot.lane.b32.xlu0 %v870_v54, %s6154_s16  ;;  %v6850_v23 = vpop.permute.xlu0 %712  ;;  %878 = vrot.lane.b32.xlu1 %v871_v22, %s6154_s16  ;;  %v6853_v24 = vpop.permute.xlu1 %714 }
 0x89b   : > { %v864_v25 = vsel %vm732_vm5, %v6850_v23, -inf  ;;  %v865_v28 = vsel %vm732_vm5, %v6853_v24, -inf }
 0x89c   : > { %v868_v29 = vmax.f32 %v6817_v9, %v864_v25  ;;  %v869_v62 = vmax.f32 %v6820_v10, %v865_v28 }
 0x89e   : > { %872 = vrot.lane.b32.xlu0 %v868_v29, %s6154_s16  ;;  %874 = vrot.lane.b32.xlu1 %v869_v62, %s6154_s16 }
 0x8ef   : > { %v1324_v30 = vpop.f32.mrf.mxu1 }
 0x8f0   : > { %5633 = vmatmul.mubr.msk.f32.vlgmr.msra.gmra.mxu1 %vm8841_vm10, %v1324_v30  ;;  %v6931_v30 = vld [vmem:[%s6322_s21 + $0x8] sm:$0xff] }
 0x8f1   : > { %v5629_v31 = vpop.f32.mrf.mxu1  ;;  %1490 = vmatprep.mubr.f32.mxu1 %v8818_v44 }
 0x90c   : > { %v877_v43 = vpop.permute.xlu0 %876  ;;  %v879_v47 = vpop.permute.xlu1 %878 }
 0x90d   : > { %v882_v33 = vsel %vm751_vm6, %v877_v43, -inf  ;;  %v883_v34 = vsel %vm751_vm6, %v879_v47, -inf }
 0x90e   : > { %v886_v39 = vmax.f32 %v870_v54, %v882_v33  ;;  %v887_v41 = vmax.f32 %v871_v22, %v883_v34  ;;  %v1409_v34 = vrot.slane %v6721_v36, %v6728_v63  ;;  %v404_v36 = vld [vmem:[%s8800_s5 + $0x8] sm:$0xff] }
 0x910   : > { %892 = vrot.lane.b32.xlu0 %v886_v39, %s6155_s13  ;;  %v873_v55 = vpop.permute.xlu0 %872  ;;  %894 = vrot.lane.b32.xlu1 %v887_v41, %s6155_s13  ;;  %v875_v40 = vpop.permute.xlu1 %874 }
 0x911   : > { %v880_v57 = vsel %vm751_vm6, %v873_v55, -inf  ;;  %v881_v42 = vsel %vm751_vm6, %v875_v40, -inf }
 0x912   : > { %v884_v58 = vmax.f32 %v868_v29, %v880_v57  ;;  %v885_v59 = vmax.f32 %v869_v62, %v881_v42  ;;  %v6926_v62 = vld [vmem:[%s6322_s21 + $0x48] sm:$0xff] }
 0x914   : > { %888 = vrot.lane.b32.xlu0 %v884_v58, %s6155_s13  ;;  %890 = vrot.lane.b32.xlu1 %v885_v59, %s6155_s13 }
 0x918   : > { %706 = vrot.lane.b32.xlu1 %v6806_v2, %s6152_s9 }
 0x91c   : > { %704 = vrot.lane.b32.xlu1 %v6803_v51, %s6152_s9 }
 0x920   : > { %702 = vrot.lane.b32.xlu1 %v6820_v10, %s6152_s9 }
 0x924   : > { %700 = vrot.lane.b32.xlu1 %v6817_v9, %s6152_s9 }
 0x928   : > { %1717 = vrot.lane.b32.xlu1 %v6894_v61, %s6151_s0 }
 0x92c   : > { %1713 = vrot.lane.b32.xlu1 %v6901_v16, %s6151_s0 }
 0x930   : > { %1705 = vrot.lane.b32.xlu1 %v6894_v61, %s6152_s9 }
 0x934   : > { %1701 = vrot.lane.b32.xlu1 %v6901_v16, %s6152_s9 }
 0x982   : > { %v893_v53 = vpop.permute.xlu0 %892  ;;  %v895_v38 = vpop.permute.xlu1 %894 }
 0x983   : > { %v899_v60 = vsel %vm770_vm8, %v895_v38, -inf  ;;  %v898_v45 = vsel %vm770_vm8, %v893_v53, -inf  ;;  %v6976_v53 = vld [vmem:[%s8801_s6 + $0x10] sm:$0xff]  ;;  %v6984_v38 = vld [vmem:[%s8801_s6 + $0x8] sm:$0xff] }
 0x984   : > { %v6889_v0 = vmax.f32 %v887_v41, %v899_v60  ;;  %v6903_v21 = vmax.f32 %v886_v39, %v898_v45  ;;  %8866 = vst [vmem:[#allocation14_spill] sm:$0xff] %v6984_v38  ;;  %v6992_v60 = vld [vmem:[%s8801_s6] sm:$0xff] }
 0x985   : > { %8867 = vst [vmem:[#allocation15_spill] sm:$0xff] %v6992_v60 }
 0x986   : > { %910 = vrot.lane.b32.xlu0 %v6889_v0, %s6157_s17  ;;  %v891_v56 = vpop.permute.xlu1 %890  ;;  %v889_v22 = vpop.permute.xlu0 %888 }
 0x987   : > { %v897_v54 = vsel %vm770_vm8, %v891_v56, -inf  ;;  %v896_v28 = vsel %vm770_vm8, %v889_v22, -inf }
 0x988   : > { %v6911_v25 = vmax.f32 %v885_v59, %v897_v54  ;;  %v6919_v29 = vmax.f32 %v884_v58, %v896_v28  ;;  %v403_v58 = vld [vmem:[%s8800_s5] sm:$0xff]  ;;  %v6968_v59 = vld [vmem:[%s8801_s6 + $0x18] sm:$0xff] }
 0x98a   : > { %908 = vrot.lane.b32.xlu0 %v6903_v21, %s6157_s17  ;;  %v707_v56 = vpop.permute.xlu1 %706 }
 0x98e   : > { %906 = vrot.lane.b32.xlu0 %v6911_v25, %s6157_s17 }
 0x992   : > { %904 = vrot.lane.b32.xlu0 %v6919_v29, %s6157_s17 }
 0x996   : > { %1715 = vrot.lane.b32.xlu0 %v6926_v62, %s6151_s0 }
 0x99a   : > { %1711 = vrot.lane.b32.xlu0 %v6931_v30, %s6151_s0 }
 0x99e   : > { %1703 = vrot.lane.b32.xlu0 %v6926_v62, %s6152_s9 }
 0x9a2   : > { %1699 = vrot.lane.b32.xlu0 %v6931_v30, %s6152_s9 }
 0x9b0   : > { %v1397_v31 = vpop.f32.mrf.mxu1 }
 0x9b1   : > { %vm1401_vm15 = vcmp.gt.f32.partialorder %v1397_v31, 0.0 }
 0x9b2   : > { %v1402_v43 = vsel %vm1401_vm15, %v1397_v31, 1.0  ;;  %v5634_v47 = vpop.f32.mrf.mxu1  ;;  %v705_v31 = vpop.permute.xlu1 %704 }
 0x9b3   : > { %5995 = vrcp.f32 %v1402_v43 }
 0x9c0   : > { %v5996_v33 = vpop.eup %5995 }
 0x9c1   : > { %v1404_v39 = vmul.f32 %v5996_v33, %v6828_v14  ;;  %v1411_v41 = vmul.f32 %v5996_v33, %v6826_v11  ;;  %v405_v11 = vld [vmem:[%s8800_s5 + $0x10] sm:$0xff]  ;;  %v406_v14 = vld [vmem:[%s8800_s5 + $0x18] sm:$0xff]  ;;  %v711_v33 = vsel %vm371_vm3, -inf, %v707_v56 }
 0x9c3   : > { %v1405_v55 = vsel %vm1401_vm15, %v1404_v39, 0.0  ;;  %v1412_v40 = vsel %vm1401_vm15, %v1411_v41, 0.0  ;;  %v723_v39 = vsel %vm8823_vm1, -inf, %v6839_v49  ;;  %vm8868_vm15 = vcmp.lt.s32.totalorder %v6368_v12, 8 }
 0x9c4   : > { %v1410_v57 = vmul.f32 %v1409_v34, %v1405_v55  ;;  %v1413_v42 = vmul.f32 %v1412_v40, %v1409_v34  ;;  %v727_v55 = vmax.f32 %v711_v33, %v723_v39  ;;  %v703_v40 = vpop.permute.xlu1 %702  ;;  %vm8869_vm13 = vmmov %vm8868_vm15 }
 0x9c5   : > { %vm8870_vm12 = vmmov %vm8869_vm13  ;;  %v709_v7 = vsel %vm371_vm3, -inf, %v703_v40 }
 0x9c6   : > { %1456 = vmatprep.subr.mxu1 %v1413_v42  ;;  %v731_v39 = vmax.f32 %v6806_v2, %v727_v55 }
 0x9c7   : > { %1457 = vmatpush1.msra.mxu1 %v1410_v57 }
 0x9c8   : > { %5204 = vmatmul.mubr.msk.f32.vlgmr.msra.gmra.mxu1 %vm8841_vm10, %v403_v58  ;;  %5646 = vmatprep.subr.mxu1 %v8818_v44 }
 0x9c9   : > { %1496 = vmatprep.mubr.f32.mxu1 %v8818_v44  ;;  %5647 = vmatpush3.xpose.msk.msra.mxu1 %vm1119_vm11, %v6968_v59 }
 0x9ca   : > { %5648 = vmatprep.subr.mxu1 %v8818_v44 }
 0x9cc   : > { %5205 = vmatmul.mubr.msk.f32.gmra.mxu1 %vm8841_vm10, %v404_v36  ;;  %v710_v36 = vsel %vm371_vm3, -inf, %v705_v31 }
 0x9cd   : > { %1502 = vmatprep.mubr.f32.mxu1 %v8818_v44  ;;  %5649 = vmatpush3.xpose.msk.msra.mxu1 %vm1119_vm11, %v6976_v53 }
 0x9ce   : > { %5650 = vmatprep.subr.mxu1 %v8818_v44 }
 0x9d0   : > { %5206 = vmatmul.mubr.msk.f32.gmra.mxu1 %vm8841_vm10, %v405_v11 }
 0x9d1   : > { %1508 = vmatprep.mubr.f32.mxu1 %v8818_v44  ;;  %5651 = vmatpush3.xpose.msk.msra.mxu1 %vm1119_vm11, %v6984_v38 }
 0x9d2   : > { %5652 = vmatprep.subr.mxu1 %v8818_v44 }
 0x9d4   : > { %5207 = vmatmul.mubr.msk.f32.gmra.mxu1 %vm8841_vm10, %v406_v14  ;;  %v722_v14 = vsel %vm8823_vm1, -inf, %v6837_v15  ;;  %v721_v15 = vsel %vm8823_vm1, -inf, %v6853_v24 }
 0x9d5   : > { %5654 = vmatprep.mubr.msk.f32.mxu1 %vm6165_vm14, %v8818_v44  ;;  %5653 = vmatpush3.xpose.msk.msra.mxu1 %vm1119_vm11, %v6992_v60  ;;  %v726_v33 = vmax.f32 %v710_v36, %v722_v14  ;;  %v701_v60 = vpop.permute.xlu1 %700 }
 0x9d6   : > { %5699 = vmatprep.subr.msk.mxu1 %vm6491_vm7, %v8816_v5 }
 0x9d7   : > { %v730_v55 = vmax.f32 %v6803_v51, %v726_v33 }
 0x9d9   : > { %v1718_v14 = vpop.permute.xlu1 %1717 }
 0x9f8   : > { %v911_v45 = vpop.permute.xlu0 %910 }
 0x9f9   : > { %v915_v57 = vsel %vm8868_vm15, %v911_v45, -inf  ;;  %vm8875_vm15 = vmmov %vm8870_vm12 }
 0x9fa   : > { %v919_v56 = vmax.f32 %v6889_v0, %v915_v57  ;;  %v708_v57 = vsel %vm371_vm3, -inf, %v701_v60 }
 0x9fc   : > { %v909_v28 = vpop.permute.xlu0 %908 }
 0x9fd   : > { %v914_v42 = vsel %vm8869_vm13, %v909_v28, -inf  ;;  %vm8874_vm13 = vmmov %vm8870_vm12 }
 0x9fe   : > { %v918_v49 = vmax.f32 %v6903_v21, %v914_v42 }
 0xa00   : > { %v907_v41 = vpop.permute.xlu0 %906 }
 0xa01   : > { %v913_v45 = vsel %vm8870_vm12, %v907_v41, -inf  ;;  %v725_v41 = vmax.f32 %v709_v7, %v721_v15  ;;  %v7142_v15 = vld [vmem:[%s8797_s2 + $0x38] sm:$0xff] }
 0xa02   : > { %v917_v0 = vmax.f32 %v6911_v25, %v913_v45  ;;  %v8871_v25 = vmov 0.0   ;;  %v7114_v45 = vld [vmem:[%s8797_s2 + $0x18] sm:$0xff] }
 0xa03   : > { %v729_v51 = vmax.f32 %v6820_v10, %v725_v41 }
 0xa04   : > { %v905_v31 = vpop.permute.xlu0 %904 }
 0xa05   : > { %v912_v2 = vsel %vm8870_vm12, %v905_v31, -inf  ;;  %v7135_v31 = vld [vmem:[%s8797_s2 + $0x30] sm:$0xff] }
 0xa06   : > { %v916_v7 = vmax.f32 %v6919_v29, %v912_v2 }
 0xa88   : > { %v1492_v54 = vpop.f32.mrf.mxu1 }
 0xa8a   : > { %v1494_v22 = vpop.f32.mrf.mxu1 }
 0xa8c   : > { %v1498_v43 = vpop.f32.mrf.mxu1 }
 0xa8e   : > { %v1500_v47 = vpop.f32.mrf.mxu1 }
 0xa8f   : > { %v1520_v42 = vmul.f32 %v1500_v47, %v917_v0  ;;  %v1516_v47 = vmul.f32 %v1498_v43, %v729_v51  ;;  %v8872_v43 = vmov 1.0  }
 0xa90   : > { %v1504_v34 = vpop.f32.mrf.mxu1 }
 0xa91   : > { %v1517_v24 = vmul.f32 %v1504_v34, %v730_v55  ;;  %v1524_v60 = vsel %vm371_vm3, %v1520_v42, 0.0 }
 0xa92   : > { %v1506_v58 = vpop.f32.mrf.mxu1  ;;  %v1528_v34 = vadd.f32 %v1524_v60, %v1516_v47 }
 0xa93   : > { %v1521_v5 = vmul.f32 %v1506_v58, %v918_v49 }
 0xa94   : > { %v1510_v11 = vpop.f32.mrf.mxu1 }
 0xa95   : > { %v1518_v38 = vmul.f32 %v1510_v11, %v731_v39  ;;  %v1525_v58 = vsel %vm371_vm3, %v1521_v5, 0.0  ;;  %v1519_v11 = vmul.f32 %v1494_v22, %v916_v7  ;;  %v1716_v22 = vpop.permute.xlu0 %1715  ;;  %v7121_v39 = vld [vmem:[%s8797_s2 + $0x20] sm:$0xff] }
 0xa96   : > { %v1512_v28 = vpop.f32.mrf.mxu1 }
 0xa97   : > { %v1522_v44 = vmul.f32 %v1512_v28, %v919_v56  ;;  %v7128_v28 = vld [vmem:[%s8797_s2 + $0x28] sm:$0xff] }
 0xa99   : > { %v1526_v21 = vsel %vm371_vm3, %v1522_v44, 0.0  ;;  %v720_v44 = vsel %vm8823_vm1, -inf, %v6850_v23  ;;  %v1523_v23 = vsel %vm371_vm3, %v1519_v11, 0.0  ;;  %v1712_v49 = vpop.permute.xlu0 %1711 }
 0xa9a   : > { %v1530_v40 = vadd.f32 %v1526_v21, %v1518_v38  ;;  %v724_v36 = vmax.f32 %v708_v57, %v720_v44  ;;  %v1529_v38 = vadd.f32 %v1525_v58, %v1517_v24 }
 0xa9c   : > { %5636 = vmatpush3.xpose.msra.mxu0 %v1530_v40  ;;  %v728_v5 = vmax.f32 %v6817_v9, %v724_v36  ;;  %v1714_v9 = vpop.permute.xlu1 %1713 }
 0xa9d   : > { %5637 = vmatprep.subr.mxu0 %v8871_v25  ;;  %v1704_v33 = vpop.permute.xlu0 %1703 }
 0xa9e   : > { %v1515_v29 = vmul.f32 %v1492_v54, %v728_v5  ;;  %v7056_v54 = vld [vmem:[%s8797_s2] sm:$0xff] }
 0xa9f   : > { %v7188_v5 = vld [vmem:[%s8802_s7] ss:$0 sm:$0xff] }
 0xaa0   : > { %5638 = vmatpush3.xpose.msra.mxu0 %v1529_v38  ;;  %v1527_v10 = vadd.f32 %v1523_v23, %v1515_v29  ;;  %v1706_v56 = vpop.permute.xlu1 %1705 }
 0xaa1   : > { %5639 = vmatprep.subr.mxu0 %v8871_v25 }
 0xaa4   : > { %5640 = vmatpush3.xpose.msra.mxu0 %v1528_v34 }
 0xaa5   : > { %5641 = vmatprep.subr.mxu0 %v8871_v25 }
 0xaa8   : > { %5642 = vmatpush3.xpose.msra.mxu0 %v1527_v10 }
 0xaa9   : > { %5657 = vmatprep.subr.msk.mxu0 %vm6373_vm2, %v1718_v14 }
 0xaab   : > { %5644 = vmatmul.mubr.msk.f32.vlgmr.msra.gmra.mxu0 %vm6491_vm7, %v8872_v43 }
 0xaac   : > { %5658 = vmatpush3.msk.msra.mxu0 %vm6373_vm2, %v1718_v14  ;;  %5681 = vmatprep.mubr.msk.f32.mxu0 %vm8822_vm0, %v7056_v54 }
 0xaad   : > { %5659 = vmatprep.subr.msk.mxu0 %vm6373_vm2, %v1716_v22 }
 0xaae   : > { %5660 = vmatpush3.msk.msra.mxu0 %vm6373_vm2, %v1716_v22 }
 0xaaf   : > { %5661 = vmatprep.subr.msk.mxu0 %vm6373_vm2, %v1714_v9 }
 0xab0   : > { %5662 = vmatpush3.msk.msra.mxu0 %vm6373_vm2, %v1714_v9 }
 0xab1   : > { %5663 = vmatprep.subr.msk.mxu0 %vm6373_vm2, %v1712_v49 }
 0xab2   : > { %5664 = vmatpush3.msk.msra.mxu0 %vm6373_vm2, %v1712_v49 }
 0xab3   : > { %5665 = vmatprep.subr.mxu0 %v6894_v61 }
 0xab4   : > { %5666 = vmatpush3.msra.mxu0 %v6894_v61  ;;  %v1702_v61 = vpop.permute.xlu1 %1701 }
 0xab5   : > { %5667 = vmatprep.subr.mxu0 %v6926_v62 }
 0xab6   : > { %5668 = vmatpush3.msra.mxu0 %v6926_v62  ;;  %v1700_v62 = vpop.permute.xlu0 %1699 }
 0xab7   : > { %5669 = vmatprep.subr.mxu0 %v6901_v16 }
 0xab8   : > { %5670 = vmatpush3.msra.mxu0 %v6901_v16  ;;  %v7099_v16 = vld [vmem:[%s8797_s2 + $0x8] sm:$0xff] }
 0xab9   : > { %5671 = vmatprep.subr.mxu0 %v6931_v30 }
 0xaba   : > { %5672 = vmatpush3.msra.mxu0 %v6931_v30  ;;  %v7107_v30 = vld [vmem:[%s8797_s2 + $0x10] sm:$0xff] }
 0xabb   : > { %5673 = vmatprep.subr.msk.mxu0 %vm6396_vm4, %v1706_v56 }
 0xabc   : > { %5674 = vmatpush3.msk.msra.mxu0 %vm6396_vm4, %v1706_v56 }
 0xabd   : > { %5675 = vmatprep.subr.msk.mxu0 %vm6396_vm4, %v1704_v33 }
 0xabe   : > { %5676 = vmatpush3.msk.msra.mxu0 %vm6396_vm4, %v1704_v33 }
 0xabf   : > { %5677 = vmatprep.subr.msk.mxu0 %vm6396_vm4, %v1702_v61 }
 0xac0   : > { %5678 = vmatpush3.msk.msra.mxu0 %vm6396_vm4, %v1702_v61 }
 0xac1   : > { %5679 = vmatprep.subr.msk.mxu0 %vm6396_vm4, %v1700_v62 }
 0xac2   : > { %5680 = vmatpush3.msk.msra.mxu0 %vm6396_vm4, %v1700_v62 }
 0xac3   : > { %5682 = vmatmul.mubr.msk.f32.vlgmr.msra.gmra.mxu0 %vm8822_vm0, %v7099_v16  ;;  %5725 = vmatprep.subr.mxu0 %v8871_v25 }
 0xac4   : > { %5684 = vmatprep.mubr.msk.f32.mxu0 %vm8822_vm0, %v7107_v30 }
 0xac7   : > { %5685 = vmatmul.mubr.msk.f32.gmra.mxu0 %vm8822_vm0, %v7114_v45 }
 0xac8   : > { %5687 = vmatprep.mubr.msk.f32.mxu0 %vm8822_vm0, %v7121_v39 }
 0xacb   : > { %5688 = vmatmul.mubr.msk.f32.gmra.mxu0 %vm8822_vm0, %v7128_v28 }
 0xacc   : > { %5690 = vmatprep.mubr.msk.f32.mxu0 %vm8822_vm0, %v7135_v31 }
 0xacf   : > { %5691 = vmatmul.mubr.msk.f32.gmra.mxu0 %vm8822_vm0, %v7142_v15 }
 0xad0   : > { %5693 = vmatprep.mubr.msk.f32.mxu0 %vm8822_vm0, %v6739_v3 }
 0xad3   : > { %5694 = vmatmul.mubr.msk.f32.gmra.mxu0 %vm8822_vm0, %v6744_v17 }
 0xad4   : > { %5696 = vmatprep.mubr.msk.f32.mxu0 %vm8822_vm0, %v6749_v18 }
 0xad7   : > { %5697 = vmatmul.mubr.msk.f32.gmra.mxu0 %vm8822_vm0, %v6760_v20  ;;  %vm8876_vm0 = vmmov %vm8870_vm12 }
 0xad8   : > { %5733 = vmatprep.mubr.msk.f32.mxu0 %vm6165_vm14, %v8871_v25 }
 0xb6b   : > { %v1597_v0 = vpop.f32.mrf.mxu0 }
 0xb6c   : > { %5655 = vmatmul.mubr.msk.f32.vlgmr.msra.gmra.mxu1 %vm1119_vm11, %v1597_v0 }
 0xb6d   : > { %v5645_v21 = vpop.f32.mrf.mxu0  ;;  %5700 = vmatpush3.xpose.msk.msra.mxu1 %vm6491_vm7, %v8872_v43 }
 0xb6e   : > { %5707 = vmatprep.subr.msk.mxu1 %vm6491_vm7, %v8872_v43 }
 0xb83   : > { %v5683_v3 = vpop.f32.mrf.mxu0 }
 0xb84   : > { %v1795_v17 = vadd.f32 %v5683_v3, %v6430_v27 }
 0xb85   : > { %v1789_v18 = vpop.f32.mrf.mxu0 }
 0xb86   : > { %v1790_v20 = vadd.f32 %v1789_v18, %v6428_v26  ;;  %1914 = vrot.lane.b32.xlu0 %v1795_v17, %s6151_s0 }
 0xb87   : > { %v5686_v41 = vpop.f32.mrf.mxu0 }
 0xb88   : > { %v1805_v2 = vadd.f32 %v5686_v41, %v6435_v32  ;;  %1912 = vrot.lane.b32.xlu1 %v1790_v20, %s6151_s0 }
 0xb89   : > { %v1799_v55 = vpop.f32.mrf.mxu0 }
 0xb8a   : > { %v1800_v40 = vadd.f32 %v1799_v55, %v6439_v35  ;;  %1918 = vrot.lane.b32.xlu0 %v1805_v2, %s6151_s0 }
 0xb8c   : > { %1916 = vrot.lane.b32.xlu1 %v1800_v40, %s6151_s0 }
 0xbf8   : > { %v1915_v57 = vpop.permute.xlu0 %1914 }
 0xbf9   : > { %v1921_v42 = vsel %vm732_vm5, %v1915_v57, -inf }
 0xbfa   : > { %v1925_v58 = vmax.f32 %v1795_v17, %v1921_v42  ;;  %v1913_v24 = vpop.permute.xlu1 %1912  ;;  %v5689_v17 = vpop.f32.mrf.mxu0 }
 0xbfb   : > { %v1920_v44 = vsel %vm732_vm5, %v1913_v24, -inf }
 0xbfc   : > { %v1924_v7 = vmax.f32 %v1790_v20, %v1920_v44  ;;  %1930 = vrot.lane.b32.xlu0 %v1925_v58, %s6154_s16  ;;  %v1919_v36 = vpop.permute.xlu0 %1918  ;;  %v1809_v18 = vpop.f32.mrf.mxu0 }
 0xbfd   : > { %v1923_v51 = vsel %vm732_vm5, %v1919_v36, -inf }
 0xbfe   : > { %v1927_v38 = vmax.f32 %v1805_v2, %v1923_v51  ;;  %1928 = vrot.lane.b32.xlu1 %v1924_v7, %s6154_s16  ;;  %v1917_v11 = vpop.permute.xlu1 %1916 }
 0xbff   : > { %v1922_v60 = vsel %vm732_vm5, %v1917_v11, -inf }
 0xc00   : > { %v1926_v47 = vmax.f32 %v1800_v40, %v1922_v60  ;;  %1934 = vrot.lane.b32.xlu0 %v1927_v38, %s6154_s16  ;;  %v5692_v40 = vpop.f32.mrf.mxu0 }
 0xc01   : > { %v7226_v60 = vadd.f32 %v5692_v40, %v6566_v48 }
 0xc02   : > { %1932 = vrot.lane.b32.xlu1 %v1926_v47, %s6154_s16  ;;  %v1819_v36 = vpop.f32.mrf.mxu0 }
 0xc03   : > { %v7222_v11 = vadd.f32 %v1819_v36, %v6561_v46 }
 0xc2c   : > { %v1688_v34 = vpop.f32.mrf.mxu1 }
 0xc2d   : > { %v1689_v23 = vadd.f32 %v7188_v5, %v1688_v34  ;;  %v7236_v34 = vadd.f32 %v5689_v17, %v6580_v52 }
 0xc2e   : > { %v5656_v29 = vpop.f32.mrf.mxu1 }
 0xc2f   : > { %1692 = vst.msk [vmem:[%s7193_s24] sm:$0xff] %vm1119_vm11, %v1689_v23 }
 0xc6e   : > { %v1931_v10 = vpop.permute.xlu0 %1930 }
 0xc6f   : > { %v1937_v14 = vsel %vm751_vm6, %v1931_v10, -inf }
 0xc70   : > { %v1941_v22 = vmax.f32 %v1925_v58, %v1937_v14  ;;  %v1929_v9 = vpop.permute.xlu1 %1928 }
 0xc71   : > { %v1936_v49 = vsel %vm751_vm6, %v1929_v9, -inf }
 0xc72   : > { %v1940_v56 = vmax.f32 %v1924_v7, %v1936_v49  ;;  %1946 = vrot.lane.b32.xlu0 %v1941_v22, %s6155_s13  ;;  %v1935_v33 = vpop.permute.xlu0 %1934 }
 0xc73   : > { %v1939_v61 = vsel %vm751_vm6, %v1935_v33, -inf }
 0xc74   : > { %v1943_v62 = vmax.f32 %v1927_v38, %v1939_v61  ;;  %1944 = vrot.lane.b32.xlu1 %v1940_v56, %s6155_s13  ;;  %v1933_v0 = vpop.permute.xlu1 %1932 }
 0xc75   : > { %v1938_v21 = vsel %vm751_vm6, %v1933_v0, -inf }
 0xc76   : > { %v1942_v3 = vmax.f32 %v1926_v47, %v1938_v21  ;;  %1950 = vrot.lane.b32.xlu0 %v1943_v62, %s6155_s13  ;;  %v7231_v47 = vadd.f32 %v1809_v18, %v6573_v50 }
 0xc78   : > { %1948 = vrot.lane.b32.xlu1 %v1942_v3, %s6155_s13 }
 0xce4   : > { %v1947_v20 = vpop.permute.xlu0 %1946 }
 0xce5   : > { %v1953_v41 = vsel %vm770_vm8, %v1947_v20, -inf }
 0xce6   : > { %v1957_v2 = vmax.f32 %v1941_v22, %v1953_v41  ;;  %v1945_v55 = vpop.permute.xlu1 %1944 }
 0xce7   : > { %v1952_v57 = vsel %vm770_vm8, %v1945_v55, -inf }
 0xce8   : > { %v1956_v42 = vmax.f32 %v1940_v56, %v1952_v57  ;;  %1962 = vrot.lane.b32.xlu0 %v1957_v2, %s6157_s17  ;;  %v1951_v58 = vpop.permute.xlu0 %1950 }
 0xce9   : > { %v1955_v24 = vsel %vm770_vm8, %v1951_v58, -inf }
 0xcea   : > { %v1959_v44 = vmax.f32 %v1943_v62, %v1955_v24  ;;  %1960 = vrot.lane.b32.xlu1 %v1956_v42, %s6157_s17  ;;  %v1949_v7 = vpop.permute.xlu1 %1948 }
 0xceb   : > { %v1954_v51 = vsel %vm770_vm8, %v1949_v7, -inf }
 0xcec   : > { %v1958_v38 = vmax.f32 %v1942_v3, %v1954_v51  ;;  %1966 = vrot.lane.b32.xlu0 %v1959_v44, %s6157_s17 }
 0xcee   : > { %1964 = vrot.lane.b32.xlu1 %v1958_v38, %s6157_s17 }
 0xcf0   : > { %1864 = vrot.lane.b32.xlu0 %v7222_v11, %s6151_s0 }
 0xcf2   : > { %1866 = vrot.lane.b32.xlu1 %v7226_v60, %s6151_s0 }
 0xcf4   : > { %1860 = vrot.lane.b32.xlu0 %v7231_v47, %s6151_s0 }
 0xcf6   : > { %1862 = vrot.lane.b32.xlu1 %v7236_v34, %s6151_s0 }
 0xd5a   : > { %v1963_v23 = vpop.permute.xlu0 %1962 }
 0xd5b   : > { %v1969_v29 = vsel %vm8874_vm13, %v1963_v23, -inf  ;;  %vm8877_vm13 = vmmov %vm8876_vm0 }
 0xd5c   : > { %v1961_v10 = vpop.permute.xlu1 %1960  ;;  %v7248_v49 = vmax.f32 %v1957_v2, %v1969_v29 }
 0xd5d   : > { %v1968_v14 = vsel %vm8875_vm15, %v1961_v10, -inf  ;;  %vm8878_vm15 = vmmov %vm8876_vm0 }
 0xd5e   : > { %v7246_v22 = vmax.f32 %v1956_v42, %v1968_v14  ;;  %v1967_v9 = vpop.permute.xlu0 %1966 }
 0xd5f   : > { %v1971_v56 = vsel %vm8870_vm12, %v1967_v9, -inf  ;;  %vm8879_vm12 = vmmov %vm8876_vm0 }
 0xd60   : > { %5701 = vmatprep.mubr.msk.f32.mxu1 %vm371_vm3, %v7246_v22  ;;  %v1965_v33 = vpop.permute.xlu1 %1964  ;;  %v7267_v21 = vmax.f32 %v1959_v44, %v1971_v56 }
 0xd61   : > { %v1970_v61 = vsel %vm8876_vm0, %v1965_v33, -inf  ;;  %5702 = vmatmul.mubr.msk.f32.vlgmr.msra.gmra.mxu1 %vm371_vm3, %v7248_v49 }
 0xd62   : > { %v7260_v62 = vmax.f32 %v1958_v38, %v1970_v61  ;;  %v7262_v0 = vpop.permute.xlu0 %1864  ;;  %5708 = vmatpush3.msk.msra.mxu1 %vm6491_vm7, %v8872_v43 }
 0xd63   : > { %v1978_v3 = vsel %vm732_vm5, %v7262_v0, -inf }
 0xd64   : > { %v1982_v17 = vmax.f32 %v7222_v11, %v1978_v3  ;;  %5704 = vmatprep.mubr.msk.f32.mxu1 %vm371_vm3, %v7260_v62  ;;  %v7276_v18 = vpop.permute.xlu1 %1866 }
 0xd65   : > { %v1979_v20 = vsel %vm732_vm5, %v7276_v18, -inf  ;;  %5705 = vmatmul.mubr.msk.f32.gmra.mxu1 %vm371_vm3, %v7267_v21 }
 0xd66   : > { %v1983_v41 = vmax.f32 %v7226_v60, %v1979_v20  ;;  %1988 = vrot.lane.b32.xlu0 %v1982_v17, %s6154_s16  ;;  %v7286_v2 = vpop.permute.xlu0 %1860 }
 0xd67   : > { %v1976_v55 = vsel %vm732_vm5, %v7286_v2, -inf }
 0xd68   : > { %v1980_v40 = vmax.f32 %v7231_v47, %v1976_v55  ;;  %1990 = vrot.lane.b32.xlu1 %v1983_v41, %s6154_s16  ;;  %v7293_v57 = vpop.permute.xlu1 %1862 }
 0xd69   : > { %v1977_v42 = vsel %vm732_vm5, %v7293_v57, -inf }
 0xd6a   : > { %v1981_v58 = vmax.f32 %v7236_v34, %v1977_v42  ;;  %1984 = vrot.lane.b32.xlu0 %v1980_v40, %s6154_s16 }
 0xd6c   : > { %1986 = vrot.lane.b32.xlu1 %v1981_v58, %s6154_s16 }
 0xdd8   : > { %v1989_v24 = vpop.permute.xlu0 %1988 }
 0xdd9   : > { %v1994_v44 = vsel %vm751_vm6, %v1989_v24, -inf }
 0xdda   : > { %v1998_v7 = vmax.f32 %v1982_v17, %v1994_v44  ;;  %v1991_v36 = vpop.permute.xlu1 %1990 }
 0xddb   : > { %v1995_v51 = vsel %vm751_vm6, %v1991_v36, -inf }
 0xddc   : > { %v1999_v38 = vmax.f32 %v1983_v41, %v1995_v51  ;;  %2004 = vrot.lane.b32.xlu0 %v1998_v7, %s6155_s13  ;;  %v1985_v23 = vpop.permute.xlu0 %1984 }
 0xddd   : > { %v1992_v29 = vsel %vm751_vm6, %v1985_v23, -inf }
 0xdde   : > { %v1996_v10 = vmax.f32 %v1980_v40, %v1992_v29  ;;  %2006 = vrot.lane.b32.xlu1 %v1999_v38, %s6155_s13  ;;  %v1987_v14 = vpop.permute.xlu1 %1986 }
 0xddf   : > { %v1993_v9 = vsel %vm751_vm6, %v1987_v14, -inf }
 0xde0   : > { %v1997_v56 = vmax.f32 %v1981_v58, %v1993_v9  ;;  %2000 = vrot.lane.b32.xlu0 %v1996_v10, %s6155_s13 }
 0xde2   : > { %2002 = vrot.lane.b32.xlu1 %v1997_v56, %s6155_s13 }
 0xde4   : > { %1852 = vrot.lane.b32.xlu0 %v7222_v11, %s6152_s9 }
 0xde6   : > { %1854 = vrot.lane.b32.xlu1 %v7226_v60, %s6152_s9 }
 0xde8   : > { %1850 = vrot.lane.b32.xlu0 %v7236_v34, %s6152_s9 }
 0xdec   : > { %1848 = vrot.lane.b32.xlu0 %v7231_v47, %s6152_s9 }
 0xe21   : > { %v5703_v33 = vpop.f32.mrf.mxu1 }
 0xe23   : > { %v2162_v61 = vpop.f32.mrf.mxu1 }
 0xe24   : > { %5709 = vmatprep.mubr.msk.f32.mxu1 %vm8841_vm10, %v2162_v61 }
 0xe25   : > { %v5706_v3 = vpop.f32.mrf.mxu1  ;;  %5710 = vmatmul.mubr.msk.f32.vlgmr.msra.gmra.mxu1 %vm8841_vm10, %v5703_v33 }
 0xe27   : > { %v2172_v17 = vpop.f32.mrf.mxu1 }
 0xe28   : > { %5712 = vmatprep.mubr.msk.f32.mxu1 %vm8841_vm10, %v2172_v17 }
 0xe29   : > { %5713 = vmatmul.mubr.msk.f32.gmra.mxu1 %vm8841_vm10, %v5706_v3 }
 0xe2a   : > { %2350 = vmatprep.mubr.f32.mxu1 %v8871_v25 }
 0xe4e   : > { %v2005_v20 = vpop.permute.xlu0 %2004 }
 0xe4f   : > { %v2010_v58 = vsel %vm770_vm8, %v2005_v20, -inf }
 0xe50   : > { %v2007_v41 = vpop.permute.xlu1 %2006  ;;  %v2014_v51 = vmax.f32 %v1998_v7, %v2010_v58 }
 0xe51   : > { %v2011_v55 = vsel %vm770_vm8, %v2007_v41, -inf }
 0xe52   : > { %v2015_v40 = vmax.f32 %v1999_v38, %v2011_v55  ;;  %v2001_v42 = vpop.permute.xlu0 %2000  ;;  %v1870_v55 = vsel %vm8823_vm1, -inf, %v7262_v0 }
 0xe53   : > { %v2008_v24 = vsel %vm770_vm8, %v2001_v42, -inf }
 0xe54   : > { %v2012_v44 = vmax.f32 %v1996_v10, %v2008_v24  ;;  %2022 = vrot.lane.b32.xlu1 %v2015_v40, %s6157_s17  ;;  %v2003_v36 = vpop.permute.xlu1 %2002 }
 0xe55   : > { %v2009_v23 = vsel %vm770_vm8, %v2003_v36, -inf }
 0xe56   : > { %2016 = vrot.lane.b32.xlu0 %v2012_v44, %s6157_s17  ;;  %v2013_v38 = vmax.f32 %v1997_v56, %v2009_v23  ;;  %v1853_v14 = vpop.permute.xlu0 %1852  ;;  %v1871_v56 = vsel %vm8823_vm1, -inf, %v7276_v18  ;;  %v1869_v18 = vsel %vm8823_vm1, -inf, %v7293_v57  ;;  %v1868_v57 = vsel %vm8823_vm1, -inf, %v7286_v2 }
 0xe57   : > { %v1858_v17 = vsel %vm371_vm3, -inf, %v1853_v14 }
 0xe58   : > { %2020 = vrot.lane.b32.xlu1 %v2014_v51, %s6157_s17  ;;  %v1855_v29 = vpop.permute.xlu1 %1854  ;;  %v1874_v36 = vmax.f32 %v1858_v17, %v1870_v55 }
 0xe59   : > { %v1859_v3 = vsel %vm371_vm3, -inf, %v1855_v29 }
 0xe5a   : > { %v1851_v33 = vpop.permute.xlu0 %1850  ;;  %v1875_v42 = vmax.f32 %v1859_v3, %v1871_v56 }
 0xe5b   : > { %v1857_v23 = vsel %vm371_vm3, -inf, %v1851_v33 }
 0xe5c   : > { %2018 = vrot.lane.b32.xlu1 %v2013_v38, %s6157_s17  ;;  %v1873_v3 = vmax.f32 %v1857_v23, %v1869_v18  ;;  %v1879_v17 = vmax.f32 %v7226_v60, %v1875_v42  ;;  %v2090_v60 = vsel %vm371_vm3, %v7260_v62, 0.0 }
 0xe5e   : > { %v1849_v10 = vpop.permute.xlu0 %1848  ;;  %v1877_v2 = vmax.f32 %v7236_v34, %v1873_v3  ;;  %v2088_v34 = vsel %vm371_vm3, %v7246_v22, 0.0  ;;  %v1698_v22 = vld [vmem:[%s6328_s23 + $0x3] sm:$0x1] }
 0xec6   : > { %v2023_v9 = vpop.permute.xlu1 %2022 }
 0xec7   : > { %v2027_v7 = vsel %vm8876_vm0, %v2023_v9, -inf }
 0xec8   : > { %v2031_v58 = vmax.f32 %v2015_v40, %v2027_v7  ;;  %v2017_v24 = vpop.permute.xlu0 %2016 }
 0xec9   : > { %v2024_v0 = vsel %vm8879_vm12, %v2017_v24, -inf }
 0xeca   : > { %v2021_v61 = vpop.permute.xlu1 %2020  ;;  %v2095_v33 = vsel %vm371_vm3, %v2031_v58, 0.0 }
 0xecb   : > { %v2026_v41 = vsel %vm8877_vm13, %v2021_v61, -inf  ;;  %v1856_v61 = vsel %vm371_vm3, -inf, %v1849_v10 }
 0xecc   : > { %v2030_v9 = vmax.f32 %v2014_v51, %v2026_v41  ;;  %v2091_v51 = vsel %vm371_vm3, %v7267_v21, 0.0  ;;  %v1872_v56 = vmax.f32 %v1856_v61, %v1868_v57  ;;  %v2028_v41 = vmax.f32 %v2012_v44, %v2024_v0 }
 0xecd   : > { %v2089_v44 = vsel %vm371_vm3, %v7248_v49, 0.0  ;;  %v7393_v49 = vld [vmem:[%s8799_s4] sm:$0xff] }
 0xece   : > { %v2019_v20 = vpop.permute.xlu1 %2018  ;;  %v2094_v55 = vsel %vm371_vm3, %v2030_v9, 0.0  ;;  %8880 = vst [vmem:[#allocation16_spill] sm:$0xff] %v7393_v49 }
 0xecf   : > { %v2025_v29 = vsel %vm8878_vm15, %v2019_v20, -inf  ;;  %v1878_v20 = vmax.f32 %v7222_v11, %v1874_v36  ;;  %v2280_v11 = vmul.f32 %v2094_v55, %v2090_v60  ;;  %v2092_v36 = vsel %vm371_vm3, %v2028_v41, 0.0 }
 0xed0   : > { %v2029_v7 = vmax.f32 %v2013_v38, %v2025_v29  ;;  %v2281_v38 = vmul.f32 %v2095_v33, %v2091_v51  ;;  %v1876_v29 = vmax.f32 %v7231_v47, %v1872_v56  ;;  %v2278_v18 = vmul.f32 %v2092_v36, %v2088_v34  ;;  %v7405_v47 = vld [vmem:[%s6328_s23 + $0x2] sm:$0x1] }
 0xed1   : > { %vm2359_vm0 = vcmp.ne.f32.partialorder %v7405_v47, 0.0  ;;  %vm2368_vm15 = vcmp.ne.f32.partialorder %v1698_v22, 0.0 }
 0xed2   : > { %v2093_v21 = vsel %vm371_vm3, %v2029_v7, 0.0  ;;  %vm2360_vm13 = vmand %vm371_vm3, %vm2359_vm0  ;;  %vm8882_vm0 = vcmp.ge.s32.totalorder %v6368_v12, 2 }
 0xed3   : > { %v2279_v62 = vmul.f32 %v2093_v21, %v2089_v44 }
 0xee5   : > { %v5711_v14 = vpop.f32.mrf.mxu1 }
 0xee6   : > { %v2283_v23 = vmul.f32 %v5711_v14, %v1877_v2  ;;  %v8881_v14 = vmov 0   ;;  %v5695_v2 = vpop.f32.mrf.mxu0 }
 0xee7   : > { %v2259_v40 = vpop.f32.mrf.mxu1  ;;  %v2361_v61 = vsel %vm2360_vm13, 1, %v8881_v14  ;;  %v2369_v0 = vsel %vm2368_vm15, 1, %v8881_v14  ;;  %vm8886_vm13 = vcmp.ge.s32.totalorder %v6368_v12, 8 }
 0xee8   : > { %v2282_v9 = vmul.f32 %v2259_v40, %v1876_v29  ;;  %v2365_v40 = vrot.slane %v2361_v61, %v6728_v63  ;;  %v2373_v3 = vrot.slane %v2369_v0, %v6728_v63 }
 0xee9   : > { %v5714_v10 = vpop.f32.mrf.mxu1 }
 0xeea   : > { %v2285_v58 = vmul.f32 %v5714_v10, %v1879_v17  ;;  %vm2366_vm12 = vcmp.eq.s32.totalorder %v2365_v40, 1  ;;  %vm2374_vm1 = vcmp.eq.s32.totalorder %v2373_v3, 1 }
 0xeeb   : > { %v2269_v24 = vpop.f32.mrf.mxu1 }
 0xeec   : > { %v2284_v42 = vmul.f32 %v2269_v24, %v1878_v20  ;;  %2310 = vmatprep.subr.mxu1 %v2285_v58 }
 0xeed   : > { %2311 = vmatpush1.msra.mxu1 %v2281_v38 }
 0xeee   : > { %2312 = vmatprep.subr.mxu1 %v2284_v42  ;;  %v1829_v42 = vpop.f32.mrf.mxu0 }
 0xeef   : > { %2313 = vmatpush1.msra.mxu1 %v2280_v11  ;;  %v7443_v22 = vadd.f32 %v1829_v42, %v6812_v6 }
 0xef0   : > { %2314 = vmatprep.subr.mxu1 %v2283_v23  ;;  %v5698_v11 = vpop.f32.mrf.mxu0 }
 0xef1   : > { %2315 = vmatpush1.msra.mxu1 %v2279_v62  ;;  %v7430_v34 = vadd.f32 %v5698_v11, %v6800_v37 }
 0xef2   : > { %2316 = vmatprep.subr.mxu1 %v2282_v9  ;;  %v1839_v62 = vpop.f32.mrf.mxu0 }
 0xef3   : > { %2317 = vmatpush1.msra.mxu1 %v2278_v18  ;;  %v7433_v9 = vadd.f32 %v1839_v62, %v6798_v1  ;;  %v7440_v18 = vadd.f32 %v5695_v2, %v6814_v8 }
 0xef4   : > { %5253 = vmatmul.mubr.msk.f32.vlgmr.msra.gmra.mxu1 %vm1119_vm11, %v7393_v49  ;;  %5715 = vmatprep.subr.mxu1 %v8871_v25 }
 0xef5   : > { %5716 = vmatpush3.xpose.msk.msra.mxu1 %vm6491_vm7, %v8872_v43  ;;  %5717 = vmatprep.mubr.msk.f32.mxu1 %vm6165_vm14, %v8871_v25 }
 0xef6   : > { %5720 = vmatprep.subr.mxu1 %v8871_v25 }
 0xfb4   : > { %v2352_v33 = vpop.f32.mrf.mxu1 }
 0xfb5   : > { %v2357_v7 = vmul.f32 0.17677669, %v2352_v33 }
 0xfb6   : > { %v2354_v17 = vpop.f32.mrf.mxu1 }
 0xfb7   : > { %v2358_v51 = vmul.f32 0.17677669, %v2354_v17  ;;  %v2367_v57 = vsel %vm2366_vm12, %v2357_v7, -inf  ;;  %vm8893_vm12 = vcmp.eq.s32.totalorder %v6368_v12, 15 }
 0xfb9   : > { %v2375_v10 = vsel %vm2374_vm1, %v2358_v51, -inf  ;;  %vm8885_vm1 = vcmp.ge.s32.totalorder %v6368_v12, 4 }
 0xfba   : > { %v2376_v20 = vmax.f32 %v2367_v57, %v2375_v10 }
 0xfbc   : > { %2379 = vrot.lane.b32.xlu0 %v2376_v20, %s6159_s15  ;;  %2377 = vrot.lane.b32.xlu1 %v2376_v20, %s6152_s9 }
0x102e   : > { %v2380_v56 = vpop.permute.xlu0 %2379  ;;  %v2378_v41 = vpop.permute.xlu1 %2377 }
0x102f   : > { %v2381_v55 = vsel %vm8840_vm9, %v2378_v41, %v2380_v56 }
0x1030   : > { %v2382_v58 = vmax.f32 %v2376_v20, %v2381_v55 }
0x1032   : > { %2385 = vrot.lane.b32.xlu0 %v2382_v58, %s6160_s25  ;;  %2383 = vrot.lane.b32.xlu1 %v2382_v58, %s6161_s26 }
0x10a4   : > { %v2386_v38 = vpop.permute.xlu0 %2385  ;;  %v2384_v24 = vpop.permute.xlu1 %2383 }
0x10a5   : > { %v2387_v60 = vsel %vm8882_vm0, %v2384_v24, %v2386_v38  ;;  %vm8894_vm0 = vcmp.lt.s32.totalorder %v6368_v12, 8 }
0x10a6   : > { %v2388_v21 = vmax.f32 %v2382_v58, %v2387_v60 }
0x10a8   : > { %2391 = vrot.lane.b32.xlu0 %v2388_v21, %s8883_s11  ;;  %2389 = vrot.lane.b32.xlu1 %v2388_v21, %s8884_s20 }
0x111a   : > { %v2392_v44 = vpop.permute.xlu0 %2391  ;;  %v2390_v36 = vpop.permute.xlu1 %2389 }
0x111b   : > { %v2393_v23 = vsel %vm8885_vm1, %v2390_v36, %v2392_v44  ;;  %vm8895_vm1 = vmmov %vm8894_vm0 }
0x111c   : > { %v2394_v29 = vmax.f32 %v2388_v21, %v2393_v23 }
0x111e   : > { %2397 = vrot.lane.b32.xlu0 %v2394_v29, %s6157_s17  ;;  %2395 = vrot.lane.b32.xlu1 %v2394_v29, %s8846_s19 }
0x1122   : > { %1896 = vrot.lane.b32.xlu0 %v7433_v9, %s6151_s0  ;;  %1898 = vrot.lane.b32.xlu1 %v7430_v34, %s6151_s0 }
0x1126   : > { %1892 = vrot.lane.b32.xlu0 %v7443_v22, %s6151_s0  ;;  %1894 = vrot.lane.b32.xlu1 %v7440_v18, %s6151_s0 }
0x1190   : > { %v2398_v61 = vpop.permute.xlu0 %2397  ;;  %v2396_v0 = vpop.permute.xlu1 %2395 }
0x1191   : > { %v2399_v40 = vsel %vm8886_vm13, %v2396_v0, %v2398_v61  ;;  %vm8896_vm13 = vmmov %vm8893_vm12 }
0x1192   : > { %v2400_v3 = vmax.f32 %v2394_v29, %v2399_v40 }
0x1194   : > { %v2401_v33 = vmax.f32 %v2400_v3, -1e+30  ;;  %v7451_v7 = vpop.permute.xlu0 %1896  ;;  %v7453_v17 = vpop.permute.xlu1 %1898 }
0x1195   : > { %v2034_v51 = vsel %vm732_vm5, %v7451_v7, -inf  ;;  %v2035_v20 = vsel %vm732_vm5, %v7453_v17, -inf }
0x1196   : > { %v2402_v56 = vsub.f32 %v2367_v57, %v2401_v33  ;;  %v2405_v41 = vsub.f32 %v2375_v10, %v2401_v33  ;;  %v2038_v55 = vmax.f32 %v7433_v9, %v2034_v51  ;;  %v2039_v58 = vmax.f32 %v7430_v34, %v2035_v20 }
0x1198   : > { %v2403_v38 = vmul.f32 1.442695, %v2402_v56  ;;  %v2406_v24 = vmul.f32 1.442695, %v2405_v41  ;;  %2044 = vrot.lane.b32.xlu0 %v2038_v55, %s6154_s16  ;;  %v7464_v60 = vpop.permute.xlu0 %1892  ;;  %2046 = vrot.lane.b32.xlu1 %v2039_v58, %s6154_s16  ;;  %v7467_v21 = vpop.permute.xlu1 %1894 }
0x1199   : > { %v2032_v2 = vsel %vm732_vm5, %v7464_v60, -inf  ;;  %v2033_v57 = vsel %vm732_vm5, %v7467_v21, -inf }
0x119a   : > { %5997 = vpow2.f32 %v2403_v38  ;;  %v2036_v10 = vmax.f32 %v7443_v22, %v2032_v2  ;;  %v2037_v42 = vmax.f32 %v7440_v18, %v2033_v57 }
0x119b   : > { %5999 = vpow2.f32 %v2406_v24 }
0x119c   : > { %2040 = vrot.lane.b32.xlu0 %v2036_v10, %s6154_s16  ;;  %2042 = vrot.lane.b32.xlu1 %v2037_v42, %s6154_s16 }
0x11a7   : > { %v7479_v11 = vpop.eup %5997 }
0x11a8   : > { %v7481_v44 = vpop.eup %5999 }
0x11a9   : > { %v2408_v36 = vadd.f32 %v7481_v44, %v7479_v11 }
0x11ab   : > { %5718 = vmatmul.mubr.f32.vlgmr.msra.gmra.mxu1 %v2408_v36 }
0x11ac   : > { %5721 = vmatpush3.msk.msra.mxu1 %vm6491_vm7, %v8872_v43  ;;  %5722 = vmatprep.mubr.msk.f32.mxu1 %vm6165_vm14, %v8871_v25 }
0x120a   : > { %v2045_v23 = vpop.permute.xlu0 %2044  ;;  %v2047_v29 = vpop.permute.xlu1 %2046 }
0x120b   : > { %v2050_v62 = vsel %vm751_vm6, %v2045_v23, -inf  ;;  %v2051_v61 = vsel %vm751_vm6, %v2047_v29, -inf }
0x120c   : > { %v2054_v0 = vmax.f32 %v2038_v55, %v2050_v62  ;;  %v2055_v40 = vmax.f32 %v2039_v58, %v2051_v61 }
0x120e   : > { %2060 = vrot.lane.b32.xlu0 %v2054_v0, %s6155_s13  ;;  %v2041_v3 = vpop.permute.xlu0 %2040  ;;  %2062 = vrot.lane.b32.xlu1 %v2055_v40, %s6155_s13  ;;  %v2043_v33 = vpop.permute.xlu1 %2042 }
0x120f   : > { %v2048_v51 = vsel %vm751_vm6, %v2041_v3, -inf  ;;  %v2049_v20 = vsel %vm751_vm6, %v2043_v33, -inf  ;;  %v7540_v3 = vld [vmem:[%s6322_s21 + $0x50] sm:$0xff] }
0x1210   : > { %v2052_v56 = vmax.f32 %v2036_v10, %v2048_v51  ;;  %v2053_v41 = vmax.f32 %v2037_v42, %v2049_v20  ;;  %v7547_v33 = vld [vmem:[%s6322_s21 + $0x30] sm:$0xff] }
0x1211   : > { %v7550_v51 = vld [vmem:[%s6322_s21 + $0x10] sm:$0xff] }
0x1212   : > { %2056 = vrot.lane.b32.xlu0 %v2052_v56, %s6155_s13  ;;  %2058 = vrot.lane.b32.xlu1 %v2053_v41, %s6155_s13 }
0x1216   : > { %1886 = vrot.lane.b32.xlu1 %v7430_v34, %s6152_s9 }
0x121a   : > { %1884 = vrot.lane.b32.xlu1 %v7433_v9, %s6152_s9 }
0x121e   : > { %1882 = vrot.lane.b32.xlu1 %v7440_v18, %s6152_s9 }
0x1222   : > { %1880 = vrot.lane.b32.xlu1 %v7443_v22, %s6152_s9 }
0x126b   : > { %v2475_v55 = vpop.f32.mrf.mxu1 }
0x126c   : > { %5723 = vmatmul.mubr.msk.f32.vlgmr.msra.gmra.mxu1 %vm8841_vm10, %v2475_v55 }
0x126d   : > { %v5719_v58 = vpop.f32.mrf.mxu1  ;;  %2629 = vmatprep.mubr.f32.mxu1 %v8871_v25 }
0x126e   : > { %v2560_v58 = vrot.slane %v7405_v47, %v6728_v63  ;;  %v7583_v47 = vld [vmem:[%s8800_s5 + $0x8] sm:$0xff] }
0x126f   : > { %8888 = vst [vmem:[#allocation18_spill] sm:$0xff] %v7583_v47 }
0x1280   : > { %v2061_v38 = vpop.permute.xlu0 %2060  ;;  %v2063_v24 = vpop.permute.xlu1 %2062 }
0x1281   : > { %v2067_v2 = vsel %vm770_vm8, %v2063_v24, -inf  ;;  %v2066_v10 = vsel %vm770_vm8, %v2061_v38, -inf }
0x1282   : > { %v7514_v57 = vmax.f32 %v2055_v40, %v2067_v2  ;;  %v7520_v36 = vmax.f32 %v2054_v0, %v2066_v10  ;;  %v7537_v0 = vld [vmem:[%s6322_s21 + $0x70] sm:$0xff] }
0x1283   : > { %2838 = vrot.lane.b32.xlu1 %v7537_v0, %s6151_s0 }
0x1284   : > { %2078 = vrot.lane.b32.xlu0 %v7514_v57, %s6157_s17  ;;  %v2059_v42 = vpop.permute.xlu1 %2058  ;;  %v2057_v29 = vpop.permute.xlu0 %2056 }
0x1285   : > { %v2065_v23 = vsel %vm770_vm8, %v2059_v42, -inf  ;;  %v2064_v61 = vsel %vm770_vm8, %v2057_v29, -inf  ;;  %v7571_v29 = vld [vmem:[%s8800_s5] sm:$0xff] }
0x1286   : > { %v7526_v62 = vmax.f32 %v2053_v41, %v2065_v23  ;;  %v7532_v40 = vmax.f32 %v2052_v56, %v2064_v61  ;;  %8887 = vst [vmem:[#allocation17_spill] sm:$0xff] %v7571_v29 }
0x1287   : > { %2834 = vrot.lane.b32.xlu1 %v7547_v33, %s6151_s0 }
0x1288   : > { %2076 = vrot.lane.b32.xlu0 %v7520_v36, %s6157_s17 }
0x128b   : > { %2826 = vrot.lane.b32.xlu1 %v7537_v0, %s6152_s9 }
0x128c   : > { %2074 = vrot.lane.b32.xlu0 %v7526_v62, %s6157_s17 }
0x128f   : > { %2822 = vrot.lane.b32.xlu1 %v7547_v33, %s6152_s9 }
0x1290   : > { %2072 = vrot.lane.b32.xlu0 %v7532_v40, %s6157_s17 }
0x1294   : > { %2836 = vrot.lane.b32.xlu0 %v7540_v3, %s6151_s0 }
0x1298   : > { %2832 = vrot.lane.b32.xlu0 %v7550_v51, %s6151_s0 }
0x129c   : > { %2824 = vrot.lane.b32.xlu0 %v7540_v3, %s6152_s9 }
0x12a0   : > { %2820 = vrot.lane.b32.xlu0 %v7550_v51, %s6152_s9 }
0x12f6   : > { %v2079_v61 = vpop.permute.xlu0 %2078 }
0x132c   : > { %v2548_v20 = vpop.f32.mrf.mxu1 }
0x132d   : > { %vm2552_vm15 = vcmp.gt.f32.partialorder %v2548_v20, 0.0 }
0x132e   : > { %v2553_v56 = vsel %vm2552_vm15, %v2548_v20, 1.0  ;;  %v5724_v41 = vpop.f32.mrf.mxu1  ;;  %v1887_v20 = vpop.permute.xlu1 %1886 }
0x132f   : > { %6001 = vrcp.f32 %v2553_v56 }
0x133c   : > { %v6002_v55 = vpop.eup %6001 }
0x133d   : > { %v2555_v38 = vmul.f32 %v6002_v55, %v7481_v44  ;;  %v2562_v24 = vmul.f32 %v6002_v55, %v7479_v11  ;;  %v8890_v11 = vld [vmem:[#allocation14_spill] sm:$0xff]  ;;  %v8892_v44 = vld [vmem:[#allocation15_spill] sm:$0xff]  ;;  %v2077_v55 = vpop.permute.xlu0 %2076 }
0x133f   : > { %v2556_v2 = vsel %vm2552_vm15, %v2555_v38, 0.0  ;;  %v2563_v10 = vsel %vm2552_vm15, %v2562_v24, 0.0  ;;  %vm8897_vm15 = vmmov %vm8894_vm0 }
0x1340   : > { %v2561_v42 = vmul.f32 %v2560_v58, %v2556_v2  ;;  %v2564_v23 = vmul.f32 %v2563_v10, %v2560_v58  ;;  %v1885_v58 = vpop.permute.xlu1 %1884  ;;  %v1891_v2 = vsel %vm371_vm3, -inf, %v1887_v20  ;;  %v1902_v20 = vsel %vm8896_vm13, -inf, %v7451_v7 }
0x1341   : > { %v1901_v7 = vsel %vm8893_vm12, -inf, %v7467_v21  ;;  %vm8899_vm13 = vcmask 785408  }
0x1342   : > { %2595 = vmatprep.subr.mxu1 %v2564_v23  ;;  %v2075_v23 = vpop.permute.xlu0 %2074 }
0x1343   : > { %2596 = vmatpush1.msra.mxu1 %v2561_v42  ;;  %v1903_v42 = vsel %vm8893_vm12, -inf, %v7453_v17 }
0x1344   : > { %5257 = vmatmul.mubr.msk.f32.vlgmr.msra.gmra.mxu1 %vm8841_vm10, %v7571_v29  ;;  %5736 = vmatprep.subr.mxu1 %v8871_v25  ;;  %v1890_v29 = vsel %vm371_vm3, -inf, %v1885_v58 }
0x1345   : > { %2635 = vmatprep.mubr.f32.mxu1 %v8871_v25  ;;  %5737 = vmatpush3.xpose.msk.msra.mxu1 %vm1119_vm11, %v6968_v59  ;;  %v7594_v59 = vld [vmem:[%s8800_s5 + $0x10] sm:$0xff] }
0x1346   : > { %5738 = vmatprep.subr.mxu1 %v8871_v25  ;;  %8889 = vst [vmem:[#allocation19_spill] sm:$0xff] %v7594_v59  ;;  %v2073_v58 = vpop.permute.xlu0 %2072 }
0x1348   : > { %5258 = vmatmul.mubr.msk.f32.gmra.mxu1 %vm8841_vm10, %v7583_v47 }
0x1349   : > { %2641 = vmatprep.mubr.f32.mxu1 %v8871_v25  ;;  %5739 = vmatpush3.xpose.msk.msra.mxu1 %vm1119_vm11, %v6976_v53  ;;  %v7605_v53 = vld [vmem:[%s8800_s5 + $0x18] sm:$0xff] }
0x134a   : > { %5740 = vmatprep.subr.mxu1 %v8871_v25  ;;  %8891 = vst [vmem:[#allocation14_spill] sm:$0xff] %v7605_v53 }
0x134c   : > { %5259 = vmatmul.mubr.msk.f32.gmra.mxu1 %vm8841_vm10, %v7594_v59  ;;  %v2082_v59 = vsel %vm8895_vm1, %v2077_v55, -inf  ;;  %vm8898_vm1 = vmmov %vm8893_vm12 }
0x134d   : > { %2647 = vmatprep.mubr.f32.mxu1 %v8871_v25  ;;  %5741 = vmatpush3.xpose.msk.msra.mxu1 %vm1119_vm11, %v8890_v11  ;;  %v1907_v11 = vmax.f32 %v1891_v2, %v1903_v42  ;;  %v2086_v17 = vmax.f32 %v7520_v36, %v2082_v59  ;;  %v1906_v42 = vmax.f32 %v1890_v29, %v1902_v20  ;;  %vm8901_vm12 = vmmov %vm8899_vm13 }
0x134e   : > { %5742 = vmatprep.subr.mxu1 %v8871_v25 }
0x134f   : > { %v1911_v8 = vmax.f32 %v7430_v34, %v1907_v11  ;;  %v2080_v34 = vsel %vm8894_vm0, %v2073_v58, -inf  ;;  %v1910_v59 = vmax.f32 %v7433_v9, %v1906_v42 }
0x1350   : > { %5260 = vmatmul.mubr.msk.f32.gmra.mxu1 %vm8841_vm10, %v7605_v53  ;;  %v2083_v53 = vsel %vm8894_vm0, %v2079_v61, -inf  ;;  %v2081_v61 = vsel %vm8897_vm15, %v2075_v23, -inf  ;;  %vm8900_vm15 = vmmov %vm8899_vm13 }
0x1351   : > { %5743 = vmatpush3.xpose.msk.msra.mxu1 %vm1119_vm11, %v8892_v44  ;;  %5744 = vmatprep.mubr.msk.f32.mxu1 %vm6165_vm14, %v8871_v25  ;;  %v1883_v44 = vpop.permute.xlu1 %1882  ;;  %v2087_v2 = vmax.f32 %v7514_v57, %v2083_v53  ;;  %v2085_v57 = vmax.f32 %v7526_v62, %v2081_v61  ;;  %vm8902_vm0 = vmmov %vm8901_vm12 }
0x1352   : > { %5789 = vmatprep.subr.msk.mxu1 %vm6491_vm7, %v8872_v43  ;;  %v1889_v1 = vsel %vm371_vm3, -inf, %v1883_v44  ;;  %vm8905_vm9 = vmmov %vm8902_vm0 }
0x1353   : > { %v1905_v29 = vmax.f32 %v1889_v1, %v1901_v7  ;;  %v2084_v1 = vmax.f32 %v7532_v40, %v2080_v34  ;;  %vm8906_vm10 = vmmov %vm8902_vm0 }
0x1355   : > { %v1881_v14 = vpop.permute.xlu1 %1880 }
0x1359   : > { %v2839_v11 = vpop.permute.xlu1 %2838 }
0x1404   : > { %v2631_v56 = vpop.f32.mrf.mxu1 }
0x1406   : > { %v2633_v41 = vpop.f32.mrf.mxu1 }
0x1407   : > { %v2658_v23 = vmul.f32 %v2633_v41, %v2084_v1  ;;  %v2837_v41 = vpop.permute.xlu0 %2836 }
0x1408   : > { %v2637_v38 = vpop.f32.mrf.mxu1 }
0x140a   : > { %v2639_v24 = vpop.f32.mrf.mxu1 }
0x140c   : > { %v2643_v10 = vpop.f32.mrf.mxu1 }
0x140d   : > { %v2656_v21 = vmul.f32 %v2643_v10, %v1910_v59 }
0x140e   : > { %v2645_v47 = vpop.f32.mrf.mxu1 }
0x140f   : > { %v2660_v37 = vmul.f32 %v2645_v47, %v2086_v17  ;;  %v1888_v47 = vsel %vm371_vm3, -inf, %v1881_v14 }
0x1410   : > { %v2649_v6 = vpop.f32.mrf.mxu1 }
0x1411   : > { %v2657_v49 = vmul.f32 %v2649_v6, %v1911_v8  ;;  %v2659_v6 = vmul.f32 %v2639_v24, %v2085_v57  ;;  %v2664_v8 = vsel %vm371_vm3, %v2660_v37, 0.0 }
0x1412   : > { %v2651_v55 = vpop.f32.mrf.mxu1  ;;  %v2668_v9 = vadd.f32 %v2664_v8, %v2656_v21 }
0x1413   : > { %v2661_v63 = vmul.f32 %v2651_v55, %v2087_v2  ;;  %v2663_v14 = vsel %vm371_vm3, %v2659_v6, 0.0 }
0x1415   : > { %v2665_v36 = vsel %vm371_vm3, %v2661_v63, 0.0  ;;  %v1900_v63 = vsel %vm8898_vm1, -inf, %v7464_v60  ;;  %v2662_v60 = vsel %vm371_vm3, %v2658_v23, 0.0  ;;  %vm8903_vm1 = vmmov %vm8902_vm0 }
0x1416   : > { %v2669_v53 = vadd.f32 %v2665_v36, %v2657_v49  ;;  %v1904_v62 = vmax.f32 %v1888_v47, %v1900_v63  ;;  %v1909_v49 = vmax.f32 %v7440_v18, %v1905_v29 }
0x1418   : > { %5726 = vmatpush3.xpose.msra.mxu0 %v2669_v53  ;;  %v2655_v24 = vmul.f32 %v2637_v38, %v1909_v49  ;;  %v1908_v37 = vmax.f32 %v7443_v22, %v1904_v62  ;;  %v2835_v22 = vpop.permute.xlu1 %2834 }
0x1419   : > { %5727 = vmatprep.subr.mxu0 %v8871_v25 }
0x141a   : > { %v2667_v10 = vadd.f32 %v2663_v14, %v2655_v24  ;;  %v2654_v40 = vmul.f32 %v2631_v56, %v1908_v37  ;;  %v2833_v56 = vpop.permute.xlu0 %2832 }
0x141c   : > { %5728 = vmatpush3.xpose.msra.mxu0 %v2668_v9  ;;  %v2666_v18 = vadd.f32 %v2662_v60, %v2654_v40 }
0x141d   : > { %5729 = vmatprep.subr.mxu0 %v8871_v25 }
0x141e   : > { %v2825_v38 = vpop.permute.xlu0 %2824 }
0x1420   : > { %5730 = vmatpush3.xpose.msra.mxu0 %v2667_v10 }
0x1421   : > { %5731 = vmatprep.subr.mxu0 %v8871_v25 }
0x1424   : > { %5732 = vmatpush3.xpose.msra.mxu0 %v2666_v18 }
0x1425   : > { %5747 = vmatprep.subr.msk.mxu0 %vm6373_vm2, %v2839_v11 }
0x1427   : > { %5734 = vmatmul.mubr.msk.f32.vlgmr.msra.gmra.mxu0 %vm6491_vm7, %v8872_v43 }
0x1428   : > { %5748 = vmatpush3.msk.msra.mxu0 %vm6373_vm2, %v2839_v11  ;;  %5771 = vmatprep.mubr.msk.f32.mxu0 %vm8899_vm13, %v7056_v54  ;;  %v2827_v54 = vpop.permute.xlu1 %2826  ;;  %vm8904_vm13 = vmmov %vm8902_vm0 }
0x1429   : > { %5749 = vmatprep.subr.msk.mxu0 %vm6373_vm2, %v2837_v41 }
0x142a   : > { %5750 = vmatpush3.msk.msra.mxu0 %vm6373_vm2, %v2837_v41 }
0x142b   : > { %5751 = vmatprep.subr.msk.mxu0 %vm6373_vm2, %v2835_v22 }
0x142c   : > { %5752 = vmatpush3.msk.msra.mxu0 %vm6373_vm2, %v2835_v22 }
0x142d   : > { %5753 = vmatprep.subr.msk.mxu0 %vm6373_vm2, %v2833_v56 }
0x142e   : > { %5754 = vmatpush3.msk.msra.mxu0 %vm6373_vm2, %v2833_v56 }
0x142f   : > { %5755 = vmatprep.subr.mxu0 %v7537_v0 }
0x1430   : > { %5756 = vmatpush3.msra.mxu0 %v7537_v0  ;;  %v2823_v0 = vpop.permute.xlu1 %2822 }
0x1431   : > { %5757 = vmatprep.subr.mxu0 %v7540_v3 }
0x1432   : > { %5758 = vmatpush3.msra.mxu0 %v7540_v3  ;;  %v2821_v3 = vpop.permute.xlu0 %2820 }
0x1433   : > { %5759 = vmatprep.subr.mxu0 %v7547_v33 }
0x1434   : > { %5760 = vmatpush3.msra.mxu0 %v7547_v33 }
0x1435   : > { %5761 = vmatprep.subr.mxu0 %v7550_v51 }
0x1436   : > { %5762 = vmatpush3.msra.mxu0 %v7550_v51 }
0x1437   : > { %5763 = vmatprep.subr.msk.mxu0 %vm6396_vm4, %v2827_v54 }
0x1438   : > { %5764 = vmatpush3.msk.msra.mxu0 %vm6396_vm4, %v2827_v54 }
0x1439   : > { %5765 = vmatprep.subr.msk.mxu0 %vm6396_vm4, %v2825_v38 }
0x143a   : > { %5766 = vmatpush3.msk.msra.mxu0 %vm6396_vm4, %v2825_v38 }
0x143b   : > { %5767 = vmatprep.subr.msk.mxu0 %vm6396_vm4, %v2823_v0 }
0x143c   : > { %5768 = vmatpush3.msk.msra.mxu0 %vm6396_vm4, %v2823_v0 }
0x143d   : > { %5769 = vmatprep.subr.msk.mxu0 %vm6396_vm4, %v2821_v3 }
0x143e   : > { %5770 = vmatpush3.msk.msra.mxu0 %vm6396_vm4, %v2821_v3 }
0x143f   : > { %5772 = vmatmul.mubr.msk.f32.vlgmr.msra.gmra.mxu0 %vm8900_vm15, %v7099_v16  ;;  %5815 = vmatprep.subr.mxu0 %v8871_v25  ;;  %v7726_v16 = vld [vmem:[%s8797_s2 + $0x40] sm:$0xff]  ;;  %vm8907_vm15 = vmmov %vm8902_vm0 }
0x1440   : > { %5774 = vmatprep.mubr.msk.f32.mxu0 %vm8901_vm12, %v7107_v30  ;;  %v7733_v30 = vld [vmem:[%s8797_s2 + $0x48] sm:$0xff]  ;;  %vm8908_vm12 = vmmov %vm8902_vm0 }
0x1443   : > { %5775 = vmatmul.mubr.msk.f32.gmra.mxu0 %vm8902_vm0, %v7114_v45  ;;  %v7740_v45 = vld [vmem:[%s8797_s2 + $0x50] sm:$0xff] }
0x1444   : > { %5777 = vmatprep.mubr.msk.f32.mxu0 %vm8903_vm1, %v7121_v39  ;;  %v7747_v39 = vld [vmem:[%s8797_s2 + $0x58] sm:$0xff] }
0x1447   : > { %5778 = vmatmul.mubr.msk.f32.gmra.mxu0 %vm8904_vm13, %v7128_v28 }
0x1448   : > { %5780 = vmatprep.mubr.msk.f32.mxu0 %vm8905_vm9, %v7135_v31  ;;  %vm8910_vm9 = vmmov %vm8902_vm0 }
0x144b   : > { %5781 = vmatmul.mubr.msk.f32.gmra.mxu0 %vm8906_vm10, %v7142_v15  ;;  %vm8909_vm10 = vmmov %vm8902_vm0  ;;  %vm8911_vm0 = vcmp.lt.s32.totalorder %v6368_v12, 8 }
0x144c   : > { %5783 = vmatprep.mubr.msk.f32.mxu0 %vm8907_vm15, %v7726_v16  ;;  %vm8912_vm1 = vmmov %vm8911_vm0 }
0x144d   : > { %vm8913_vm13 = vmmov %vm8911_vm0 }
0x144e   : > { %vm8914_vm15 = vmmov %vm8911_vm0 }
0x144f   : > { %5784 = vmatmul.mubr.msk.f32.gmra.mxu0 %vm8908_vm12, %v7733_v30  ;;  %vm8915_vm12 = vcmask 64512  }
0x1450   : > { %5786 = vmatprep.mubr.msk.f32.mxu0 %vm8909_vm10, %v7740_v45  ;;  %vm8916_vm10 = vmmov %vm8915_vm12 }
0x1453   : > { %5787 = vmatmul.mubr.msk.f32.gmra.mxu0 %vm8910_vm9, %v7747_v39  ;;  %vm8917_vm9 = vmmov %vm8916_vm10 }
0x1454   : > { %5823 = vmatprep.mubr.msk.f32.mxu0 %vm6165_vm14, %v8871_v25 }
0x14e7   : > { %v2736_v28 = vpop.f32.mrf.mxu0 }
0x14e8   : > { %5745 = vmatmul.mubr.msk.f32.vlgmr.msra.gmra.mxu1 %vm1119_vm11, %v2736_v28 }
0x14e9   : > { %v5735_v31 = vpop.f32.mrf.mxu0  ;;  %5790 = vmatpush3.xpose.msk.msra.mxu1 %vm6491_vm7, %v8872_v43 }
0x14ea   : > { %5797 = vmatprep.subr.msk.mxu1 %vm6491_vm7, %v8872_v43 }
0x14ff   : > { %v5773_v15 = vpop.f32.mrf.mxu0 }
0x1500   : > { %v2916_v33 = vadd.f32 %v5773_v15, %v6430_v27 }
0x1501   : > { %v2910_v51 = vpop.f32.mrf.mxu0 }
0x1502   : > { %v2911_v44 = vadd.f32 %v2910_v51, %v6428_v26  ;;  %3035 = vrot.lane.b32.xlu0 %v2916_v33, %s6151_s0 }
0x1503   : > { %v5776_v20 = vpop.f32.mrf.mxu0 }
0x1504   : > { %v2926_v17 = vadd.f32 %v5776_v20, %v6435_v32  ;;  %3033 = vrot.lane.b32.xlu1 %v2911_v44, %s6151_s0 }
0x1505   : > { %v2920_v2 = vpop.f32.mrf.mxu0 }
0x1506   : > { %v2921_v42 = vadd.f32 %v2920_v2, %v6439_v35  ;;  %3039 = vrot.lane.b32.xlu0 %v2926_v17, %s6151_s0 }
0x1507   : > { %v5779_v18 = vpop.f32.mrf.mxu0 }
0x1508   : > { %3037 = vrot.lane.b32.xlu1 %v2921_v42, %s6151_s0 }
0x1509   : > { %v2930_v11 = vpop.f32.mrf.mxu0 }
0x150b   : > { %v5782_v38 = vpop.f32.mrf.mxu0 }
0x150c   : > { %v7811_v2 = vadd.f32 %v5782_v38, %v6566_v48 }
0x150d   : > { %v2940_v51 = vpop.f32.mrf.mxu0 }
0x1574   : > { %v3036_v61 = vpop.permute.xlu0 %3035 }
0x1575   : > { %v3042_v55 = vsel %vm732_vm5, %v3036_v61, -inf  ;;  %v7821_v61 = vadd.f32 %v5779_v18, %v6580_v52 }
0x1576   : > { %v3046_v58 = vmax.f32 %v2916_v33, %v3042_v55  ;;  %v3034_v7 = vpop.permute.xlu1 %3033 }
0x1577   : > { %v3041_v57 = vsel %vm732_vm5, %v3034_v7, -inf }
0x1578   : > { %v3045_v36 = vmax.f32 %v2911_v44, %v3041_v57  ;;  %3051 = vrot.lane.b32.xlu0 %v3046_v58, %s6154_s16  ;;  %v3040_v29 = vpop.permute.xlu0 %3039 }
0x1579   : > { %v3044_v34 = vsel %vm732_vm5, %v3040_v29, -inf }
0x157a   : > { %v3048_v59 = vmax.f32 %v2926_v17, %v3044_v34  ;;  %3049 = vrot.lane.b32.xlu1 %v3045_v36, %s6154_s16  ;;  %v3038_v53 = vpop.permute.xlu1 %3037  ;;  %v7807_v17 = vadd.f32 %v2940_v51, %v6561_v46 }
0x157b   : > { %v3043_v47 = vsel %vm732_vm5, %v3038_v53, -inf }
0x157c   : > { %v3047_v6 = vmax.f32 %v2921_v42, %v3043_v47  ;;  %3055 = vrot.lane.b32.xlu0 %v3048_v59, %s6154_s16  ;;  %v7816_v42 = vadd.f32 %v2930_v11, %v6573_v50 }
0x157e   : > { %3053 = vrot.lane.b32.xlu1 %v3047_v6, %s6154_s16 }
0x15a8   : > { %v2809_v8 = vpop.f32.mrf.mxu1 }
0x15a9   : > { %v2810_v21 = vadd.f32 %v7188_v5, %v2809_v8 }
0x15aa   : > { %v5746_v63 = vpop.f32.mrf.mxu1 }
0x15ab   : > { %2813 = vst.msk [vmem:[%s7193_s24 + $0x8] sm:$0xff] %vm1119_vm11, %v2810_v21 }
0x15ea   : > { %v3052_v1 = vpop.permute.xlu0 %3051 }
0x15eb   : > { %v3058_v62 = vsel %vm751_vm6, %v3052_v1, -inf }
0x15ec   : > { %v3062_v49 = vmax.f32 %v3046_v58, %v3058_v62  ;;  %v3050_v9 = vpop.permute.xlu1 %3049 }
0x15ed   : > { %v3057_v23 = vsel %vm751_vm6, %v3050_v9, -inf }
0x15ee   : > { %v3061_v14 = vmax.f32 %v3045_v36, %v3057_v23  ;;  %3067 = vrot.lane.b32.xlu0 %v3062_v49, %s6155_s13  ;;  %v3056_v24 = vpop.permute.xlu0 %3055 }
0x15ef   : > { %v3060_v37 = vsel %vm751_vm6, %v3056_v24, -inf }
0x15f0   : > { %v3064_v5 = vmax.f32 %v3048_v59, %v3060_v37  ;;  %3065 = vrot.lane.b32.xlu1 %v3061_v14, %s6155_s13  ;;  %v3054_v10 = vpop.permute.xlu1 %3053 }
0x15f1   : > { %v3059_v60 = vsel %vm751_vm6, %v3054_v10, -inf }
0x15f2   : > { %v3063_v40 = vmax.f32 %v3047_v6, %v3059_v60  ;;  %3071 = vrot.lane.b32.xlu0 %v3064_v5, %s6155_s13 }
0x15f4   : > { %3069 = vrot.lane.b32.xlu1 %v3063_v40, %s6155_s13 }
0x1660   : > { %v3068_v41 = vpop.permute.xlu0 %3067 }
0x1661   : > { %v3074_v22 = vsel %vm770_vm8, %v3068_v41, -inf }
0x1662   : > { %v3078_v56 = vmax.f32 %v3062_v49, %v3074_v22  ;;  %v3066_v54 = vpop.permute.xlu1 %3065 }
0x1663   : > { %v3073_v0 = vsel %vm770_vm8, %v3066_v54, -inf }
0x1664   : > { %v3077_v3 = vmax.f32 %v3061_v14, %v3073_v0  ;;  %3083 = vrot.lane.b32.xlu0 %v3078_v56, %s6157_s17  ;;  %v3072_v28 = vpop.permute.xlu0 %3071 }
0x1665   : > { %v3076_v31 = vsel %vm770_vm8, %v3072_v28, -inf }
0x1666   : > { %v3080_v15 = vmax.f32 %v3064_v5, %v3076_v31  ;;  %3081 = vrot.lane.b32.xlu1 %v3077_v3, %s6157_s17  ;;  %v3070_v33 = vpop.permute.xlu1 %3069 }
0x1667   : > { %v3075_v44 = vsel %vm770_vm8, %v3070_v33, -inf }
0x1668   : > { %v3079_v20 = vmax.f32 %v3063_v40, %v3075_v44  ;;  %3087 = vrot.lane.b32.xlu0 %v3080_v15, %s6157_s17 }
0x166a   : > { %3085 = vrot.lane.b32.xlu1 %v3079_v20, %s6157_s17 }
0x166c   : > { %2985 = vrot.lane.b32.xlu0 %v7807_v17, %s6151_s0 }
0x166e   : > { %2987 = vrot.lane.b32.xlu1 %v7811_v2, %s6151_s0 }
0x1670   : > { %2981 = vrot.lane.b32.xlu0 %v7816_v42, %s6151_s0 }
0x1672   : > { %2983 = vrot.lane.b32.xlu1 %v7821_v61, %s6151_s0 }
0x16d6   : > { %v3084_v55 = vpop.permute.xlu0 %3083 }
0x16d7   : > { %v3090_v58 = vsel %vm8911_vm0, %v3084_v55, -inf  ;;  %vm8918_vm0 = vmmov %vm8917_vm9 }
0x16d8   : > { %v3082_v7 = vpop.permute.xlu1 %3081  ;;  %v7833_v34 = vmax.f32 %v3078_v56, %v3090_v58 }
0x16d9   : > { %v3089_v57 = vsel %vm8912_vm1, %v3082_v7, -inf }
0x16da   : > { %v7831_v36 = vmax.f32 %v3077_v3, %v3089_v57  ;;  %v3088_v29 = vpop.permute.xlu0 %3087 }
0x16db   : > { %v3092_v59 = vsel %vm8913_vm13, %v3088_v29, -inf  ;;  %vm8919_vm13 = vcmp.eq.s32.totalorder %v6368_v12, 15 }
0x16dc   : > { %5791 = vmatprep.mubr.msk.f32.mxu1 %vm371_vm3, %v7831_v36  ;;  %v3086_v53 = vpop.permute.xlu1 %3085  ;;  %v7852_v21 = vmax.f32 %v3080_v15, %v3092_v59 }
0x16dd   : > { %v3091_v47 = vsel %vm8914_vm15, %v3086_v53, -inf  ;;  %5792 = vmatmul.mubr.msk.f32.vlgmr.msra.gmra.mxu1 %vm371_vm3, %v7833_v34  ;;  %vm8920_vm15 = vmmov %vm8912_vm1 }
0x16de   : > { %v7845_v6 = vmax.f32 %v3079_v20, %v3091_v47  ;;  %v7847_v8 = vpop.permute.xlu0 %2985  ;;  %5798 = vmatpush3.msk.msra.mxu1 %vm6491_vm7, %v8872_v43 }
0x16df   : > { %v3099_v63 = vsel %vm732_vm5, %v7847_v8, -inf }
0x16e0   : > { %v3103_v1 = vmax.f32 %v7807_v17, %v3099_v63  ;;  %5794 = vmatprep.mubr.msk.f32.mxu1 %vm371_vm3, %v7845_v6  ;;  %v7861_v62 = vpop.permute.xlu1 %2987 }
0x16e1   : > { %v3100_v49 = vsel %vm732_vm5, %v7861_v62, -inf  ;;  %5795 = vmatmul.mubr.msk.f32.gmra.mxu1 %vm371_vm3, %v7852_v21 }
0x16e2   : > { %v3104_v9 = vmax.f32 %v7811_v2, %v3100_v49  ;;  %3109 = vrot.lane.b32.xlu0 %v3103_v1, %s6154_s16  ;;  %v7871_v23 = vpop.permute.xlu0 %2981 }
0x16e3   : > { %v3097_v14 = vsel %vm732_vm5, %v7871_v23, -inf }
0x16e4   : > { %v3101_v24 = vmax.f32 %v7816_v42, %v3097_v14  ;;  %3111 = vrot.lane.b32.xlu1 %v3104_v9, %s6154_s16  ;;  %v7878_v37 = vpop.permute.xlu1 %2983 }
0x16e5   : > { %v3098_v5 = vsel %vm732_vm5, %v7878_v37, -inf }
0x16e6   : > { %v3102_v10 = vmax.f32 %v7821_v61, %v3098_v5  ;;  %3105 = vrot.lane.b32.xlu0 %v3101_v24, %s6154_s16 }
0x16e8   : > { %3107 = vrot.lane.b32.xlu1 %v3102_v10, %s6154_s16 }
0x1754   : > { %v3110_v60 = vpop.permute.xlu0 %3109 }
0x1755   : > { %v3115_v40 = vsel %vm751_vm6, %v3110_v60, -inf }
0x1756   : > { %v3119_v18 = vmax.f32 %v3103_v1, %v3115_v40  ;;  %v3112_v11 = vpop.permute.xlu1 %3111 }
0x1757   : > { %v3116_v41 = vsel %vm751_vm6, %v3112_v11, -inf }
0x1758   : > { %v3120_v22 = vmax.f32 %v3104_v9, %v3116_v41  ;;  %3125 = vrot.lane.b32.xlu0 %v3119_v18, %s6155_s13  ;;  %v3106_v56 = vpop.permute.xlu0 %3105  ;;  %v2992_v41 = vsel %vm8919_vm13, -inf, %v7861_v62 }
0x1759   : > { %v3113_v54 = vsel %vm751_vm6, %v3106_v56, -inf }
0x175a   : > { %v3117_v38 = vmax.f32 %v3101_v24, %v3113_v54  ;;  %3127 = vrot.lane.b32.xlu1 %v3120_v22, %s6155_s13  ;;  %v3108_v0 = vpop.permute.xlu1 %3107 }
0x175b   : > { %v3114_v3 = vsel %vm751_vm6, %v3108_v0, -inf }
0x175c   : > { %v3118_v28 = vmax.f32 %v3102_v10, %v3114_v3  ;;  %3121 = vrot.lane.b32.xlu0 %v3117_v38, %s6155_s13 }
0x175e   : > { %3123 = vrot.lane.b32.xlu1 %v3118_v28, %s6155_s13 }
0x1760   : > { %2973 = vrot.lane.b32.xlu0 %v7807_v17, %s6152_s9 }
0x1762   : > { %2975 = vrot.lane.b32.xlu1 %v7811_v2, %s6152_s9 }
0x1764   : > { %2971 = vrot.lane.b32.xlu0 %v7821_v61, %s6152_s9 }
0x1768   : > { %2969 = vrot.lane.b32.xlu0 %v7816_v42, %s6152_s9 }
0x179d   : > { %v5793_v31 = vpop.f32.mrf.mxu1 }
0x179f   : > { %v3283_v15 = vpop.f32.mrf.mxu1 }
0x17a0   : > { %5799 = vmatprep.mubr.msk.f32.mxu1 %vm8915_vm12, %v3283_v15  ;;  %vm8921_vm12 = vmmov %vm8919_vm13 }
0x17a1   : > { %v5796_v33 = vpop.f32.mrf.mxu1  ;;  %5800 = vmatmul.mubr.msk.f32.vlgmr.msra.gmra.mxu1 %vm8916_vm10, %v5793_v31  ;;  %v2991_v56 = vsel %vm8921_vm12, -inf, %v7847_v8  ;;  %vm8922_vm10 = vmmov %vm8912_vm1 }
0x17a3   : > { %v3293_v51 = vpop.f32.mrf.mxu1 }
0x17a4   : > { %5802 = vmatprep.mubr.msk.f32.mxu1 %vm8917_vm9, %v3293_v51  ;;  %vm8923_vm9 = vmmov %vm8921_vm12 }
0x17a5   : > { %5803 = vmatmul.mubr.msk.f32.gmra.mxu1 %vm8918_vm0, %v5796_v33  ;;  %v2990_v62 = vsel %vm8923_vm9, -inf, %v7878_v37  ;;  %vm8924_vm0 = vmmov %vm8912_vm1 }
0x17a6   : > { %3471 = vmatprep.mubr.f32.mxu1 %v8871_v25 }
0x17ca   : > { %v3126_v44 = vpop.permute.xlu0 %3125 }
0x17cb   : > { %v3131_v57 = vsel %vm770_vm8, %v3126_v44, -inf }
0x17cc   : > { %v3128_v20 = vpop.permute.xlu1 %3127  ;;  %v3135_v47 = vmax.f32 %v3119_v18, %v3131_v57  ;;  %v3212_v57 = vsel %vm371_vm3, %v7852_v21, 0.0 }
0x17cd   : > { %v3132_v55 = vsel %vm770_vm8, %v3128_v20, -inf }
0x17ce   : > { %v3136_v58 = vmax.f32 %v3120_v22, %v3132_v55  ;;  %v3122_v7 = vpop.permute.xlu0 %3121 }
0x17cf   : > { %v3129_v29 = vsel %vm770_vm8, %v3122_v7, -inf }
0x17d0   : > { %v3133_v59 = vmax.f32 %v3117_v38, %v3129_v29  ;;  %3143 = vrot.lane.b32.xlu1 %v3136_v58, %s6157_s17  ;;  %v3124_v53 = vpop.permute.xlu1 %3123 }
0x17d1   : > { %v3130_v63 = vsel %vm770_vm8, %v3124_v53, -inf }
0x17d2   : > { %3137 = vrot.lane.b32.xlu0 %v3133_v59, %s6157_s17  ;;  %v3134_v1 = vmax.f32 %v3118_v28, %v3130_v63  ;;  %v2974_v9 = vpop.permute.xlu0 %2973 }
0x17d3   : > { %v2979_v18 = vsel %vm371_vm3, -inf, %v2974_v9 }
0x17d4   : > { %3141 = vrot.lane.b32.xlu1 %v3135_v47, %s6157_s17  ;;  %v2976_v49 = vpop.permute.xlu1 %2975  ;;  %v2995_v3 = vmax.f32 %v2979_v18, %v2991_v56  ;;  %v8928_v56 = vld [vmem:[#allocation9_spill] sm:$0xff] }
0x17d5   : > { %v2980_v60 = vsel %vm371_vm3, -inf, %v2976_v49 }
0x17d6   : > { %v2972_v24 = vpop.permute.xlu0 %2971  ;;  %v2996_v54 = vmax.f32 %v2980_v60, %v2992_v41  ;;  %v2999_v53 = vmax.f32 %v7807_v17, %v2995_v3 }
0x17d7   : > { %v2978_v28 = vsel %vm371_vm3, -inf, %v2972_v24 }
0x17d8   : > { %3139 = vrot.lane.b32.xlu1 %v3134_v1, %s6157_s17  ;;  %v2994_v20 = vmax.f32 %v2978_v28, %v2990_v62  ;;  %v3000_v7 = vmax.f32 %v7811_v2, %v2996_v54  ;;  %v3211_v2 = vsel %vm371_vm3, %v7845_v6, 0.0 }
0x17da   : > { %v2970_v10 = vpop.permute.xlu0 %2969 }
0x17db   : > { %v2977_v51 = vsel %vm371_vm3, -inf, %v2970_v10 }
0x1842   : > { %v3144_v14 = vpop.permute.xlu1 %3143 }
0x1843   : > { %v3148_v40 = vsel %vm8912_vm1, %v3144_v14, -inf  ;;  %vm8925_vm1 = vmmov %vm8923_vm9 }
0x1844   : > { %v3152_v38 = vmax.f32 %v3136_v58, %v3148_v40  ;;  %v3138_v0 = vpop.permute.xlu0 %3137  ;;  %v2989_v37 = vsel %vm8925_vm1, -inf, %v7871_v23  ;;  %v2998_v23 = vmax.f32 %v7821_v61, %v2994_v20  ;;  %v3209_v61 = vsel %vm371_vm3, %v7831_v36, 0.0  ;;  %v2819_v36 = vld [vmem:[%s6328_s23 + $0x5] sm:$0x1] }
0x1845   : > { %v3145_v8 = vsel %vm8924_vm0, %v3138_v0, -inf  ;;  %vm3489_vm12 = vcmp.ne.f32.partialorder %v2819_v36, 0.0  ;;  %vm8929_vm0 = vcmp.ge.s32.totalorder %v6368_v12, 1  ;;  %vm8930_vm1 = vcmp.ge.s32.totalorder %v6368_v12, 2 }
0x1846   : > { %v3142_v5 = vpop.permute.xlu1 %3141  ;;  %v3216_v55 = vsel %vm371_vm3, %v3152_v38, 0.0  ;;  %v3149_v63 = vmax.f32 %v3133_v59, %v3145_v8  ;;  %v3210_v59 = vsel %vm371_vm3, %v7833_v34, 0.0  ;;  %v8926_v34 = vld [vmem:[#allocation16_spill] sm:$0xff] }
0x1847   : > { %v3147_v22 = vsel %vm8920_vm15, %v3142_v5, -inf }
0x1848   : > { %v3151_v33 = vmax.f32 %v3135_v47, %v3147_v22  ;;  %v2993_v47 = vmax.f32 %v2977_v51, %v2989_v37  ;;  %v3213_v5 = vsel %vm371_vm3, %v3149_v63, 0.0  ;;  %v5785_v37 = vpop.f32.mrf.mxu0 }
0x1849   : > { %v3399_v18 = vmul.f32 %v3213_v5, %v3209_v61 }
0x184a   : > { %v3140_v11 = vpop.permute.xlu1 %3139  ;;  %v3215_v49 = vsel %vm371_vm3, %v3151_v33, 0.0  ;;  %v2997_v60 = vmax.f32 %v7816_v42, %v2993_v47  ;;  %v7985_v42 = vld [vmem:[%s6328_s23 + $0x4] sm:$0x1] }
0x184b   : > { %v3146_v31 = vsel %vm8922_vm10, %v3140_v11, -inf  ;;  %v3401_v17 = vmul.f32 %v3215_v49, %v3211_v2  ;;  %vm3480_vm13 = vcmp.ne.f32.partialorder %v7985_v42, 0.0  ;;  %v8927_v11 = vmov 0  }
0x184c   : > { %v3150_v58 = vmax.f32 %v3134_v1, %v3146_v31  ;;  %v3402_v1 = vmul.f32 %v3216_v55, %v3212_v57  ;;  %vm3481_vm15 = vmand %vm371_vm3, %vm3480_vm13  ;;  %v3490_v22 = vsel %vm3489_vm12, 1, %v8927_v11  ;;  %vm8931_vm13 = vcmp.ge.s32.totalorder %v6368_v12, 4 }
0x184d   : > { %v3482_v41 = vsel %vm3481_vm15, 1, %v8927_v11  ;;  %v3494_v38 = vrot.slane %v3490_v22, %v8928_v56  ;;  %vm8936_vm15 = vcmp.ge.s32.totalorder %v6368_v12, 8  ;;  %vm8937_vm12 = vcmask 64512  }
0x184e   : > { %v3214_v21 = vsel %vm371_vm3, %v3150_v58, 0.0  ;;  %v3486_v54 = vrot.slane %v3482_v41, %v8928_v56 }
0x184f   : > { %v3400_v6 = vmul.f32 %v3214_v21, %v3210_v59  ;;  %vm3495_vm9 = vcmp.eq.s32.totalorder %v3494_v38, 1  ;;  %v8933_v21 = vld [vmem:[#allocation10_spill] sm:$0xff]  ;;  %v8935_v59 = vld [vmem:[#allocation12_spill] sm:$0xff] }
0x1850   : > { %vm3487_vm10 = vcmp.eq.s32.totalorder %v3486_v54, 1 }
0x1861   : > { %v5801_v15 = vpop.f32.mrf.mxu1 }
0x1862   : > { %v3404_v10 = vmul.f32 %v5801_v15, %v2998_v23 }
0x1863   : > { %v3380_v44 = vpop.f32.mrf.mxu1 }
0x1864   : > { %v3403_v40 = vmul.f32 %v3380_v44, %v2997_v60 }
0x1865   : > { %v5804_v29 = vpop.f32.mrf.mxu1 }
0x1866   : > { %v3406_v9 = vmul.f32 %v5804_v29, %v3000_v7  ;;  %v2950_v29 = vpop.f32.mrf.mxu0 }
0x1867   : > { %v3390_v14 = vpop.f32.mrf.mxu1  ;;  %v8023_v5 = vadd.f32 %v2950_v29, %v8935_v59 }
0x1868   : > { %v3405_v24 = vmul.f32 %v3390_v14, %v2999_v53  ;;  %3431 = vmatprep.subr.mxu1 %v3406_v9  ;;  %v5788_v53 = vpop.f32.mrf.mxu0  ;;  %v8932_v14 = vld [vmem:[#allocation11_spill] sm:$0xff] }
0x1869   : > { %3432 = vmatpush1.msra.mxu1 %v3402_v1  ;;  %v8010_v2 = vadd.f32 %v5788_v53, %v8932_v14 }
0x186a   : > { %3433 = vmatprep.subr.mxu1 %v3405_v24  ;;  %v2960_v1 = vpop.f32.mrf.mxu0  ;;  %v8934_v24 = vld [vmem:[#allocation13_spill] sm:$0xff] }
0x186b   : > { %3434 = vmatpush1.msra.mxu1 %v3401_v17  ;;  %v8013_v23 = vadd.f32 %v2960_v1, %v8933_v21  ;;  %v8020_v17 = vadd.f32 %v5785_v37, %v8934_v24 }
0x186c   : > { %3435 = vmatprep.subr.mxu1 %v3404_v10 }
0x186d   : > { %3436 = vmatpush1.msra.mxu1 %v3400_v6 }
0x186e   : > { %3437 = vmatprep.subr.mxu1 %v3403_v40 }
0x186f   : > { %3438 = vmatpush1.msra.mxu1 %v3399_v18 }
0x1870   : > { %5305 = vmatmul.mubr.msk.f32.vlgmr.msra.gmra.mxu1 %vm1119_vm11, %v8926_v34  ;;  %5805 = vmatprep.subr.mxu1 %v8871_v25 }
0x1871   : > { %5806 = vmatpush3.xpose.msk.msra.mxu1 %vm6491_vm7, %v8872_v43  ;;  %5807 = vmatprep.mubr.msk.f32.mxu1 %vm6165_vm14, %v8871_v25 }
0x1872   : > { %5810 = vmatprep.subr.mxu1 %v8871_v25 }
0x1930   : > { %v3473_v0 = vpop.f32.mrf.mxu1 }
0x1931   : > { %v3478_v3 = vmul.f32 0.17677669, %v3473_v0 }
0x1932   : > { %v3475_v28 = vpop.f32.mrf.mxu1 }
0x1933   : > { %v3479_v31 = vmul.f32 0.17677669, %v3475_v28  ;;  %v3488_v15 = vsel %vm3487_vm10, %v3478_v3, -inf }
0x1935   : > { %v3496_v33 = vsel %vm3495_vm9, %v3479_v31, -inf  ;;  %vm8939_vm9 = vmmov %vm8937_vm12 }
0x1936   : > { %v3497_v62 = vmax.f32 %v3488_v15, %v3496_v33 }
0x1938   : > { %3500 = vrot.lane.b32.xlu0 %v3497_v62, %s6159_s15  ;;  %3498 = vrot.lane.b32.xlu1 %v3497_v62, %s6152_s9 }
0x19aa   : > { %v3501_v51 = vpop.permute.xlu0 %3500  ;;  %v3499_v8 = vpop.permute.xlu1 %3498 }
0x19ab   : > { %v3502_v44 = vsel %vm8929_vm0, %v3499_v8, %v3501_v51  ;;  %vm8942_vm0 = vmmov %vm8939_vm9 }
0x19ac   : > { %v3503_v20 = vmax.f32 %v3497_v62, %v3502_v44 }
0x19ae   : > { %3506 = vrot.lane.b32.xlu0 %v3503_v20, %s6160_s25  ;;  %3504 = vrot.lane.b32.xlu1 %v3503_v20, %s6161_s26 }
0x1a20   : > { %v3507_v55 = vpop.permute.xlu0 %3506  ;;  %v3505_v58 = vpop.permute.xlu1 %3504 }
0x1a21   : > { %v3508_v7 = vsel %vm8930_vm1, %v3505_v58, %v3507_v55  ;;  %vm8945_vm1 = vmmov %vm8942_vm0 }
0x1a22   : > { %v3509_v57 = vmax.f32 %v3503_v20, %v3508_v7 }
0x1a24   : > { %3512 = vrot.lane.b32.xlu0 %v3509_v57, %s8883_s11  ;;  %3510 = vrot.lane.b32.xlu1 %v3509_v57, %s8884_s20 }
0x1a96   : > { %v3513_v47 = vpop.permute.xlu0 %3512  ;;  %v3511_v63 = vpop.permute.xlu1 %3510 }
0x1a97   : > { %v3514_v49 = vsel %vm8931_vm13, %v3511_v63, %v3513_v47  ;;  %vm8948_vm13 = vmmov %vm8942_vm0 }
0x1a98   : > { %v3515_v9 = vmax.f32 %v3509_v57, %v3514_v49 }
0x1a9a   : > { %3518 = vrot.lane.b32.xlu0 %v3515_v9, %s6157_s17  ;;  %3516 = vrot.lane.b32.xlu1 %v3515_v9, %s8846_s19 }
0x1a9e   : > { %3017 = vrot.lane.b32.xlu0 %v8013_v23, %s6151_s0  ;;  %3019 = vrot.lane.b32.xlu1 %v8010_v2, %s6151_s0 }
0x1aa2   : > { %3013 = vrot.lane.b32.xlu0 %v8023_v5, %s6151_s0  ;;  %3015 = vrot.lane.b32.xlu1 %v8020_v17, %s6151_s0 }
0x1b0c   : > { %v3519_v10 = vpop.permute.xlu0 %3518  ;;  %v3517_v60 = vpop.permute.xlu1 %3516 }
0x1b0d   : > { %v3520_v6 = vsel %vm8936_vm15, %v3517_v60, %v3519_v10  ;;  %vm8950_vm15 = vcmp.eq.s32.totalorder %v6368_v12, 15 }
0x1b0e   : > { %v3521_v61 = vmax.f32 %v3515_v9, %v3520_v6 }
0x1b10   : > { %v3522_v40 = vmax.f32 %v3521_v61, -1e+30  ;;  %v8031_v18 = vpop.permute.xlu0 %3017  ;;  %v8033_v34 = vpop.permute.xlu1 %3019 }
0x1b11   : > { %v3155_v36 = vsel %vm732_vm5, %v8031_v18, -inf  ;;  %v3156_v41 = vsel %vm732_vm5, %v8033_v34, -inf }
0x1b12   : > { %v3523_v22 = vsub.f32 %v3488_v15, %v3522_v40  ;;  %v3526_v54 = vsub.f32 %v3496_v33, %v3522_v40  ;;  %v3159_v38 = vmax.f32 %v8013_v23, %v3155_v36  ;;  %v3160_v0 = vmax.f32 %v8010_v2, %v3156_v41 }
0x1b14   : > { %v3524_v3 = vmul.f32 1.442695, %v3523_v22  ;;  %v3527_v28 = vmul.f32 1.442695, %v3526_v54  ;;  %3165 = vrot.lane.b32.xlu0 %v3159_v38, %s6154_s16  ;;  %v8044_v31 = vpop.permute.xlu0 %3013  ;;  %3167 = vrot.lane.b32.xlu1 %v3160_v0, %s6154_s16  ;;  %v8047_v62 = vpop.permute.xlu1 %3015 }
0x1b15   : > { %v3153_v51 = vsel %vm732_vm5, %v8044_v31, -inf  ;;  %v3154_v15 = vsel %vm732_vm5, %v8047_v62, -inf }
0x1b16   : > { %6003 = vpow2.f32 %v3524_v3  ;;  %v3157_v33 = vmax.f32 %v8023_v5, %v3153_v51  ;;  %v3158_v8 = vmax.f32 %v8020_v17, %v3154_v15 }
0x1b17   : > { %6005 = vpow2.f32 %v3527_v28 }
0x1b18   : > { %3161 = vrot.lane.b32.xlu0 %v3157_v33, %s6154_s16  ;;  %3163 = vrot.lane.b32.xlu1 %v3158_v8, %s6154_s16 }
0x1b23   : > { %v8059_v44 = vpop.eup %6003 }
0x1b24   : > { %v8061_v20 = vpop.eup %6005 }
0x1b25   : > { %v3529_v55 = vadd.f32 %v8061_v20, %v8059_v44 }
0x1b27   : > { %5808 = vmatmul.mubr.f32.vlgmr.msra.gmra.mxu1 %v3529_v55  ;;  %v8127_v55 = vld [vmem:[%s6322_s21 + $0x38] sm:$0xff] }
0x1b28   : > { %5811 = vmatpush3.msk.msra.mxu1 %vm6491_vm7, %v8872_v43  ;;  %5812 = vmatprep.mubr.msk.f32.mxu1 %vm6165_vm14, %v8871_v25 }
0x1b86   : > { %v3166_v58 = vpop.permute.xlu0 %3165  ;;  %v3168_v7 = vpop.permute.xlu1 %3167 }
0x1b87   : > { %v3171_v57 = vsel %vm751_vm6, %v3166_v58, -inf  ;;  %v3172_v37 = vsel %vm751_vm6, %v3168_v7, -inf  ;;  %v8130_v58 = vld [vmem:[%s6322_s21 + $0x18] sm:$0xff] }
0x1b88   : > { %v3175_v29 = vmax.f32 %v3159_v38, %v3171_v57  ;;  %v3176_v53 = vmax.f32 %v3160_v0, %v3172_v37 }
0x1b8a   : > { %3181 = vrot.lane.b32.xlu0 %v3175_v29, %s6155_s13  ;;  %v3162_v47 = vpop.permute.xlu0 %3161  ;;  %3183 = vrot.lane.b32.xlu1 %v3176_v53, %s6155_s13  ;;  %v3164_v63 = vpop.permute.xlu1 %3163 }
0x1b8b   : > { %v3169_v49 = vsel %vm751_vm6, %v3162_v47, -inf  ;;  %v3170_v9 = vsel %vm751_vm6, %v3164_v63, -inf }
0x1b8c   : > { %v3173_v1 = vmax.f32 %v3157_v33, %v3169_v49  ;;  %v3174_v10 = vmax.f32 %v3158_v8, %v3170_v9  ;;  %v8117_v33 = vld [vmem:[%s6322_s21 + $0x78] sm:$0xff] }
0x1b8d   : > { %v8120_v8 = vld [vmem:[%s6322_s21 + $0x58] sm:$0xff] }
0x1b8e   : > { %3177 = vrot.lane.b32.xlu0 %v3173_v1, %s6155_s13  ;;  %3179 = vrot.lane.b32.xlu1 %v3174_v10, %s6155_s13 }
0x1b92   : > { %3007 = vrot.lane.b32.xlu1 %v8010_v2, %s6152_s9 }
0x1b96   : > { %3005 = vrot.lane.b32.xlu1 %v8013_v23, %s6152_s9 }
0x1b9a   : > { %3003 = vrot.lane.b32.xlu1 %v8020_v17, %s6152_s9 }
0x1b9e   : > { %3001 = vrot.lane.b32.xlu1 %v8023_v5, %s6152_s9 }
0x1ba2   : > { %3959 = vrot.lane.b32.xlu1 %v8117_v33, %s6151_s0 }
0x1ba6   : > { %3955 = vrot.lane.b32.xlu1 %v8127_v55, %s6151_s0 }
0x1baa   : > { %3947 = vrot.lane.b32.xlu1 %v8117_v33, %s6152_s9 }
0x1bae   : > { %3943 = vrot.lane.b32.xlu1 %v8127_v55, %s6152_s9 }
0x1be7   : > { %v3596_v60 = vpop.f32.mrf.mxu1 }
0x1be8   : > { %5813 = vmatmul.mubr.msk.f32.vlgmr.msra.gmra.mxu1 %vm8937_vm12, %v3596_v60  ;;  %v8938_v60 = vld [vmem:[#allocation17_spill] sm:$0xff]  ;;  %vm8951_vm12 = vcmp.lt.s32.totalorder %v6368_v12, 8 }
0x1be9   : > { %v5809_v6 = vpop.f32.mrf.mxu1  ;;  %3750 = vmatprep.mubr.f32.mxu1 %v8871_v25 }
0x1bea   : > { %v8944_v6 = vld [vmem:[#allocation19_spill] sm:$0xff] }
0x1bfc   : > { %v3182_v61 = vpop.permute.xlu0 %3181  ;;  %v3184_v40 = vpop.permute.xlu1 %3183 }
0x1bfd   : > { %v3188_v36 = vsel %vm770_vm8, %v3184_v40, -inf  ;;  %v3187_v22 = vsel %vm770_vm8, %v3182_v61, -inf  ;;  %v8177_v61 = vld [vmem:[%s8801_s6 + $0x8] sm:$0xff]  ;;  %v8947_v40 = vld [vmem:[#allocation14_spill] sm:$0xff] }
0x1bfe   : > { %v8094_v41 = vmax.f32 %v3176_v53, %v3188_v36  ;;  %v8100_v38 = vmax.f32 %v3175_v29, %v3187_v22  ;;  %v3681_v53 = vrot.slane %v7985_v42, %v8928_v56  ;;  %v8155_v42 = vld [vmem:[%s8801_s6 + $0x18] sm:$0xff]  ;;  %8946 = vst [vmem:[#allocation9_spill] sm:$0xff] %v8177_v61  ;;  %v8187_v36 = vld [vmem:[%s8801_s6] sm:$0xff] }
0x1bff   : > { %8940 = vst [vmem:[#allocation15_spill] sm:$0xff] %v8155_v42  ;;  %8949 = vst [vmem:[#allocation11_spill] sm:$0xff] %v8187_v36 }
0x1c00   : > { %3199 = vrot.lane.b32.xlu0 %v8094_v41, %s6157_s17  ;;  %v3180_v54 = vpop.permute.xlu1 %3179  ;;  %v3178_v3 = vpop.permute.xlu0 %3177 }
0x1c01   : > { %v3186_v0 = vsel %vm770_vm8, %v3180_v54, -inf  ;;  %v3185_v51 = vsel %vm770_vm8, %v3178_v3, -inf }
0x1c02   : > { %v8106_v28 = vmax.f32 %v3174_v10, %v3186_v0  ;;  %v8112_v15 = vmax.f32 %v3173_v1, %v3185_v51 }
0x1c04   : > { %3197 = vrot.lane.b32.xlu0 %v8100_v38, %s6157_s17  ;;  %v3008_v54 = vpop.permute.xlu1 %3007 }
0x1c08   : > { %3195 = vrot.lane.b32.xlu0 %v8106_v28, %s6157_s17 }
0x1c0c   : > { %3193 = vrot.lane.b32.xlu0 %v8112_v15, %s6157_s17 }
0x1c10   : > { %3957 = vrot.lane.b32.xlu0 %v8120_v8, %s6151_s0 }
0x1c14   : > { %3953 = vrot.lane.b32.xlu0 %v8130_v58, %s6151_s0 }
0x1c18   : > { %3945 = vrot.lane.b32.xlu0 %v8120_v8, %s6152_s9 }
0x1c1c   : > { %3941 = vrot.lane.b32.xlu0 %v8130_v58, %s6152_s9 }
0x1c72   : > { %v3200_v22 = vpop.permute.xlu0 %3199 }
0x1c76   : > { %v3198_v51 = vpop.permute.xlu0 %3197 }
0x1ca8   : > { %v3669_v7 = vpop.f32.mrf.mxu1 }
0x1ca9   : > { %vm3673_vm10 = vcmp.gt.f32.partialorder %v3669_v7, 0.0 }
0x1caa   : > { %v3674_v57 = vsel %vm3673_vm10, %v3669_v7, 1.0  ;;  %v5814_v37 = vpop.f32.mrf.mxu1  ;;  %v3006_v7 = vpop.permute.xlu1 %3005 }
0x1cab   : > { %6007 = vrcp.f32 %v3674_v57 }
0x1cb8   : > { %v6008_v29 = vpop.eup %6007 }
0x1cb9   : > { %v3676_v47 = vmul.f32 %v6008_v29, %v8061_v20  ;;  %v3683_v63 = vmul.f32 %v6008_v29, %v8059_v44  ;;  %v8941_v44 = vld [vmem:[#allocation18_spill] sm:$0xff]  ;;  %v8166_v20 = vld [vmem:[%s8801_s6 + $0x10] sm:$0xff]  ;;  %v3012_v29 = vsel %vm371_vm3, -inf, %v3008_v54 }
0x1cba   : > { %8943 = vst [vmem:[#allocation16_spill] sm:$0xff] %v8166_v20 }
0x1cbb   : > { %v3677_v49 = vsel %vm3673_vm10, %v3676_v47, 0.0  ;;  %v3684_v9 = vsel %vm3673_vm10, %v3683_v63, 0.0  ;;  %v3024_v47 = vsel %vm8950_vm15, -inf, %v8033_v34  ;;  %v3196_v63 = vpop.permute.xlu0 %3195  ;;  %vm8952_vm10 = vmmov %vm8951_vm12 }
0x1cbc   : > { %v3682_v1 = vmul.f32 %v3681_v53, %v3677_v49  ;;  %v3685_v10 = vmul.f32 %v3684_v9, %v3681_v53  ;;  %v3028_v49 = vmax.f32 %v3012_v29, %v3024_v47  ;;  %v3004_v9 = vpop.permute.xlu1 %3003 }
0x1cbe   : > { %3716 = vmatprep.subr.mxu1 %v3685_v10  ;;  %v3203_v10 = vsel %vm8952_vm10, %v3198_v51, -inf  ;;  %v3032_v47 = vmax.f32 %v8010_v2, %v3028_v49 }
0x1cbf   : > { %3717 = vmatpush1.msra.mxu1 %v3682_v1  ;;  %v3204_v1 = vsel %vm8951_vm12, %v3200_v22, -inf  ;;  %v3207_v54 = vmax.f32 %v8100_v38, %v3203_v10  ;;  %vm8958_vm12 = vcmask 785408  }
0x1cc0   : > { %5309 = vmatmul.mubr.msk.f32.vlgmr.msra.gmra.mxu1 %vm8939_vm9, %v8938_v60  ;;  %5826 = vmatprep.subr.mxu1 %v8871_v25  ;;  %vm8953_vm9 = vmmov %vm8950_vm15  ;;  %v3208_v34 = vmax.f32 %v8094_v41, %v3204_v1 }
0x1cc1   : > { %3756 = vmatprep.mubr.f32.mxu1 %v8871_v25  ;;  %5827 = vmatpush3.xpose.msk.msra.mxu1 %vm1119_vm11, %v8155_v42  ;;  %v3002_v42 = vpop.permute.xlu1 %3001 }
0x1cc2   : > { %5828 = vmatprep.subr.mxu1 %v8871_v25  ;;  %v3009_v1 = vsel %vm371_vm3, -inf, %v3002_v42 }
0x1cc4   : > { %5310 = vmatmul.mubr.msk.f32.gmra.mxu1 %vm8942_vm0, %v8941_v44  ;;  %v3011_v44 = vsel %vm371_vm3, -inf, %v3006_v7  ;;  %vm8954_vm0 = vmmov %vm8952_vm10  ;;  %v3194_v7 = vpop.permute.xlu0 %3193 }
0x1cc5   : > { %3762 = vmatprep.mubr.f32.mxu1 %v8871_v25  ;;  %5829 = vmatpush3.xpose.msk.msra.mxu1 %vm1119_vm11, %v8166_v20  ;;  %v3202_v22 = vsel %vm8954_vm0, %v3196_v63, -inf }
0x1cc6   : > { %5830 = vmatprep.subr.mxu1 %v8871_v25  ;;  %v3206_v41 = vmax.f32 %v8106_v28, %v3202_v22  ;;  %v6043_v22 = vld [vmem:[%s8797_s2 + $0x38] sm:$0xff] }
0x1cc8   : > { %5311 = vmatmul.mubr.msk.f32.gmra.mxu1 %vm8945_vm1, %v8944_v6  ;;  %vm8955_vm1 = vmmov %vm8953_vm9 }
0x1cc9   : > { %3768 = vmatprep.mubr.f32.mxu1 %v8871_v25  ;;  %5831 = vmatpush3.xpose.msk.msra.mxu1 %vm1119_vm11, %v8177_v61  ;;  %vm8957_vm15 = vmmov %vm8955_vm1 }
0x1cca   : > { %5832 = vmatprep.subr.mxu1 %v8871_v25  ;;  %v3021_v28 = vsel %vm8957_vm15, -inf, %v8044_v31 }
0x1ccc   : > { %5312 = vmatmul.mubr.msk.f32.gmra.mxu1 %vm8948_vm13, %v8947_v40  ;;  %v3023_v40 = vsel %vm8953_vm9, -inf, %v8031_v18  ;;  %v3022_v18 = vsel %vm8955_vm1, -inf, %v8047_v62  ;;  %vm8956_vm13 = vmmov %vm8954_vm0 }
0x1ccd   : > { %5833 = vmatpush3.xpose.msk.msra.mxu1 %vm1119_vm11, %v8187_v36  ;;  %5834 = vmatprep.mubr.msk.f32.mxu1 %vm6165_vm14, %v8871_v25  ;;  %v3027_v29 = vmax.f32 %v3011_v44, %v3023_v40  ;;  %v3010_v36 = vsel %vm371_vm3, -inf, %v3004_v9  ;;  %v3201_v2 = vsel %vm8956_vm13, %v3194_v7, -inf }
0x1cce   : > { %5879 = vmatprep.subr.msk.mxu1 %vm6491_vm7, %v8872_v43  ;;  %v3026_v63 = vmax.f32 %v3010_v36, %v3022_v18  ;;  %v3025_v36 = vmax.f32 %v3009_v1, %v3021_v28 }
0x1ccf   : > { %v3031_v49 = vmax.f32 %v8013_v23, %v3027_v29  ;;  %v6042_v29 = vld [vmem:[%s8797_s2 + $0x30] sm:$0xff] }
0x1cd0   : > { %v3030_v23 = vmax.f32 %v8020_v17, %v3026_v63 }
0x1d80   : > { %v3752_v0 = vpop.f32.mrf.mxu1 }
0x1d82   : > { %v3754_v3 = vpop.f32.mrf.mxu1 }
0x1d84   : > { %v3758_v57 = vpop.f32.mrf.mxu1 }
0x1d86   : > { %v3760_v37 = vpop.f32.mrf.mxu1 }
0x1d87   : > { %v3780_v10 = vmul.f32 %v3760_v37, %v3206_v41  ;;  %v3776_v37 = vmul.f32 %v3758_v57, %v3030_v23 }
0x1d88   : > { %v3764_v53 = vpop.f32.mrf.mxu1 }
0x1d89   : > { %v3777_v62 = vmul.f32 %v3764_v53, %v3031_v49  ;;  %v3784_v42 = vsel %vm371_vm3, %v3780_v10, 0.0 }
0x1d8a   : > { %v3766_v60 = vpop.f32.mrf.mxu1  ;;  %v3788_v53 = vadd.f32 %v3784_v42, %v3776_v37 }
0x1d8b   : > { %v3781_v61 = vmul.f32 %v3766_v60, %v3207_v54  ;;  %v6041_v54 = vld [vmem:[%s8797_s2 + $0x28] sm:$0xff] }
0x1d8c   : > { %v3770_v6 = vpop.f32.mrf.mxu1 }
0x1d8d   : > { %v3778_v59 = vmul.f32 %v3770_v6, %v3032_v47  ;;  %v3785_v60 = vsel %vm371_vm3, %v3781_v61, 0.0  ;;  %v3029_v61 = vmax.f32 %v8023_v5, %v3025_v36  ;;  %v3960_v6 = vpop.permute.xlu1 %3959 }
0x1d8e   : > { %v3772_v51 = vpop.f32.mrf.mxu1 }
0x1d8f   : > { %v3782_v20 = vmul.f32 %v3772_v51, %v3208_v34 }
0x1d91   : > { %v3786_v38 = vsel %vm371_vm3, %v3782_v20, 0.0  ;;  %v3205_v20 = vmax.f32 %v8112_v15, %v3201_v2  ;;  %v3775_v15 = vmul.f32 %v3752_v0, %v3029_v61  ;;  %v3956_v5 = vpop.permute.xlu1 %3955  ;;  %v6036_v0 = vld [vmem:[%s8797_s2] sm:$0xff] }
0x1d92   : > { %v3790_v9 = vadd.f32 %v3786_v38, %v3778_v59  ;;  %v3789_v59 = vadd.f32 %v3785_v60, %v3777_v62 }
0x1d93   : > { %v3779_v44 = vmul.f32 %v3754_v3, %v3205_v20  ;;  %v3958_v3 = vpop.permute.xlu0 %3957  ;;  %v8359_v20 = vld [vmem:[%s8802_s7] ss:$0 sm:$0xff] }
0x1d94   : > { %5816 = vmatpush3.xpose.msra.mxu0 %v3790_v9 }
0x1d95   : > { %5817 = vmatprep.subr.mxu0 %v8871_v25  ;;  %v3783_v31 = vsel %vm371_vm3, %v3779_v44, 0.0  ;;  %v3948_v40 = vpop.permute.xlu1 %3947 }
0x1d96   : > { %v3787_v17 = vadd.f32 %v3783_v31, %v3775_v15 }
0x1d97   : > { %v3954_v57 = vpop.permute.xlu0 %3953 }
0x1d98   : > { %5818 = vmatpush3.xpose.msra.mxu0 %v3789_v59 }
0x1d99   : > { %5819 = vmatprep.subr.mxu0 %v8871_v25  ;;  %v3944_v13 = vpop.permute.xlu1 %3943 }
0x1d9b   : > { %v3946_v34 = vpop.permute.xlu0 %3945 }
0x1d9c   : > { %5820 = vmatpush3.xpose.msra.mxu0 %v3788_v53 }
0x1d9d   : > { %5821 = vmatprep.subr.mxu0 %v8871_v25 }
0x1da0   : > { %5822 = vmatpush3.xpose.msra.mxu0 %v3787_v17 }
0x1da1   : > { %5837 = vmatprep.subr.msk.mxu0 %vm6373_vm2, %v3960_v6 }
0x1da3   : > { %5824 = vmatmul.mubr.msk.f32.vlgmr.msra.gmra.mxu0 %vm6491_vm7, %v8872_v43 }
0x1da4   : > { %5838 = vmatpush3.msk.msra.mxu0 %vm6373_vm2, %v3960_v6  ;;  %5861 = vmatprep.mubr.msk.f32.mxu0 %vm8958_vm12, %v6036_v0 }
0x1da5   : > { %5839 = vmatprep.subr.msk.mxu0 %vm6373_vm2, %v3958_v3 }
0x1da6   : > { %5840 = vmatpush3.msk.msra.mxu0 %vm6373_vm2, %v3958_v3 }
0x1da7   : > { %5841 = vmatprep.subr.msk.mxu0 %vm6373_vm2, %v3956_v5 }
0x1da8   : > { %5842 = vmatpush3.msk.msra.mxu0 %vm6373_vm2, %v3956_v5 }
0x1da9   : > { %5843 = vmatprep.subr.msk.mxu0 %vm6373_vm2, %v3954_v57 }
0x1daa   : > { %5844 = vmatpush3.msk.msra.mxu0 %vm6373_vm2, %v3954_v57  ;;  %vm8959_vm2 = vmmov %vm8958_vm12 }
0x1dab   : > { %5845 = vmatprep.subr.mxu0 %v8117_v33  ;;  %vm8960_vm10 = vmmov %vm8959_vm2 }
0x1dac   : > { %5846 = vmatpush3.msra.mxu0 %v8117_v33  ;;  %v3942_v33 = vpop.permute.xlu0 %3941  ;;  %vm8961_vm9 = vmmov %vm8959_vm2 }
0x1dad   : > { %5847 = vmatprep.subr.mxu0 %v8120_v8  ;;  %vm8963_vm0 = vmmov %vm8959_vm2 }
0x1dae   : > { %5848 = vmatpush3.msra.mxu0 %v8120_v8  ;;  %v6037_v8 = vld [vmem:[%s8797_s2 + $0x8] sm:$0xff]  ;;  %vm8964_vm1 = vmmov %vm8963_vm0 }
0x1daf   : > { %5849 = vmatprep.subr.mxu0 %v8127_v55  ;;  %vm8965_vm13 = vmmov %vm8963_vm0 }
0x1db0   : > { %5850 = vmatpush3.msra.mxu0 %v8127_v55  ;;  %v6038_v55 = vld [vmem:[%s8797_s2 + $0x10] sm:$0xff]  ;;  %vm8966_vm15 = vmmov %vm8963_vm0 }
0x1db1   : > { %5851 = vmatprep.subr.mxu0 %v8130_v58  ;;  %vm8967_vm12 = vmmov %vm8963_vm0 }
0x1db2   : > { %5852 = vmatpush3.msra.mxu0 %v8130_v58  ;;  %v6039_v58 = vld [vmem:[%s8797_s2 + $0x18] sm:$0xff] }
0x1db3   : > { %5853 = vmatprep.subr.msk.mxu0 %vm6396_vm4, %v3948_v40 }
0x1db4   : > { %5854 = vmatpush3.msk.msra.mxu0 %vm6396_vm4, %v3948_v40 }
0x1db5   : > { %5855 = vmatprep.subr.msk.mxu0 %vm6396_vm4, %v3946_v34 }
0x1db6   : > { %5856 = vmatpush3.msk.msra.mxu0 %vm6396_vm4, %v3946_v34 }
0x1db7   : > { %5857 = vmatprep.subr.msk.mxu0 %vm6396_vm4, %v3944_v13 }
0x1db8   : > { %5858 = vmatpush3.msk.msra.mxu0 %vm6396_vm4, %v3944_v13 }
0x1db9   : > { %5859 = vmatprep.subr.msk.mxu0 %vm6396_vm4, %v3942_v33 }
0x1dba   : > { %5860 = vmatpush3.msk.msra.mxu0 %vm6396_vm4, %v3942_v33  ;;  %vm8962_vm4 = vmmov %vm8959_vm2 }
0x1dbb   : > { %5862 = vmatmul.mubr.msk.f32.vlgmr.msra.gmra.mxu0 %vm8959_vm2, %v6037_v8  ;;  %5905 = vmatprep.subr.mxu0 %v8871_v25  ;;  %vm8968_vm2 = vmmov %vm8963_vm0 }
0x1dbc   : > { %5864 = vmatprep.mubr.msk.f32.mxu0 %vm8960_vm10, %v6038_v55  ;;  %vm8969_vm10 = vmmov %vm8963_vm0 }
0x1dbf   : > { %5865 = vmatmul.mubr.msk.f32.gmra.mxu0 %vm8961_vm9, %v6039_v58  ;;  %vm8970_vm9 = vcmp.lt.s32.totalorder %v6368_v12, 8 }
0x1dc0   : > { %5867 = vmatprep.mubr.msk.f32.mxu0 %vm8962_vm4, %v6040_v19  ;;  %vm8971_vm4 = vmmov %vm8970_vm9 }
0x1dc3   : > { %5868 = vmatmul.mubr.msk.f32.gmra.mxu0 %vm8963_vm0, %v6041_v54  ;;  %vm8972_vm0 = vmmov %vm8971_vm4 }
0x1dc4   : > { %5870 = vmatprep.mubr.msk.f32.mxu0 %vm8964_vm1, %v6042_v29  ;;  %vm8973_vm1 = vmmov %vm8972_vm0 }
0x1dc7   : > { %5871 = vmatmul.mubr.msk.f32.gmra.mxu0 %vm8965_vm13, %v6043_v22  ;;  %vm8974_vm13 = vcmask 64512  }
0x1dc8   : > { %5873 = vmatprep.mubr.msk.f32.mxu0 %vm8966_vm15, %v7726_v16  ;;  %vm8975_vm15 = vmmov %vm8974_vm13 }
0x1dcb   : > { %5874 = vmatmul.mubr.msk.f32.gmra.mxu0 %vm8967_vm12, %v7733_v30  ;;  %vm8976_vm12 = vmmov %vm8974_vm13 }
0x1dcc   : > { %5876 = vmatprep.mubr.msk.f32.mxu0 %vm8968_vm2, %v7740_v45  ;;  %vm8977_vm2 = vmmov %vm8976_vm12 }
0x1dcf   : > { %5877 = vmatmul.mubr.msk.f32.gmra.mxu0 %vm8969_vm10, %v7747_v39  ;;  %vm8978_vm10 = vmmov %vm8972_vm0 }
0x1dd0   : > { %5913 = vmatprep.mubr.msk.f32.mxu0 %vm6165_vm14, %v8871_v25 }
0x1e63   : > { %v3857_v47 = vpop.f32.mrf.mxu0 }
0x1e64   : > { %5835 = vmatmul.mubr.msk.f32.vlgmr.msra.gmra.mxu1 %vm1119_vm11, %v3857_v47 }
0x1e65   : > { %v5825_v51 = vpop.f32.mrf.mxu0  ;;  %5880 = vmatpush3.xpose.msk.msra.mxu1 %vm6491_vm7, %v8872_v43 }
0x1e66   : > { %5887 = vmatprep.subr.msk.mxu1 %vm6491_vm7, %v8872_v43 }
0x1e7b   : > { %v5863_v16 = vpop.f32.mrf.mxu0 }
0x1e7c   : > { %v4037_v30 = vadd.f32 %v5863_v16, %v6430_v27 }
0x1e7d   : > { %v4031_v45 = vpop.f32.mrf.mxu0 }
0x1e7e   : > { %v4032_v39 = vadd.f32 %v4031_v45, %v6428_v26  ;;  %4156 = vrot.lane.b32.xlu0 %v4037_v30, %s6151_s0 }
0x1e7f   : > { %v5866_v7 = vpop.f32.mrf.mxu0 }
0x1e80   : > { %v4047_v18 = vadd.f32 %v5866_v7, %v6435_v32  ;;  %4154 = vrot.lane.b32.xlu1 %v4032_v39, %s6151_s0 }
0x1e81   : > { %v4041_v41 = vpop.f32.mrf.mxu0 }
0x1e82   : > { %v4042_v38 = vadd.f32 %v4041_v41, %v6439_v35  ;;  %4160 = vrot.lane.b32.xlu0 %v4047_v18, %s6151_s0 }
0x1e83   : > { %v5869_v0 = vpop.f32.mrf.mxu0 }
0x1e84   : > { %4158 = vrot.lane.b32.xlu1 %v4042_v38, %s6151_s0  ;;  %v8402_v7 = vadd.f32 %v5869_v0, %v6580_v52 }
0x1e85   : > { %v4051_v57 = vpop.f32.mrf.mxu0 }
0x1e87   : > { %v5872_v8 = vpop.f32.mrf.mxu0 }
0x1e88   : > { %v8392_v45 = vadd.f32 %v5872_v8, %v6566_v48 }
0x1e89   : > { %v4061_v47 = vpop.f32.mrf.mxu0 }
0x1ef0   : > { %v4157_v63 = vpop.permute.xlu0 %4156 }
0x1ef1   : > { %v4163_v27 = vsel %vm732_vm5, %v4157_v63, -inf }
0x1ef2   : > { %v4167_v2 = vmax.f32 %v4037_v30, %v4163_v27  ;;  %v4155_v26 = vpop.permute.xlu1 %4154  ;;  %v8388_v30 = vadd.f32 %v4061_v47, %v6561_v46 }
0x1ef3   : > { %v4162_v49 = vsel %vm732_vm5, %v4155_v26, -inf }
0x1ef4   : > { %v4166_v32 = vmax.f32 %v4032_v39, %v4162_v49  ;;  %4172 = vrot.lane.b32.xlu0 %v4167_v2, %s6154_s16  ;;  %v4161_v9 = vpop.permute.xlu0 %4160  ;;  %v8397_v39 = vadd.f32 %v4051_v57, %v6573_v50 }
0x1ef5   : > { %v4165_v35 = vsel %vm732_vm5, %v4161_v9, -inf }
0x1ef6   : > { %v4169_v1 = vmax.f32 %v4047_v18, %v4165_v35  ;;  %4170 = vrot.lane.b32.xlu1 %v4166_v32, %s6154_s16  ;;  %v4159_v10 = vpop.permute.xlu1 %4158 }
0x1ef7   : > { %v4164_v60 = vsel %vm732_vm5, %v4159_v10, -inf }
0x1ef8   : > { %v4168_v62 = vmax.f32 %v4042_v38, %v4164_v60  ;;  %4176 = vrot.lane.b32.xlu0 %v4169_v1, %s6154_s16 }
0x1efa   : > { %4174 = vrot.lane.b32.xlu1 %v4168_v62, %s6154_s16 }
0x1f24   : > { %v3930_v28 = vpop.f32.mrf.mxu1 }
0x1f25   : > { %v3931_v36 = vadd.f32 %v8359_v20, %v3930_v28 }
0x1f26   : > { %v5836_v23 = vpop.f32.mrf.mxu1 }
0x1f27   : > { %3934 = vst.msk [vmem:[%s7193_s24 + $0x10] sm:$0xff] %vm1119_vm11, %v3931_v36 }
0x1f66   : > { %v4173_v59 = vpop.permute.xlu0 %4172 }
0x1f67   : > { %v4179_v44 = vsel %vm751_vm6, %v4173_v59, -inf }
0x1f68   : > { %v4183_v42 = vmax.f32 %v4167_v2, %v4179_v44  ;;  %v4171_v37 = vpop.permute.xlu1 %4170 }
0x1f69   : > { %v4178_v61 = vsel %vm751_vm6, %v4171_v37, -inf }
0x1f6a   : > { %v4182_v53 = vmax.f32 %v4166_v32, %v4178_v61  ;;  %4188 = vrot.lane.b32.xlu0 %v4183_v42, %s6155_s13  ;;  %v4177_v31 = vpop.permute.xlu0 %4176 }
0x1f6b   : > { %v4181_v15 = vsel %vm751_vm6, %v4177_v31, -inf }
0x1f6c   : > { %v4185_v17 = vmax.f32 %v4169_v1, %v4181_v15  ;;  %4186 = vrot.lane.b32.xlu1 %v4182_v53, %s6155_s13  ;;  %v4175_v6 = vpop.permute.xlu1 %4174 }
0x1f6d   : > { %v4180_v3 = vsel %vm751_vm6, %v4175_v6, -inf }
0x1f6e   : > { %v4184_v5 = vmax.f32 %v4168_v62, %v4180_v3  ;;  %4192 = vrot.lane.b32.xlu0 %v4185_v17, %s6155_s13 }
0x1f70   : > { %4190 = vrot.lane.b32.xlu1 %v4184_v5, %s6155_s13 }
0x1fdc   : > { %v4189_v40 = vpop.permute.xlu0 %4188 }
0x1fdd   : > { %v4195_v34 = vsel %vm770_vm8, %v4189_v40, -inf }
0x1fde   : > { %v4199_v13 = vmax.f32 %v4183_v42, %v4195_v34  ;;  %v4187_v33 = vpop.permute.xlu1 %4186 }
0x1fdf   : > { %v4194_v55 = vsel %vm770_vm8, %v4187_v33, -inf }
0x1fe0   : > { %v4198_v58 = vmax.f32 %v4182_v53, %v4194_v55  ;;  %4204 = vrot.lane.b32.xlu0 %v4199_v13, %s6157_s17  ;;  %v4193_v19 = vpop.permute.xlu0 %4192 }
0x1fe1   : > { %v4197_v54 = vsel %vm770_vm8, %v4193_v19, -inf }
0x1fe2   : > { %v4201_v29 = vmax.f32 %v4185_v17, %v4197_v54  ;;  %4202 = vrot.lane.b32.xlu1 %v4198_v58, %s6157_s17  ;;  %v4191_v22 = vpop.permute.xlu1 %4190 }
0x1fe3   : > { %v4196_v51 = vsel %vm770_vm8, %v4191_v22, -inf }
0x1fe4   : > { %v4200_v16 = vmax.f32 %v4184_v5, %v4196_v51  ;;  %4208 = vrot.lane.b32.xlu0 %v4201_v29, %s6157_s17 }
0x1fe6   : > { %4206 = vrot.lane.b32.xlu1 %v4200_v16, %s6157_s17 }
0x1fe8   : > { %4106 = vrot.lane.b32.xlu0 %v8388_v30, %s6151_s0 }
0x1fea   : > { %4108 = vrot.lane.b32.xlu1 %v8392_v45, %s6151_s0 }
0x1fec   : > { %4102 = vrot.lane.b32.xlu0 %v8397_v39, %s6151_s0 }
0x1fee   : > { %4104 = vrot.lane.b32.xlu1 %v8402_v7, %s6151_s0 }
0x2052   : > { %v4205_v46 = vpop.permute.xlu0 %4204 }
0x2053   : > { %v4211_v48 = vsel %vm8970_vm9, %v4205_v46, -inf  ;;  %vm8979_vm9 = vcmp.eq.s32.totalorder %v6368_v12, 15 }
0x2054   : > { %v4203_v18 = vpop.permute.xlu1 %4202  ;;  %v8414_v63 = vmax.f32 %v4199_v13, %v4211_v48 }
0x2055   : > { %v4210_v50 = vsel %vm8971_vm4, %v4203_v18, -inf  ;;  %vm8980_vm4 = vmmov %vm8972_vm0 }
0x2056   : > { %v8412_v41 = vmax.f32 %v4198_v58, %v4210_v50  ;;  %v4209_v38 = vpop.permute.xlu0 %4208 }
0x2057   : > { %v4213_v52 = vsel %vm8972_vm0, %v4209_v38, -inf  ;;  %vm8981_vm0 = vmmov %vm8979_vm9 }
0x2058   : > { %5881 = vmatprep.mubr.msk.f32.mxu1 %vm371_vm3, %v8412_v41  ;;  %v4207_v27 = vpop.permute.xlu1 %4206  ;;  %v8433_v32 = vmax.f32 %v4201_v29, %v4213_v52 }
0x2059   : > { %v4212_v2 = vsel %vm8973_vm1, %v4207_v27, -inf  ;;  %5882 = vmatmul.mubr.msk.f32.vlgmr.msra.gmra.mxu1 %vm371_vm3, %v8414_v63 }
0x205a   : > { %v8426_v26 = vmax.f32 %v4200_v16, %v4212_v2  ;;  %v8428_v49 = vpop.permute.xlu0 %4106  ;;  %5888 = vmatpush3.msk.msra.mxu1 %vm6491_vm7, %v8872_v43 }
0x205b   : > { %v4220_v9 = vsel %vm732_vm5, %v8428_v49, -inf }
0x205c   : > { %v4224_v35 = vmax.f32 %v8388_v30, %v4220_v9  ;;  %5884 = vmatprep.mubr.msk.f32.mxu1 %vm371_vm3, %v8426_v26  ;;  %v8442_v1 = vpop.permute.xlu1 %4108 }
0x205d   : > { %v4221_v10 = vsel %vm732_vm5, %v8442_v1, -inf  ;;  %5885 = vmatmul.mubr.msk.f32.gmra.mxu1 %vm371_vm3, %v8433_v32 }
0x205e   : > { %v4225_v60 = vmax.f32 %v8392_v45, %v4221_v10  ;;  %4230 = vrot.lane.b32.xlu0 %v4224_v35, %s6154_s16  ;;  %v8452_v62 = vpop.permute.xlu0 %4102 }
0x205f   : > { %v4218_v28 = vsel %vm732_vm5, %v8452_v62, -inf }
0x2060   : > { %v4222_v36 = vmax.f32 %v8397_v39, %v4218_v28  ;;  %4232 = vrot.lane.b32.xlu1 %v4225_v60, %s6154_s16  ;;  %v8459_v23 = vpop.permute.xlu1 %4104  ;;  %v4113_v28 = vsel %vm8979_vm9, -inf, %v8442_v1 }
0x2061   : > { %v4219_v59 = vsel %vm732_vm5, %v8459_v23, -inf }
0x2062   : > { %v4223_v44 = vmax.f32 %v8402_v7, %v4219_v59  ;;  %4226 = vrot.lane.b32.xlu0 %v4222_v36, %s6154_s16  ;;  %v4112_v59 = vsel %vm8981_vm0, -inf, %v8428_v49 }
0x2064   : > { %4228 = vrot.lane.b32.xlu1 %v4223_v44, %s6154_s16 }
0x20d0   : > { %v4231_v42 = vpop.permute.xlu0 %4230 }
0x20d1   : > { %v4236_v37 = vsel %vm751_vm6, %v4231_v42, -inf }
0x20d2   : > { %v4240_v61 = vmax.f32 %v4224_v35, %v4236_v37  ;;  %v4233_v53 = vpop.permute.xlu1 %4232 }
0x20d3   : > { %v4237_v31 = vsel %vm751_vm6, %v4233_v53, -inf }
0x20d4   : > { %v4241_v15 = vmax.f32 %v4225_v60, %v4237_v31  ;;  %4246 = vrot.lane.b32.xlu0 %v4240_v61, %s6155_s13  ;;  %v4227_v17 = vpop.permute.xlu0 %4226 }
0x20d5   : > { %v4234_v6 = vsel %vm751_vm6, %v4227_v17, -inf }
0x20d6   : > { %v4238_v3 = vmax.f32 %v4222_v36, %v4234_v6  ;;  %4248 = vrot.lane.b32.xlu1 %v4241_v15, %s6155_s13  ;;  %v4229_v5 = vpop.permute.xlu1 %4228 }
0x20d7   : > { %v4235_v0 = vsel %vm751_vm6, %v4229_v5, -inf }
0x20d8   : > { %v4239_v57 = vmax.f32 %v4223_v44, %v4235_v0  ;;  %4242 = vrot.lane.b32.xlu0 %v4238_v3, %s6155_s13 }
0x20da   : > { %4244 = vrot.lane.b32.xlu1 %v4239_v57, %s6155_s13 }
0x20dc   : > { %4094 = vrot.lane.b32.xlu0 %v8388_v30, %s6152_s9 }
0x20de   : > { %4096 = vrot.lane.b32.xlu1 %v8392_v45, %s6152_s9 }
0x20e0   : > { %4092 = vrot.lane.b32.xlu0 %v8402_v7, %s6152_s9 }
0x20e4   : > { %4090 = vrot.lane.b32.xlu0 %v8397_v39, %s6152_s9 }
0x2119   : > { %v5883_v40 = vpop.f32.mrf.mxu1 }
0x211b   : > { %v4404_v34 = vpop.f32.mrf.mxu1 }
0x211c   : > { %5889 = vmatprep.mubr.msk.f32.mxu1 %vm8974_vm13, %v4404_v34  ;;  %vm8982_vm13 = vmmov %vm8981_vm0  ;;  %v4333_v34 = vsel %vm371_vm3, %v8433_v32, 0.0 }
0x211d   : > { %v5886_v13 = vpop.f32.mrf.mxu1  ;;  %5890 = vmatmul.mubr.msk.f32.vlgmr.msra.gmra.mxu1 %vm8975_vm15, %v5883_v40  ;;  %v4111_v1 = vsel %vm8982_vm13, -inf, %v8459_v23  ;;  %vm8983_vm15 = vmmov %vm8973_vm1  ;;  %vm8986_vm13 = vcmp.ge.s32.totalorder %v6368_v12, 2 }
0x211f   : > { %v4414_v33 = vpop.f32.mrf.mxu1 }
0x2120   : > { %5892 = vmatprep.mubr.msk.f32.mxu1 %vm8976_vm12, %v4414_v33  ;;  %vm8984_vm12 = vmmov %vm8981_vm0 }
0x2121   : > { %5893 = vmatmul.mubr.msk.f32.gmra.mxu1 %vm8977_vm2, %v5886_v13  ;;  %v4110_v23 = vsel %vm8984_vm12, -inf, %v8452_v62  ;;  %vm8990_vm12 = vcmp.ge.s32.totalorder %v6368_v12, 8 }
0x2122   : > { %4592 = vmatprep.mubr.f32.mxu1 %v8871_v25 }
0x2146   : > { %v4247_v8 = vpop.permute.xlu0 %4246 }
0x2147   : > { %v4252_v29 = vsel %vm770_vm8, %v4247_v8, -inf }
0x2148   : > { %v4249_v55 = vpop.permute.xlu1 %4248  ;;  %v4256_v16 = vmax.f32 %v4240_v61, %v4252_v29 }
0x2149   : > { %v4253_v58 = vsel %vm770_vm8, %v4249_v55, -inf }
0x214a   : > { %v4257_v19 = vmax.f32 %v4241_v15, %v4253_v58  ;;  %v4243_v54 = vpop.permute.xlu0 %4242 }
0x214b   : > { %v4250_v22 = vsel %vm770_vm8, %v4243_v54, -inf }
0x214c   : > { %v4254_v47 = vmax.f32 %v4238_v3, %v4250_v22  ;;  %4264 = vrot.lane.b32.xlu1 %v4257_v19, %s6157_s17  ;;  %v4245_v51 = vpop.permute.xlu1 %4244 }
0x214d   : > { %v4251_v46 = vsel %vm770_vm8, %v4245_v51, -inf }
0x214e   : > { %4258 = vrot.lane.b32.xlu0 %v4254_v47, %s6157_s17  ;;  %v4255_v48 = vmax.f32 %v4239_v57, %v4251_v46  ;;  %v4095_v50 = vpop.permute.xlu0 %4094 }
0x214f   : > { %v4100_v10 = vsel %vm371_vm3, -inf, %v4095_v50 }
0x2150   : > { %4262 = vrot.lane.b32.xlu1 %v4256_v16, %s6157_s17  ;;  %v4097_v18 = vpop.permute.xlu1 %4096  ;;  %v4116_v61 = vmax.f32 %v4100_v10, %v4112_v59 }
0x2151   : > { %v4101_v9 = vsel %vm371_vm3, -inf, %v4097_v18 }
0x2152   : > { %v4093_v52 = vpop.permute.xlu0 %4092  ;;  %v4117_v44 = vmax.f32 %v4101_v9, %v4113_v28  ;;  %v4120_v33 = vmax.f32 %v8388_v30, %v4116_v61 }
0x2153   : > { %v4099_v53 = vsel %vm371_vm3, -inf, %v4093_v52 }
0x2154   : > { %4260 = vrot.lane.b32.xlu1 %v4255_v48, %s6157_s17  ;;  %v4115_v5 = vmax.f32 %v4099_v53, %v4111_v1  ;;  %v4121_v40 = vmax.f32 %v8392_v45, %v4117_v44  ;;  %v4332_v45 = vsel %vm371_vm3, %v8426_v26, 0.0 }
0x2156   : > { %v4091_v2 = vpop.permute.xlu0 %4090  ;;  %v4119_v62 = vmax.f32 %v8402_v7, %v4115_v5  ;;  %v4330_v7 = vsel %vm371_vm3, %v8412_v41, 0.0  ;;  %v3940_v41 = vld [vmem:[%s6328_s23 + $0x7] sm:$0x1] }
0x2157   : > { %v4098_v6 = vsel %vm371_vm3, -inf, %v4091_v2  ;;  %vm4610_vm9 = vcmp.ne.f32.partialorder %v3940_v41, 0.0 }
0x2158   : > { %v4114_v8 = vmax.f32 %v4098_v6, %v4110_v23  ;;  %v8989_v23 = vld [vmem:[#allocation12_spill] sm:$0xff] }
0x215a   : > { %v4118_v46 = vmax.f32 %v8397_v39, %v4114_v8  ;;  %v8568_v39 = vld [vmem:[%s6328_s23 + $0x6] sm:$0x1]  ;;  %s8988_s23 = smov 8  }
0x215b   : > { %vm4601_vm2 = vcmp.ne.f32.partialorder %v8568_v39, 0.0 }
0x21be   : > { %v4265_v38 = vpop.permute.xlu1 %4264 }
0x21bf   : > { %v4269_v35 = vsel %vm8978_vm10, %v4265_v38, -inf  ;;  %vm4602_vm10 = vmand %vm371_vm3, %vm4601_vm2  ;;  %v4611_v38 = vsel %vm4610_vm9, 1, %v8927_v11 }
0x21c0   : > { %v4273_v42 = vmax.f32 %v4257_v19, %v4269_v35  ;;  %v4259_v37 = vpop.permute.xlu0 %4258  ;;  %v4603_v50 = vsel %vm4602_vm10, 1, %v8927_v11 }
0x21c1   : > { %v4266_v49 = vsel %vm8983_vm15, %v4259_v37, -inf  ;;  %v4607_v52 = vrot.slane %v4603_v50, %v8928_v56  ;;  %vm8987_vm15 = vcmp.ge.s32.totalorder %v6368_v12, 4 }
0x21c2   : > { %v4263_v27 = vpop.permute.xlu1 %4262  ;;  %v4337_v0 = vsel %vm371_vm3, %v4273_v42, 0.0  ;;  %v4270_v55 = vmax.f32 %v4254_v47, %v4266_v49  ;;  %v4331_v47 = vsel %vm371_vm3, %v8414_v63, 0.0  ;;  %v6045_v63 = vld [vmem:[%s8799_s4] sm:$0xff] }
0x21c3   : > { %v4268_v36 = vsel %vm8980_vm4, %v4263_v27, -inf  ;;  %v4523_v54 = vmul.f32 %v4337_v0, %v4333_v34  ;;  %v4615_v27 = vrot.slane %v4611_v38, %v8928_v56  ;;  %vm4608_vm4 = vcmp.eq.s32.totalorder %v4607_v52, 1 }
0x21c4   : > { %v4272_v17 = vmax.f32 %v4256_v16, %v4268_v36  ;;  %v4334_v51 = vsel %vm371_vm3, %v4270_v55, 0.0 }
0x21c5   : > { %v4520_v18 = vmul.f32 %v4334_v51, %v4330_v7  ;;  %vm4616_vm0 = vcmp.eq.s32.totalorder %v4615_v27, 1 }
0x21c6   : > { %v4261_v60 = vpop.permute.xlu1 %4260  ;;  %v4336_v58 = vsel %vm371_vm3, %v4272_v17, 0.0 }
0x21c7   : > { %v4267_v31 = vsel %vm8973_vm1, %v4261_v60, -inf  ;;  %v4522_v30 = vmul.f32 %v4336_v58, %v4332_v45  ;;  %vm8985_vm1 = vcmp.ge.s32.totalorder %v6368_v12, 1 }
0x21c8   : > { %v4271_v57 = vmax.f32 %v4255_v48, %v4267_v31 }
0x21ca   : > { %v4335_v32 = vsel %vm371_vm3, %v4271_v57, 0.0 }
0x21cb   : > { %v4521_v26 = vmul.f32 %v4335_v32, %v4331_v47 }
0x21dd   : > { %v5891_v15 = vpop.f32.mrf.mxu1 }
0x21de   : > { %v4525_v16 = vmul.f32 %v5891_v15, %v4119_v62  ;;  %v5875_v15 = vpop.f32.mrf.mxu0 }
0x21df   : > { %v4501_v3 = vpop.f32.mrf.mxu1  ;;  %v8603_v34 = vadd.f32 %v5875_v15, %v8934_v24 }
0x21e0   : > { %v4524_v48 = vmul.f32 %v4501_v3, %v4118_v46  ;;  %v4071_v17 = vpop.f32.mrf.mxu0 }
0x21e1   : > { %v5894_v13 = vpop.f32.mrf.mxu1 }
0x21e2   : > { %v4527_v19 = vmul.f32 %v5894_v13, %v4121_v40  ;;  %v5878_v1 = vpop.f32.mrf.mxu0  ;;  %v8606_v13 = vadd.f32 %v4071_v17, %v8989_v23 }
0x21e3   : > { %v4511_v29 = vpop.f32.mrf.mxu1  ;;  %v8593_v57 = vadd.f32 %v5878_v1, %v8932_v14 }
0x21e4   : > { %v4526_v22 = vmul.f32 %v4511_v29, %v4120_v33  ;;  %4552 = vmatprep.subr.mxu1 %v4527_v19  ;;  %v4081_v0 = vpop.f32.mrf.mxu0 }
0x21e5   : > { %4553 = vmatpush1.msra.mxu1 %v4523_v54  ;;  %v8596_v40 = vadd.f32 %v4081_v0, %v8933_v21 }
0x21e6   : > { %4554 = vmatprep.subr.mxu1 %v4526_v22 }
0x21e7   : > { %4555 = vmatpush1.msra.mxu1 %v4522_v30 }
0x21e8   : > { %4556 = vmatprep.subr.mxu1 %v4525_v16 }
0x21e9   : > { %4557 = vmatpush1.msra.mxu1 %v4521_v26 }
0x21ea   : > { %4558 = vmatprep.subr.mxu1 %v4524_v48 }
0x21eb   : > { %4559 = vmatpush1.msra.mxu1 %v4520_v18 }
0x21ec   : > { %5357 = vmatmul.mubr.msk.f32.vlgmr.msra.gmra.mxu1 %vm1119_vm11, %v6045_v63  ;;  %5895 = vmatprep.subr.mxu1 %v8871_v25 }
0x21ed   : > { %5896 = vmatpush3.xpose.msk.msra.mxu1 %vm6491_vm7, %v8872_v43  ;;  %5897 = vmatprep.mubr.msk.f32.mxu1 %vm6165_vm14, %v8871_v25 }
0x21ee   : > { %5900 = vmatprep.subr.mxu1 %v8871_v25 }
0x22ac   : > { %v4594_v2 = vpop.f32.mrf.mxu1 }
0x22ad   : > { %v4599_v9 = vmul.f32 0.17677669, %v4594_v2 }
0x22ae   : > { %v4596_v35 = vpop.f32.mrf.mxu1 }
0x22af   : > { %v4600_v10 = vmul.f32 0.17677669, %v4596_v35  ;;  %v4609_v60 = vsel %vm4608_vm4, %v4599_v9, -inf  ;;  %vm9000_vm4 = vcmp.eq.s32.totalorder %v6368_v12, 15 }
0x22b1   : > { %v4617_v28 = vsel %vm4616_vm0, %v4600_v10, -inf }
0x22b2   : > { %v4618_v36 = vmax.f32 %v4609_v60, %v4617_v28 }
0x22b4   : > { %4621 = vrot.lane.b32.xlu0 %v4618_v36, %s6159_s15  ;;  %4619 = vrot.lane.b32.xlu1 %v4618_v36, %s6152_s9 }
0x2326   : > { %v4622_v59 = vpop.permute.xlu0 %4621  ;;  %v4620_v44 = vpop.permute.xlu1 %4619 }
0x2327   : > { %v4623_v11 = vsel %vm8985_vm1, %v4620_v44, %v4622_v59  ;;  %vm9003_vm1 = vmmov %vm9000_vm4 }
0x2328   : > { %v4624_v42 = vmax.f32 %v4618_v36, %v4623_v11 }
0x232a   : > { %4627 = vrot.lane.b32.xlu0 %v4624_v42, %s6160_s25  ;;  %4625 = vrot.lane.b32.xlu1 %v4624_v42, %s6161_s26 }
0x239c   : > { %v4628_v37 = vpop.permute.xlu0 %4627  ;;  %v4626_v61 = vpop.permute.xlu1 %4625 }
0x239d   : > { %v4629_v53 = vsel %vm8986_vm13, %v4626_v61, %v4628_v37 }
0x239e   : > { %v4630_v31 = vmax.f32 %v4624_v42, %v4629_v53 }
0x23a0   : > { %4633 = vrot.lane.b32.xlu0 %v4630_v31, %s8883_s11  ;;  %4631 = vrot.lane.b32.xlu1 %v4630_v31, %s8884_s20 }
0x2412   : > { %v4634_v6 = vpop.permute.xlu0 %4633  ;;  %v4632_v49 = vpop.permute.xlu1 %4631 }
0x2413   : > { %v4635_v3 = vsel %vm8987_vm15, %v4632_v49, %v4634_v6  ;;  %vm9005_vm15 = vmmov %vm9003_vm1 }
0x2414   : > { %v4636_v5 = vmax.f32 %v4630_v31, %v4635_v3 }
0x2416   : > { %4639 = vrot.lane.b32.xlu0 %v4636_v5, %s6157_s17  ;;  %4637 = vrot.lane.b32.xlu1 %v4636_v5, %s8988_s23 }
0x241a   : > { %4138 = vrot.lane.b32.xlu0 %v8596_v40, %s6151_s0  ;;  %4140 = vrot.lane.b32.xlu1 %v8593_v57, %s6151_s0 }
0x241e   : > { %4134 = vrot.lane.b32.xlu0 %v8606_v13, %s6151_s0  ;;  %4136 = vrot.lane.b32.xlu1 %v8603_v34, %s6151_s0 }
0x2488   : > { %v4640_v14 = vpop.permute.xlu0 %4639  ;;  %v4638_v21 = vpop.permute.xlu1 %4637 }
0x2489   : > { %v4641_v33 = vsel %vm8990_vm12, %v4638_v21, %v4640_v14  ;;  %v4802_v21 = vrot.slane %v8568_v39, %v8928_v56  ;;  %v6047_v56 = vld [vmem:[%s8800_s5 + $0x8] sm:$0xff] }
0x248a   : > { %v4642_v8 = vmax.f32 %v4636_v5, %v4641_v33  ;;  %v8995_v39 = vld [vmem:[#allocation16_spill] sm:$0xff] }
0x248c   : > { %v4643_v55 = vmax.f32 %v4642_v8, -1e+30  ;;  %v8614_v58 = vpop.permute.xlu0 %4138  ;;  %v8616_v24 = vpop.permute.xlu1 %4140 }
0x248d   : > { %v4276_v19 = vsel %vm732_vm5, %v8614_v58, -inf  ;;  %v4277_v54 = vsel %vm732_vm5, %v8616_v24, -inf }
0x248e   : > { %v4644_v29 = vsub.f32 %v4609_v60, %v4643_v55  ;;  %v4647_v45 = vsub.f32 %v4617_v28, %v4643_v55  ;;  %v4280_v32 = vmax.f32 %v8596_v40, %v4276_v19  ;;  %v4281_v62 = vmax.f32 %v8593_v57, %v4277_v54 }
0x2490   : > { %v4645_v22 = vmul.f32 1.442695, %v4644_v29  ;;  %v4648_v30 = vmul.f32 1.442695, %v4647_v45  ;;  %4286 = vrot.lane.b32.xlu0 %v4280_v32, %s6154_s16  ;;  %v8627_v47 = vpop.permute.xlu0 %4134  ;;  %4288 = vrot.lane.b32.xlu1 %v4281_v62, %s6154_s16  ;;  %v8630_v51 = vpop.permute.xlu1 %4136  ;;  %v6046_v45 = vld [vmem:[%s8800_s5] sm:$0xff] }
0x2491   : > { %v4274_v16 = vsel %vm732_vm5, %v8627_v47, -inf  ;;  %v4275_v46 = vsel %vm732_vm5, %v8630_v51, -inf  ;;  %vm8991_vm5 = vcmask 64512  }
0x2492   : > { %6009 = vpow2.f32 %v4645_v22  ;;  %v4278_v26 = vmax.f32 %v8606_v13, %v4274_v16  ;;  %v4279_v7 = vmax.f32 %v8603_v34, %v4275_v46  ;;  %vm8994_vm2 = vmmov %vm8991_vm5  ;;  %v8997_v22 = vld [vmem:[#allocation9_spill] sm:$0xff]  ;;  %v8999_v16 = vld [vmem:[#allocation11_spill] sm:$0xff] }
0x2493   : > { %6011 = vpow2.f32 %v4648_v30  ;;  %vm8996_vm10 = vmmov %vm8994_vm2  ;;  %v6049_v30 = vld [vmem:[%s8800_s5 + $0x18] sm:$0xff] }
0x2494   : > { %4282 = vrot.lane.b32.xlu0 %v4278_v26, %s6154_s16  ;;  %4284 = vrot.lane.b32.xlu1 %v4279_v7, %s6154_s16  ;;  %vm8998_vm9 = vmmov %vm8994_vm2 }
0x249f   : > { %v6010_v48 = vpop.eup %6009 }
0x24a0   : > { %v6012_v18 = vpop.eup %6011 }
0x24a1   : > { %v4650_v63 = vadd.f32 %v6012_v18, %v6010_v48 }
0x24a3   : > { %5898 = vmatmul.mubr.f32.vlgmr.msra.gmra.mxu1 %v4650_v63 }
0x24a4   : > { %5901 = vmatpush3.msk.msra.mxu1 %vm6491_vm7, %v8872_v43  ;;  %5902 = vmatprep.mubr.msk.f32.mxu1 %vm6165_vm14, %v8871_v25 }
0x2502   : > { %v4287_v41 = vpop.permute.xlu0 %4286  ;;  %v4289_v50 = vpop.permute.xlu1 %4288 }
0x2503   : > { %v4292_v38 = vsel %vm751_vm6, %v4287_v41, -inf  ;;  %v4293_v52 = vsel %vm751_vm6, %v4289_v50, -inf }
0x2504   : > { %v4296_v27 = vmax.f32 %v4280_v32, %v4292_v38  ;;  %v4297_v2 = vmax.f32 %v4281_v62, %v4293_v52  ;;  %v8993_v32 = vld [vmem:[#allocation15_spill] sm:$0xff]  ;;  %v6048_v62 = vld [vmem:[%s8800_s5 + $0x10] sm:$0xff] }
0x2506   : > { %4302 = vrot.lane.b32.xlu0 %v4296_v27, %s6155_s13  ;;  %v4283_v9 = vpop.permute.xlu0 %4282  ;;  %4304 = vrot.lane.b32.xlu1 %v4297_v2, %s6155_s13  ;;  %v4285_v35 = vpop.permute.xlu1 %4284 }
0x2507   : > { %v4290_v10 = vsel %vm751_vm6, %v4283_v9, -inf  ;;  %v4291_v60 = vsel %vm751_vm6, %v4285_v35, -inf }
0x2508   : > { %v4294_v28 = vmax.f32 %v4278_v26, %v4290_v10  ;;  %v4295_v36 = vmax.f32 %v4279_v7, %v4291_v60 }
0x250a   : > { %4298 = vrot.lane.b32.xlu0 %v4294_v28, %s6155_s13  ;;  %4300 = vrot.lane.b32.xlu1 %v4295_v36, %s6155_s13 }
0x250e   : > { %4128 = vrot.lane.b32.xlu1 %v8593_v57, %s6152_s9 }
0x2512   : > { %4126 = vrot.lane.b32.xlu1 %v8596_v40, %s6152_s9 }
0x2516   : > { %4124 = vrot.lane.b32.xlu1 %v8603_v34, %s6152_s9 }
0x251a   : > { %4122 = vrot.lane.b32.xlu1 %v8606_v13, %s6152_s9 }
0x2563   : > { %v4717_v59 = vpop.f32.mrf.mxu1 }
0x2564   : > { %5903 = vmatmul.mubr.msk.f32.vlgmr.msra.gmra.mxu1 %vm8991_vm5, %v4717_v59 }
0x2565   : > { %v5899_v44 = vpop.f32.mrf.mxu1  ;;  %4871 = vmatprep.mubr.f32.mxu1 %v8871_v25 }
0x2566   : > { %v4144_v44 = vsel %vm9003_vm1, -inf, %v8614_v58  ;;  %v4143_v58 = vsel %vm9005_vm15, -inf, %v8630_v51 }
0x2578   : > { %v4303_v11 = vpop.permute.xlu0 %4302  ;;  %v4305_v42 = vpop.permute.xlu1 %4304 }
0x2579   : > { %v4309_v37 = vsel %vm770_vm8, %v4305_v42, -inf  ;;  %v4308_v53 = vsel %vm770_vm8, %v4303_v11, -inf }
0x257a   : > { %v8671_v61 = vmax.f32 %v4297_v2, %v4309_v37  ;;  %v8677_v15 = vmax.f32 %v4296_v27, %v4308_v53  ;;  %v4145_v27 = vsel %vm9000_vm4, -inf, %v8616_v24 }
0x257c   : > { %4320 = vrot.lane.b32.xlu0 %v8671_v61, %s6157_s17  ;;  %v4301_v31 = vpop.permute.xlu1 %4300  ;;  %v4299_v1 = vpop.permute.xlu0 %4298 }
0x257d   : > { %v4307_v17 = vsel %vm770_vm8, %v4301_v31, -inf  ;;  %v4306_v49 = vsel %vm770_vm8, %v4299_v1, -inf  ;;  %vm8992_vm8 = vmmov %vm8991_vm5 }
0x257e   : > { %v8683_v6 = vmax.f32 %v4295_v36, %v4307_v17  ;;  %v8689_v3 = vmax.f32 %v4294_v28, %v4306_v49  ;;  %vm9007_vm5 = vmmov %vm9003_vm1 }
0x2580   : > { %4318 = vrot.lane.b32.xlu0 %v8677_v15, %s6157_s17  ;;  %v4129_v26 = vpop.permute.xlu1 %4128 }
0x2581   : > { %v4133_v38 = vsel %vm371_vm3, -inf, %v4129_v26 }
0x2582   : > { %v4149_v9 = vmax.f32 %v4133_v38, %v4145_v27 }
0x2584   : > { %4316 = vrot.lane.b32.xlu0 %v8683_v6, %s6157_s17  ;;  %v4127_v63 = vpop.permute.xlu1 %4126  ;;  %v4153_v53 = vmax.f32 %v8593_v57, %v4149_v9 }
0x2585   : > { %v4132_v36 = vsel %vm371_vm3, -inf, %v4127_v63 }
0x2586   : > { %v4148_v42 = vmax.f32 %v4132_v36, %v4144_v44 }
0x2588   : > { %4314 = vrot.lane.b32.xlu0 %v8689_v3, %s6157_s17  ;;  %v4125_v35 = vpop.permute.xlu1 %4124 }
0x2589   : > { %v4131_v17 = vsel %vm371_vm3, -inf, %v4125_v35 }
0x25ee   : > { %v4321_v46 = vpop.permute.xlu0 %4320 }
0x2624   : > { %v4790_v5 = vpop.f32.mrf.mxu1 }
0x2625   : > { %vm4794_vm6 = vcmp.gt.f32.partialorder %v4790_v5, 0.0 }
0x2626   : > { %v4795_v0 = vsel %vm4794_vm6, %v4790_v5, 1.0  ;;  %v5904_v23 = vpop.f32.mrf.mxu1 }
0x2627   : > { %6013 = vrcp.f32 %v4795_v0  ;;  %v4123_v0 = vpop.permute.xlu1 %4122 }
0x2634   : > { %v6014_v14 = vpop.eup %6013 }
0x2635   : > { %v4797_v33 = vmul.f32 %v6014_v14, %v6012_v18  ;;  %v4804_v8 = vmul.f32 %v6014_v14, %v6010_v48  ;;  %v4319_v18 = vpop.permute.xlu0 %4318  ;;  %v4147_v14 = vmax.f32 %v4131_v17, %v4143_v58 }
0x2637   : > { %v4798_v55 = vsel %vm4794_vm6, %v4797_v33, 0.0  ;;  %v4805_v19 = vsel %vm4794_vm6, %v4804_v8, 0.0  ;;  %v4130_v8 = vsel %vm371_vm3, -inf, %v4123_v0 }
0x2638   : > { %v4803_v54 = vmul.f32 %v4802_v21, %v4798_v55  ;;  %v4806_v29 = vmul.f32 %v4805_v19, %v4802_v21  ;;  %v4152_v21 = vmax.f32 %v8596_v40, %v4148_v42  ;;  %v4151_v40 = vmax.f32 %v8603_v34, %v4147_v14 }
0x2639   : > { %v4317_v2 = vpop.permute.xlu0 %4316 }
0x263a   : > { %4837 = vmatprep.subr.mxu1 %v4806_v29 }
0x263b   : > { %4838 = vmatpush1.msra.mxu1 %v4803_v54 }
0x263c   : > { %5361 = vmatmul.mubr.msk.f32.vlgmr.msra.gmra.mxu1 %vm8992_vm8, %v6046_v45  ;;  %5916 = vmatprep.subr.mxu1 %v8871_v25 }
0x263d   : > { %4877 = vmatprep.mubr.f32.mxu1 %v8871_v25  ;;  %5917 = vmatpush3.xpose.msk.msra.mxu1 %vm1119_vm11, %v8993_v32  ;;  %v4315_v1 = vpop.permute.xlu0 %4314 }
0x263e   : > { %5918 = vmatprep.subr.mxu1 %v8871_v25 }
0x2640   : > { %5362 = vmatmul.mubr.msk.f32.gmra.mxu1 %vm8994_vm2, %v6047_v56 }
0x2641   : > { %4883 = vmatprep.mubr.f32.mxu1 %v8871_v25  ;;  %5919 = vmatpush3.xpose.msk.msra.mxu1 %vm1119_vm11, %v8995_v39 }
0x2642   : > { %5920 = vmatprep.subr.mxu1 %v8871_v25 }
0x2644   : > { %5363 = vmatmul.mubr.msk.f32.gmra.mxu1 %vm8996_vm10, %v6048_v62 }
0x2645   : > { %4889 = vmatprep.mubr.f32.mxu1 %v8871_v25  ;;  %5921 = vmatpush3.xpose.msk.msra.mxu1 %vm1119_vm11, %v8997_v22 }
0x2646   : > { %5922 = vmatprep.subr.mxu1 %v8871_v25 }
0x2648   : > { %5364 = vmatmul.mubr.msk.f32.gmra.mxu1 %vm8998_vm9, %v6049_v30 }
0x2649   : > { %5923 = vmatpush3.xpose.msk.msra.mxu1 %vm1119_vm11, %v8999_v16  ;;  %5924 = vmatprep.mubr.msk.f32.mxu1 %vm6165_vm14, %v8871_v25  ;;  %vm9001_vm14 = vcmp.lt.s32.totalorder %v6368_v12, 8 }
0x264a   : > { %v4325_v10 = vsel %vm9001_vm14, %v4321_v46, -inf  ;;  %vm9002_vm0 = vmmov %vm9001_vm14 }
0x264b   : > { %v4324_v60 = vsel %vm9002_vm0, %v4319_v18, -inf  ;;  %v4329_v24 = vmax.f32 %v8671_v61, %v4325_v10  ;;  %vm9004_vm13 = vmmov %vm9002_vm0 }
0x264c   : > { %v4328_v11 = vmax.f32 %v8677_v15, %v4324_v60  ;;  %v4323_v37 = vsel %vm9004_vm13, %v4317_v2, -inf  ;;  %vm9006_vm12 = vmmov %vm9002_vm0 }
0x264d   : > { %v4327_v61 = vmax.f32 %v8683_v6, %v4323_v37  ;;  %v4322_v57 = vsel %vm9006_vm12, %v4315_v1, -inf  ;;  %v4142_v6 = vsel %vm9007_vm5, -inf, %v8627_v47 }
0x264e   : > { %v4326_v54 = vmax.f32 %v8689_v3, %v4322_v57  ;;  %v4146_v29 = vmax.f32 %v4130_v8, %v4142_v6 }
0x2650   : > { %v4150_v62 = vmax.f32 %v8606_v13, %v4146_v29 }
0x26fc   : > { %v4873_v7 = vpop.f32.mrf.mxu1 }
0x26fd   : > { %v4896_v22 = vmul.f32 %v4873_v7, %v4150_v62 }
0x26fe   : > { %v4875_v48 = vpop.f32.mrf.mxu1 }
0x26ff   : > { %v4900_v32 = vmul.f32 %v4875_v48, %v4326_v54 }
0x2700   : > { %v4879_v41 = vpop.f32.mrf.mxu1 }
0x2701   : > { %v4897_v39 = vmul.f32 %v4879_v41, %v4151_v40  ;;  %v4904_v3 = vsel %vm371_vm3, %v4900_v32, 0.0 }
0x2702   : > { %v4881_v50 = vpop.f32.mrf.mxu1  ;;  %v4908_v34 = vadd.f32 %v4904_v3, %v4896_v22 }
0x2703   : > { %v4901_v55 = vmul.f32 %v4881_v50, %v4327_v61 }
0x2704   : > { %v4885_v52 = vpop.f32.mrf.mxu1 }
0x2705   : > { %v4898_v51 = vmul.f32 %v4885_v52, %v4152_v21  ;;  %v4905_v56 = vsel %vm371_vm3, %v4901_v55, 0.0 }
0x2706   : > { %v4887_v28 = vpop.f32.mrf.mxu1  ;;  %v4909_v47 = vadd.f32 %v4905_v56, %v4897_v39 }
0x2707   : > { %v4902_v49 = vmul.f32 %v4887_v28, %v4328_v11 }
0x2708   : > { %v4891_v59 = vpop.f32.mrf.mxu1 }
0x2709   : > { %v4899_v23 = vmul.f32 %v4891_v59, %v4153_v53  ;;  %v4906_v19 = vsel %vm371_vm3, %v4902_v49, 0.0 }
0x270a   : > { %v4893_v31 = vpop.f32.mrf.mxu1  ;;  %v4910_v45 = vadd.f32 %v4906_v19, %v4898_v51 }
0x270b   : > { %v4903_v5 = vmul.f32 %v4893_v31, %v4329_v24 }
0x270d   : > { %v4907_v15 = vsel %vm371_vm3, %v4903_v5, 0.0 }
0x270e   : > { %v4911_v33 = vadd.f32 %v4907_v15, %v4899_v23 }
0x2710   : > { %5906 = vmatpush3.xpose.msra.mxu0 %v4911_v33 }
0x2711   : > { %5907 = vmatprep.subr.mxu0 %v8871_v25 }
0x2714   : > { %5908 = vmatpush3.xpose.msra.mxu0 %v4910_v45 }
0x2715   : > { %5909 = vmatprep.subr.mxu0 %v8871_v25 }
0x2718   : > { %5910 = vmatpush3.xpose.msra.mxu0 %v4909_v47 }
0x2719   : > { %5911 = vmatprep.subr.mxu0 %v8871_v25 }
0x271c   : > { %5912 = vmatpush3.xpose.msra.mxu0 %v4908_v34 }
0x271f   : > { %5914 = vmatmul.mubr.msk.f32.vlgmr.msra.gmra.mxu0 %vm6491_vm7, %v8872_v43 }
0x27df   : > { %v4978_v30 = vpop.f32.mrf.mxu0 }
0x27e0   : > { %5925 = vmatmul.mubr.msk.f32.vlgmr.msra.gmra.mxu1 %vm1119_vm11, %v4978_v30 }
0x27e1   : > { %v5915_v16 = vpop.f32.mrf.mxu0 }
0x28a0   : > { %v5051_v46 = vpop.f32.mrf.mxu1 }
0x28a1   : > { %v5052_v13 = vadd.f32 %v8359_v20, %v5051_v46 }
0x28a2   : > { %v5926_v26 = vpop.f32.mrf.mxu1 }
0x28a3   : > { %5055 = vst.msk [vmem:[%s7193_s24 + $0x18] sm:$0xff] %vm1119_vm11, %v5052_v13 }
0x28a4 PF: > { %s9008_s11 = sld [smem:[#allocation8_spill]]  ;;  %p21_p8 = scmp.ge.s32.totalorder %s6231_s10, 4  }
0x28a5   : > { %s9009_s27 = smov %s6136_s28  ;;  %s9010_s28 = smov %s6140_s29 }
0x28a6   : > { %s9012_s30 = smov %s6231_s10  ;;  %23 = sbr.rel (!%p21_p8) target bundleno = 7 (0x7), region = 105 }
0x28aa   : > { %s9011_s29 = smov %s9008_s11 }
0x28ab   :  { %5078 = vsyncpa [#allocation3], 1 }
0x28ac   :  { %5080 = vsyncpa [#allocation3 + $0x1], 1 }
0x28ad   :  { %5081 = vsyncpa [#allocation5], 1 }
0x28ae   :  { %5083 = vsyncpa [#allocation5 + $0x1], 1 }

</bundles_post_ra>
